<compile_context>
chip_gen: v6e
topology: v6e:2x2x1
jax: 0.10.0
libtpu: 0.0.40
codegen_flags: <defaults>
</compile_context>

<pallas_src>
import functools

import jax
import jax.numpy as jnp
from jax.experimental import pallas as pl
from jax.experimental.pallas import tpu as pltpu


HEAD_COLS = 128  # lane-dense packed output width (one f32 vreg of lanes)


# ----------------------------------------------------------------------------
# Fused kernel
# ----------------------------------------------------------------------------
def _elu(x):
    # clamp the exp argument so the unselected branch never produces inf
    return jnp.where(x > 0.0, x, jnp.exp(jnp.minimum(x, 0.0)) - 1.0)


def _ppo_fused_kernel(
    lm_ref, sm_ref,
    wb_l_ref, bb_l_ref, wb_s_ref, bb_s_ref,
    wfc_l_ref, bfc_l_ref, wfc_s_ref, bfc_s_ref,
    wm_l_ref, wm_s_ref, bm_ref,
    w_ih_ref, b_ih_ref, w_hh_ref, b_hh_ref,
    w_ac_ref, b_ac_ref, w_head_ref, b_head_ref,
    h0_ref,
    # outputs
    packed_ref, hfin_ref,
    # scratch
    rnn_scr,
    *, seq_len, batch, hidden, act_dim,
):
    f32 = jnp.float32
    n_rows = seq_len * batch

    def mm(a, w_ref):
        # MXU at native bf16 rate, f32 accumulation; elementwise stays f32.
        return jnp.dot(a.astype(jnp.bfloat16), w_ref[...],
                       preferred_element_type=f32)

    # ---- backbone stand-ins + resnet.fc replacements (both branches) -------
    feat_l = jnp.maximum(mm(lm_ref[...], wb_l_ref) + bb_l_ref[...], 0.0)
    feat_s = jnp.maximum(mm(sm_ref[...], wb_s_ref) + bb_s_ref[...], 0.0)
    l_cnn = mm(feat_l, wfc_l_ref) + bfc_l_ref[...]          # [N, 128]
    s_cnn = mm(feat_s, wfc_s_ref) + bfc_s_ref[...]          # [N, 128]

    # ---- merge_fc (concat avoided: w_merge split into two halves) ----------
    rnn_in = _elu(mm(l_cnn, wm_l_ref) + mm(s_cnn, wm_s_ref) + bm_ref[...])

    # ---- GRU: input projection for all timesteps at once -------------------
    xg_all = mm(rnn_in, w_ih_ref) + b_ih_ref[...]            # [N, 3H] f32

    w_hh = w_hh_ref[...]                                     # bf16 [H, 3H]
    b_hh = b_hh_ref[...]                                     # f32  [1, 3H]

    # ---- GRU recurrence, fully unrolled over the (small, static) seq_len ---
    h = h0_ref[...]                                          # [B, H] f32
    for t in range(seq_len):
        xg = xg_all[t * batch:(t + 1) * batch, :]            # static slice
        hh = jnp.dot(h.astype(jnp.bfloat16), w_hh,
                     preferred_element_type=f32) + b_hh
        # PyTorch GRU gate order: r, z, n
        r = jax.nn.sigmoid(xg[:, :hidden] + hh[:, :hidden])
        z = jax.nn.sigmoid(xg[:, hidden:2 * hidden] + hh[:, hidden:2 * hidden])
        n = jnp.tanh(xg[:, 2 * hidden:] + r * hh[:, 2 * hidden:])
        h = (1.0 - z) * n + z * h
        rnn_scr[t * batch:(t + 1) * batch, :] = h
    hfin_ref[...] = h

    rnn_flat = rnn_scr[...]                                  # [N, H]

    # ---- fused actor/critic fc (one [H,64] matmul) --------------------------
    ac_hidden = _elu(mm(rnn_flat, w_ac_ref) + b_ac_ref[...])  # [N, 64]

    # ---- fused pi/value head; w_head is zero-padded to [64, 128] so the
    # ---- result pv is already a lane-dense [N, 128] slab --------------------
    pv = jnp.dot(ac_hidden, w_head_ref[...],
                 preferred_element_type=f32) + b_head_ref[...]   # [N, 128]
    pi = pv[:, :act_dim]                                     # [N, act_dim]
    val = pv[:, act_dim:act_dim + 1]                         # [N, 1]

    # ---- Categorical(logits=pi): argmax action, log_prob, entropy ----------
    m = jnp.max(pi, axis=-1, keepdims=True)
    shifted = pi - m
    lse = jnp.log(jnp.sum(jnp.exp(shifted), axis=-1, keepdims=True))
    logp = shifted - lse
    probs = jnp.exp(logp)
    entropy = -jnp.sum(probs * logp, axis=-1, keepdims=True)
    idx = jax.lax.broadcasted_iota(jnp.int32, pi.shape, 1)
    # first-occurrence argmax (matches torch.max(...)[1])
    action = jnp.min(jnp.where(pi == m, idx, act_dim), axis=-1, keepdims=True)
    onehot = (idx == action).astype(f32)
    log_prob = jnp.sum(logp * onehot, axis=-1, keepdims=True)

    # ---- pack everything into ONE lane-dense [N, 128] output ----------------
    # cols [0:act_dim]          -> pi logits (already in pv)
    # col  act_dim              -> action (as f32)
    # col  act_dim + 1          -> log_prob
    # col  act_dim + 2          -> entropy
    # col  act_dim + 3          -> value
    col = jax.lax.broadcasted_iota(jnp.int32, (n_rows, packed_ref.shape[1]), 1)
    packed_ref[...] = jnp.where(
        col < act_dim, pv,
        jnp.where(col == act_dim, action.astype(f32),
                  jnp.where(col == act_dim + 1, log_prob,
                            jnp.where(col == act_dim + 2, entropy,
                                      jnp.where(col == act_dim + 3, val,
                                                0.0)))))


# ----------------------------------------------------------------------------
# Parameters (deterministic, synthetic) + forward wrapper
# ----------------------------------------------------------------------------
def init_params(key, in_feats, act_dim, rnn_hidden_dim=128):
    num_ftrs = 512
    H = rnn_hidden_dim
    ks = jax.random.split(key, 12)

    def w(k, shape, scale=0.05):
        return (scale * jax.random.normal(k, shape)).astype(jnp.float32)

    zeros = lambda *s: jnp.zeros(s, jnp.float32)
    bf16 = lambda a: a.astype(jnp.bfloat16)

    # merge_fc: Linear(256, H) -> split into the two 128-row halves
    w_merge = w(ks[4], (256, H))

    # actor_fc / critic_fc: Linear(H, 32) each -> fused into one [H, 64]
    w_afc, b_afc = w(ks[7], (H, 32)), zeros(1, 32)
    w_cfc, b_cfc = w(ks[9], (H, 32)), zeros(1, 32)

    # actor_head (xavier gain=0.01 stand-in, bias 0) / critic_head
    w_ah, b_ah = w(ks[8], (32, act_dim), scale=0.01), zeros(1, act_dim)
    w_ch, b_ch = w(ks[10], (32, 1)), zeros(1, 1)
    # block-diagonal fused head, zero-padded to 128 lanes so the kernel's
    # head matmul directly produces a lane-dense [N, 128] output slab:
    # [a_hidden | c_hidden] @ W -> [pi | val | 0...]
    assert act_dim + 4 <= HEAD_COLS
    w_head = jnp.zeros((64, HEAD_COLS), jnp.float32)
    w_head = w_head.at[:32, :act_dim].set(w_ah)
    w_head = w_head.at[32:, act_dim:act_dim + 1].set(w_ch)
    b_head = jnp.zeros((1, HEAD_COLS), jnp.float32)
    b_head = b_head.at[:, :act_dim].set(b_ah)
    b_head = b_head.at[:, act_dim:act_dim + 1].set(b_ch)

    return dict(
        # stand-in backbones (TODO(synk): resnet18 trunk)
        wb_l=bf16(w(ks[0], (in_feats, num_ftrs))), bb_l=zeros(1, num_ftrs),
        wb_s=bf16(w(ks[1], (in_feats, num_ftrs))), bb_s=zeros(1, num_ftrs),
        # resnet .fc replacements: Linear(512, 128)
        wfc_l=bf16(w(ks[2], (num_ftrs, 128))), bfc_l=zeros(1, 128),
        wfc_s=bf16(w(ks[3], (num_ftrs, 128))), bfc_s=zeros(1, 128),
        # merge_fc split halves
        wm_l=bf16(w_merge[:128]), wm_s=bf16(w_merge[128:]), b_merge=zeros(1, H),
        # GRU (stored transposed so x @ W^T works): [H, 3H]
        w_ih_t=bf16(w(ks[5], (H, 3 * H))), b_ih=zeros(1, 3 * H),
        w_hh_t=bf16(w(ks[6], (H, 3 * H))), b_hh=zeros(1, 3 * H),
        # fused actor/critic fc + fused (lane-padded) heads
        w_ac=bf16(jnp.concatenate([w_afc, w_cfc], axis=1)),
        b_ac=jnp.concatenate([b_afc, b_cfc], axis=-1),
        w_head=w_head, b_head=b_head,
    )


@functools.partial(jax.jit, static_argnames=("act_dim", "deterministic"))
def ppo_nets_map_forward(params, large_maps, small_maps, hidden_state,
                         act_dim, deterministic=True):
    # large_maps/small_maps: [T, B, C, H, W] float32 ; hidden_state: [1, B, H]
    # TODO(synk): stochastic sampling path (deterministic=False) not reproduced
    T, B, C, H, W = large_maps.shape
    N = T * B
    Hdim = params["w_hh_t"].shape[0]
    head_cols = params["w_head"].shape[1]

    lm = large_maps.reshape(N, C * H * W)
    sm = small_maps.reshape(N, C * H * W)

    packed, h_final = pl.pallas_call(
        functools.partial(_ppo_fused_kernel, seq_len=T, batch=B,
                          hidden=Hdim, act_dim=act_dim),
        out_shape=(
            jax.ShapeDtypeStruct((N, head_cols), jnp.float32),  # pi + scalars
            jax.ShapeDtypeStruct((B, Hdim), jnp.float32),       # final hidden
        ),
        scratch_shapes=[pltpu.VMEM((N, Hdim), jnp.float32)],    # rnn outputs
    )(
        lm, sm,
        params["wb_l"], params["bb_l"], params["wb_s"], params["bb_s"],
        params["wfc_l"], params["bfc_l"], params["wfc_s"], params["bfc_s"],
        params["wm_l"], params["wm_s"], params["b_merge"],
        params["w_ih_t"], params["b_ih"], params["w_hh_t"], params["b_hh"],
        params["w_ac"], params["b_ac"], params["w_head"], params["b_head"],
        hidden_state[0],
    )

    pi = packed[:, :act_dim].reshape(T, B, act_dim)
    action = packed[:, act_dim].astype(jnp.int32).reshape(T, B)
    log_prob = packed[:, act_dim + 1].reshape(T, B)
    entropy = packed[:, act_dim + 2].reshape(T, B)
    val = packed[:, act_dim + 3].reshape(T, B, 1)
    new_hidden = h_final[None]                                  # [1, B, H]
    return action, log_prob, entropy, val, new_hidden, pi


# ----------------------------------------------------------------------------
# Main
# ----------------------------------------------------------------------------
if __name__ == "__main__":
    T, B, C, Hsp, Wsp = 4, 2, 3, 16, 16
    ACT_DIM = 5
    RNN_HIDDEN = 128

    key = jax.random.PRNGKey(0)
    k_params, k_lm, k_sm = jax.random.split(key, 3)

    params = init_params(k_params, C * Hsp * Wsp, ACT_DIM, RNN_HIDDEN)
    large_maps = jax.random.normal(k_lm, (T, B, C, Hsp, Wsp), jnp.float32)
    small_maps = jax.random.normal(k_sm, (T, B, C, Hsp, Wsp), jnp.float32)
    hidden0 = jnp.zeros((1, B, RNN_HIDDEN), jnp.float32)        # init_hidden (gru)

    outs = ppo_nets_map_forward(params, large_maps, small_maps, hidden0,
                                act_dim=ACT_DIM, deterministic=True)
    outs = jax.block_until_ready(outs)

    action, log_prob, entropy, val, hidden, pi = outs
    assert action.shape == (T, B) and action.dtype == jnp.int32
    assert log_prob.shape == (T, B) and entropy.shape == (T, B)
    assert val.shape == (T, B, 1)
    assert hidden.shape == (1, B, RNN_HIDDEN)
    assert pi.shape == (T, B, ACT_DIM)
    assert bool(jnp.all(jnp.isfinite(log_prob)))
    assert bool(jnp.all(jnp.isfinite(entropy)))
    assert bool(jnp.all(jnp.isfinite(val)))
    assert bool(jnp.all((action >= 0) & (action < ACT_DIM)))
    print("KERNEL_OK")
</pallas_src>

<mosaic_0001>
module attributes {stable_mosaic.version = 11 : i64} {
  func.func @_ppo_fused_kernel(%arg0: memref<8x768xf32, #tpu.memory_space<vmem>>, %arg1: memref<8x768xf32, #tpu.memory_space<vmem>>, %arg2: memref<768x512xbf16, #tpu.memory_space<vmem>>, %arg3: memref<1x512xf32, #tpu.memory_space<vmem>>, %arg4: memref<768x512xbf16, #tpu.memory_space<vmem>>, %arg5: memref<1x512xf32, #tpu.memory_space<vmem>>, %arg6: memref<512x128xbf16, #tpu.memory_space<vmem>>, %arg7: memref<1x128xf32, #tpu.memory_space<vmem>>, %arg8: memref<512x128xbf16, #tpu.memory_space<vmem>>, %arg9: memref<1x128xf32, #tpu.memory_space<vmem>>, %arg10: memref<128x128xbf16, #tpu.memory_space<vmem>>, %arg11: memref<128x128xbf16, #tpu.memory_space<vmem>>, %arg12: memref<1x128xf32, #tpu.memory_space<vmem>>, %arg13: memref<128x384xbf16, #tpu.memory_space<vmem>>, %arg14: memref<1x384xf32, #tpu.memory_space<vmem>>, %arg15: memref<128x384xbf16, #tpu.memory_space<vmem>>, %arg16: memref<1x384xf32, #tpu.memory_space<vmem>>, %arg17: memref<128x64xbf16, #tpu.memory_space<vmem>>, %arg18: memref<1x64xf32, #tpu.memory_space<vmem>>, %arg19: memref<64x128xf32, #tpu.memory_space<vmem>>, %arg20: memref<1x128xf32, #tpu.memory_space<vmem>>, %arg21: memref<2x128xf32, #tpu.memory_space<vmem>>, %arg22: memref<8x128xf32, #tpu.memory_space<vmem>>, %arg23: memref<2x128xf32, #tpu.memory_space<vmem>>, %arg24: memref<8x128xf32, #tpu.memory_space<vmem>>) attributes {dimension_semantics = [], scalar_prefetch = 0 : i64, scratch_operands = 1 : i64, tpu.core_type = #tpu.core_type<tc>} {
    %c0 = arith.constant 0 : index
    %c0_0 = arith.constant 0 : index
    %0 = vector.load %arg0[%c0, %c0_0] : memref<8x768xf32, #tpu.memory_space<vmem>>, vector<8x768xf32>
    %1 = arith.truncf %0 : vector<8x768xf32> to vector<8x768xbf16>
    %c0_1 = arith.constant 0 : index
    %c0_2 = arith.constant 0 : index
    %2 = vector.load %arg2[%c0_1, %c0_2] : memref<768x512xbf16, #tpu.memory_space<vmem>>, vector<768x512xbf16>
    %cst = arith.constant dense<0.000000e+00> : vector<8x512xf32>
    %3 = tpu.matmul %1, %2, %cst {dimension_numbers = #tpu.dot_dimension_numbers<[1], [0], [0], [1], [0, 0, 1, 1], [], []>} : vector<8x768xbf16>, vector<768x512xbf16>, vector<8x512xf32> -> vector<8x512xf32>
    %c0_3 = arith.constant 0 : index
    %c0_4 = arith.constant 0 : index
    %4 = vector.load %arg3[%c0_3, %c0_4] : memref<1x512xf32, #tpu.memory_space<vmem>>, vector<1x512xf32>
    %5 = vector.broadcast %4 : vector<1x512xf32> to vector<8x512xf32>
    %6 = arith.addf %3, %5 : vector<8x512xf32>
    %cst_5 = arith.constant 0.000000e+00 : f32
    %7 = vector.broadcast %cst_5 : f32 to vector<8x512xf32>
    %8 = arith.maximumf %6, %7 : vector<8x512xf32>
    %c0_6 = arith.constant 0 : index
    %c0_7 = arith.constant 0 : index
    %9 = vector.load %arg1[%c0_6, %c0_7] : memref<8x768xf32, #tpu.memory_space<vmem>>, vector<8x768xf32>
    %10 = arith.truncf %9 : vector<8x768xf32> to vector<8x768xbf16>
    %c0_8 = arith.constant 0 : index
    %c0_9 = arith.constant 0 : index
    %11 = vector.load %arg4[%c0_8, %c0_9] : memref<768x512xbf16, #tpu.memory_space<vmem>>, vector<768x512xbf16>
    %cst_10 = arith.constant dense<0.000000e+00> : vector<8x512xf32>
    %12 = tpu.matmul %10, %11, %cst_10 {dimension_numbers = #tpu.dot_dimension_numbers<[1], [0], [0], [1], [0, 0, 1, 1], [], []>} : vector<8x768xbf16>, vector<768x512xbf16>, vector<8x512xf32> -> vector<8x512xf32>
    %c0_11 = arith.constant 0 : index
    %c0_12 = arith.constant 0 : index
    %13 = vector.load %arg5[%c0_11, %c0_12] : memref<1x512xf32, #tpu.memory_space<vmem>>, vector<1x512xf32>
    %14 = vector.broadcast %13 : vector<1x512xf32> to vector<8x512xf32>
    %15 = arith.addf %12, %14 : vector<8x512xf32>
    %cst_13 = arith.constant 0.000000e+00 : f32
    %16 = vector.broadcast %cst_13 : f32 to vector<8x512xf32>
    %17 = arith.maximumf %15, %16 : vector<8x512xf32>
    %18 = arith.truncf %8 : vector<8x512xf32> to vector<8x512xbf16>
    %c0_14 = arith.constant 0 : index
    %c0_15 = arith.constant 0 : index
    %19 = vector.load %arg6[%c0_14, %c0_15] : memref<512x128xbf16, #tpu.memory_space<vmem>>, vector<512x128xbf16>
    %cst_16 = arith.constant dense<0.000000e+00> : vector<8x128xf32>
    %20 = tpu.matmul %18, %19, %cst_16 {dimension_numbers = #tpu.dot_dimension_numbers<[1], [0], [0], [1], [0, 0, 1, 1], [], []>} : vector<8x512xbf16>, vector<512x128xbf16>, vector<8x128xf32> -> vector<8x128xf32>
    %c0_17 = arith.constant 0 : index
    %c0_18 = arith.constant 0 : index
    %21 = vector.load %arg7[%c0_17, %c0_18] : memref<1x128xf32, #tpu.memory_space<vmem>>, vector<1x128xf32>
    %22 = vector.broadcast %21 : vector<1x128xf32> to vector<8x128xf32>
    %23 = arith.addf %20, %22 : vector<8x128xf32>
    %24 = arith.truncf %17 : vector<8x512xf32> to vector<8x512xbf16>
    %c0_19 = arith.constant 0 : index
    %c0_20 = arith.constant 0 : index
    %25 = vector.load %arg8[%c0_19, %c0_20] : memref<512x128xbf16, #tpu.memory_space<vmem>>, vector<512x128xbf16>
    %cst_21 = arith.constant dense<0.000000e+00> : vector<8x128xf32>
    %26 = tpu.matmul %24, %25, %cst_21 {dimension_numbers = #tpu.dot_dimension_numbers<[1], [0], [0], [1], [0, 0, 1, 1], [], []>} : vector<8x512xbf16>, vector<512x128xbf16>, vector<8x128xf32> -> vector<8x128xf32>
    %c0_22 = arith.constant 0 : index
    %c0_23 = arith.constant 0 : index
    %27 = vector.load %arg9[%c0_22, %c0_23] : memref<1x128xf32, #tpu.memory_space<vmem>>, vector<1x128xf32>
    %28 = vector.broadcast %27 : vector<1x128xf32> to vector<8x128xf32>
    %29 = arith.addf %26, %28 : vector<8x128xf32>
    %30 = arith.truncf %23 : vector<8x128xf32> to vector<8x128xbf16>
    %c0_24 = arith.constant 0 : index
    %c0_25 = arith.constant 0 : index
    %31 = vector.load %arg10[%c0_24, %c0_25] : memref<128x128xbf16, #tpu.memory_space<vmem>>, vector<128x128xbf16>
    %cst_26 = arith.constant dense<0.000000e+00> : vector<8x128xf32>
    %32 = tpu.matmul %30, %31, %cst_26 {dimension_numbers = #tpu.dot_dimension_numbers<[1], [0], [0], [1], [0, 0, 1, 1], [], []>} : vector<8x128xbf16>, vector<128x128xbf16>, vector<8x128xf32> -> vector<8x128xf32>
    %33 = arith.truncf %29 : vector<8x128xf32> to vector<8x128xbf16>
    %c0_27 = arith.constant 0 : index
    %c0_28 = arith.constant 0 : index
    %34 = vector.load %arg11[%c0_27, %c0_28] : memref<128x128xbf16, #tpu.memory_space<vmem>>, vector<128x128xbf16>
    %cst_29 = arith.constant dense<0.000000e+00> : vector<8x128xf32>
    %35 = tpu.matmul %33, %34, %cst_29 {dimension_numbers = #tpu.dot_dimension_numbers<[1], [0], [0], [1], [0, 0, 1, 1], [], []>} : vector<8x128xbf16>, vector<128x128xbf16>, vector<8x128xf32> -> vector<8x128xf32>
    %36 = arith.addf %32, %35 : vector<8x128xf32>
    %c0_30 = arith.constant 0 : index
    %c0_31 = arith.constant 0 : index
    %37 = vector.load %arg12[%c0_30, %c0_31] : memref<1x128xf32, #tpu.memory_space<vmem>>, vector<1x128xf32>
    %38 = vector.broadcast %37 : vector<1x128xf32> to vector<8x128xf32>
    %39 = arith.addf %36, %38 : vector<8x128xf32>
    %cst_32 = arith.constant 0.000000e+00 : f32
    %40 = vector.broadcast %cst_32 : f32 to vector<8x128xf32>
    %41 = arith.cmpf ogt, %39, %40 : vector<8x128xf32>
    %cst_33 = arith.constant 0.000000e+00 : f32
    %42 = vector.broadcast %cst_33 : f32 to vector<8x128xf32>
    %43 = arith.minimumf %39, %42 : vector<8x128xf32>
    %44 = math.exp %43 : vector<8x128xf32>
    %cst_34 = arith.constant 1.000000e+00 : f32
    %45 = vector.broadcast %cst_34 : f32 to vector<8x128xf32>
    %46 = arith.subf %44, %45 : vector<8x128xf32>
    %47 = arith.select %41, %39, %46 : vector<8x128xi1>, vector<8x128xf32>
    %48 = arith.truncf %47 : vector<8x128xf32> to vector<8x128xbf16>
    %c0_35 = arith.constant 0 : index
    %c0_36 = arith.constant 0 : index
    %49 = vector.load %arg13[%c0_35, %c0_36] : memref<128x384xbf16, #tpu.memory_space<vmem>>, vector<128x384xbf16>
    %cst_37 = arith.constant dense<0.000000e+00> : vector<8x384xf32>
    %50 = tpu.matmul %48, %49, %cst_37 {dimension_numbers = #tpu.dot_dimension_numbers<[1], [0], [0], [1], [0, 0, 1, 1], [], []>} : vector<8x128xbf16>, vector<128x384xbf16>, vector<8x384xf32> -> vector<8x384xf32>
    %c0_38 = arith.constant 0 : index
    %c0_39 = arith.constant 0 : index
    %51 = vector.load %arg14[%c0_38, %c0_39] : memref<1x384xf32, #tpu.memory_space<vmem>>, vector<1x384xf32>
    %52 = vector.broadcast %51 : vector<1x384xf32> to vector<8x384xf32>
    %53 = arith.addf %50, %52 : vector<8x384xf32>
    %c0_40 = arith.constant 0 : index
    %c0_41 = arith.constant 0 : index
    %54 = vector.load %arg15[%c0_40, %c0_41] : memref<128x384xbf16, #tpu.memory_space<vmem>>, vector<128x384xbf16>
    %c0_42 = arith.constant 0 : index
    %c0_43 = arith.constant 0 : index
    %55 = vector.load %arg16[%c0_42, %c0_43] : memref<1x384xf32, #tpu.memory_space<vmem>>, vector<1x384xf32>
    %c0_44 = arith.constant 0 : index
    %c0_45 = arith.constant 0 : index
    %56 = vector.load %arg21[%c0_44, %c0_45] : memref<2x128xf32, #tpu.memory_space<vmem>>, vector<2x128xf32>
    %57 = vector.extract_strided_slice %53 {offsets = [0, 0], sizes = [2, 384], strides = [1, 1]} : vector<8x384xf32> to vector<2x384xf32>
    %58 = arith.truncf %56 : vector<2x128xf32> to vector<2x128xbf16>
    %cst_46 = arith.constant dense<0.000000e+00> : vector<2x384xf32>
    %59 = tpu.matmul %58, %54, %cst_46 {dimension_numbers = #tpu.dot_dimension_numbers<[1], [0], [0], [1], [0, 0, 1, 1], [], []>} : vector<2x128xbf16>, vector<128x384xbf16>, vector<2x384xf32> -> vector<2x384xf32>
    %60 = vector.broadcast %55 : vector<1x384xf32> to vector<2x384xf32>
    %61 = arith.addf %59, %60 : vector<2x384xf32>
    %62 = vector.extract_strided_slice %57 {offsets = [0, 0], sizes = [2, 128], strides = [1, 1]} : vector<2x384xf32> to vector<2x128xf32>
    %63 = vector.extract_strided_slice %61 {offsets = [0, 0], sizes = [2, 128], strides = [1, 1]} : vector<2x384xf32> to vector<2x128xf32>
    %64 = arith.addf %62, %63 : vector<2x128xf32>
    %65 = arith.negf %64 : vector<2x128xf32>
    %66 = math.exp %65 : vector<2x128xf32>
    %cst_47 = arith.constant 1.000000e+00 : f32
    %67 = vector.broadcast %cst_47 : f32 to vector<2x128xf32>
    %68 = arith.addf %67, %66 : vector<2x128xf32>
    %69 = arith.divf %67, %68 : vector<2x128xf32>
    %70 = vector.extract_strided_slice %57 {offsets = [0, 128], sizes = [2, 128], strides = [1, 1]} : vector<2x384xf32> to vector<2x128xf32>
    %71 = vector.extract_strided_slice %61 {offsets = [0, 128], sizes = [2, 128], strides = [1, 1]} : vector<2x384xf32> to vector<2x128xf32>
    %72 = arith.addf %70, %71 : vector<2x128xf32>
    %73 = arith.negf %72 : vector<2x128xf32>
    %74 = math.exp %73 : vector<2x128xf32>
    %cst_48 = arith.constant 1.000000e+00 : f32
    %75 = vector.broadcast %cst_48 : f32 to vector<2x128xf32>
    %76 = arith.addf %75, %74 : vector<2x128xf32>
    %77 = arith.divf %75, %76 : vector<2x128xf32>
    %78 = vector.extract_strided_slice %57 {offsets = [0, 256], sizes = [2, 128], strides = [1, 1]} : vector<2x384xf32> to vector<2x128xf32>
    %79 = vector.extract_strided_slice %61 {offsets = [0, 256], sizes = [2, 128], strides = [1, 1]} : vector<2x384xf32> to vector<2x128xf32>
    %80 = arith.mulf %69, %79 : vector<2x128xf32>
    %81 = arith.addf %78, %80 : vector<2x128xf32>
    %82 = math.tanh %81 : vector<2x128xf32>
    %cst_49 = arith.constant 1.000000e+00 : f32
    %83 = vector.broadcast %cst_49 : f32 to vector<2x128xf32>
    %84 = arith.subf %83, %77 : vector<2x128xf32>
    %85 = arith.mulf %84, %82 : vector<2x128xf32>
    %86 = arith.mulf %77, %56 : vector<2x128xf32>
    %87 = arith.addf %85, %86 : vector<2x128xf32>
    %c0_50 = arith.constant 0 : index
    %c0_51 = arith.constant 0 : index
    %88 = vector.load %arg24[%c0_50, %c0_51] : memref<8x128xf32, #tpu.memory_space<vmem>>, vector<2x128xf32>
    tpu.vector_store %arg24[%c0_50, %c0_51], %87 {strides = array<i32>} : memref<8x128xf32, #tpu.memory_space<vmem>>, vector<2x128xf32>,
    %89 = vector.extract_strided_slice %53 {offsets = [2, 0], sizes = [2, 384], strides = [1, 1]} : vector<8x384xf32> to vector<2x384xf32>
    %90 = arith.truncf %87 : vector<2x128xf32> to vector<2x128xbf16>
    %cst_52 = arith.constant dense<0.000000e+00> : vector<2x384xf32>
    %91 = tpu.matmul %90, %54, %cst_52 {dimension_numbers = #tpu.dot_dimension_numbers<[1], [0], [0], [1], [0, 0, 1, 1], [], []>} : vector<2x128xbf16>, vector<128x384xbf16>, vector<2x384xf32> -> vector<2x384xf32>
    %92 = vector.broadcast %55 : vector<1x384xf32> to vector<2x384xf32>
    %93 = arith.addf %91, %92 : vector<2x384xf32>
    %94 = vector.extract_strided_slice %89 {offsets = [0, 0], sizes = [2, 128], strides = [1, 1]} : vector<2x384xf32> to vector<2x128xf32>
    %95 = vector.extract_strided_slice %93 {offsets = [0, 0], sizes = [2, 128], strides = [1, 1]} : vector<2x384xf32> to vector<2x128xf32>
    %96 = arith.addf %94, %95 : vector<2x128xf32>
    %97 = arith.negf %96 : vector<2x128xf32>
    %98 = math.exp %97 : vector<2x128xf32>
    %cst_53 = arith.constant 1.000000e+00 : f32
    %99 = vector.broadcast %cst_53 : f32 to vector<2x128xf32>
    %100 = arith.addf %99, %98 : vector<2x128xf32>
    %101 = arith.divf %99, %100 : vector<2x128xf32>
    %102 = vector.extract_strided_slice %89 {offsets = [0, 128], sizes = [2, 128], strides = [1, 1]} : vector<2x384xf32> to vector<2x128xf32>
    %103 = vector.extract_strided_slice %93 {offsets = [0, 128], sizes = [2, 128], strides = [1, 1]} : vector<2x384xf32> to vector<2x128xf32>
    %104 = arith.addf %102, %103 : vector<2x128xf32>
    %105 = arith.negf %104 : vector<2x128xf32>
    %106 = math.exp %105 : vector<2x128xf32>
    %cst_54 = arith.constant 1.000000e+00 : f32
    %107 = vector.broadcast %cst_54 : f32 to vector<2x128xf32>
    %108 = arith.addf %107, %106 : vector<2x128xf32>
    %109 = arith.divf %107, %108 : vector<2x128xf32>
    %110 = vector.extract_strided_slice %89 {offsets = [0, 256], sizes = [2, 128], strides = [1, 1]} : vector<2x384xf32> to vector<2x128xf32>
    %111 = vector.extract_strided_slice %93 {offsets = [0, 256], sizes = [2, 128], strides = [1, 1]} : vector<2x384xf32> to vector<2x128xf32>
    %112 = arith.mulf %101, %111 : vector<2x128xf32>
    %113 = arith.addf %110, %112 : vector<2x128xf32>
    %114 = math.tanh %113 : vector<2x128xf32>
    %cst_55 = arith.constant 1.000000e+00 : f32
    %115 = vector.broadcast %cst_55 : f32 to vector<2x128xf32>
    %116 = arith.subf %115, %109 : vector<2x128xf32>
    %117 = arith.mulf %116, %114 : vector<2x128xf32>
    %118 = arith.mulf %109, %87 : vector<2x128xf32>
    %119 = arith.addf %117, %118 : vector<2x128xf32>
    %c2 = arith.constant 2 : index
    %c0_56 = arith.constant 0 : index
    %120 = vector.load %arg24[%c2, %c0_56] : memref<8x128xf32, #tpu.memory_space<vmem>>, vector<2x128xf32>
    tpu.vector_store %arg24[%c2, %c0_56], %119 {strides = array<i32>} : memref<8x128xf32, #tpu.memory_space<vmem>>, vector<2x128xf32>,
    %121 = vector.extract_strided_slice %53 {offsets = [4, 0], sizes = [2, 384], strides = [1, 1]} : vector<8x384xf32> to vector<2x384xf32>
    %122 = arith.truncf %119 : vector<2x128xf32> to vector<2x128xbf16>
    %cst_57 = arith.constant dense<0.000000e+00> : vector<2x384xf32>
    %123 = tpu.matmul %122, %54, %cst_57 {dimension_numbers = #tpu.dot_dimension_numbers<[1], [0], [0], [1], [0, 0, 1, 1], [], []>} : vector<2x128xbf16>, vector<128x384xbf16>, vector<2x384xf32> -> vector<2x384xf32>
    %124 = vector.broadcast %55 : vector<1x384xf32> to vector<2x384xf32>
    %125 = arith.addf %123, %124 : vector<2x384xf32>
    %126 = vector.extract_strided_slice %121 {offsets = [0, 0], sizes = [2, 128], strides = [1, 1]} : vector<2x384xf32> to vector<2x128xf32>
    %127 = vector.extract_strided_slice %125 {offsets = [0, 0], sizes = [2, 128], strides = [1, 1]} : vector<2x384xf32> to vector<2x128xf32>
    %128 = arith.addf %126, %127 : vector<2x128xf32>
    %129 = arith.negf %128 : vector<2x128xf32>
    %130 = math.exp %129 : vector<2x128xf32>
    %cst_58 = arith.constant 1.000000e+00 : f32
    %131 = vector.broadcast %cst_58 : f32 to vector<2x128xf32>
    %132 = arith.addf %131, %130 : vector<2x128xf32>
    %133 = arith.divf %131, %132 : vector<2x128xf32>
    %134 = vector.extract_strided_slice %121 {offsets = [0, 128], sizes = [2, 128], strides = [1, 1]} : vector<2x384xf32> to vector<2x128xf32>
    %135 = vector.extract_strided_slice %125 {offsets = [0, 128], sizes = [2, 128], strides = [1, 1]} : vector<2x384xf32> to vector<2x128xf32>
    %136 = arith.addf %134, %135 : vector<2x128xf32>
    %137 = arith.negf %136 : vector<2x128xf32>
    %138 = math.exp %137 : vector<2x128xf32>
    %cst_59 = arith.constant 1.000000e+00 : f32
    %139 = vector.broadcast %cst_59 : f32 to vector<2x128xf32>
    %140 = arith.addf %139, %138 : vector<2x128xf32>
    %141 = arith.divf %139, %140 : vector<2x128xf32>
    %142 = vector.extract_strided_slice %121 {offsets = [0, 256], sizes = [2, 128], strides = [1, 1]} : vector<2x384xf32> to vector<2x128xf32>
    %143 = vector.extract_strided_slice %125 {offsets = [0, 256], sizes = [2, 128], strides = [1, 1]} : vector<2x384xf32> to vector<2x128xf32>
    %144 = arith.mulf %133, %143 : vector<2x128xf32>
    %145 = arith.addf %142, %144 : vector<2x128xf32>
    %146 = math.tanh %145 : vector<2x128xf32>
    %cst_60 = arith.constant 1.000000e+00 : f32
    %147 = vector.broadcast %cst_60 : f32 to vector<2x128xf32>
    %148 = arith.subf %147, %141 : vector<2x128xf32>
    %149 = arith.mulf %148, %146 : vector<2x128xf32>
    %150 = arith.mulf %141, %119 : vector<2x128xf32>
    %151 = arith.addf %149, %150 : vector<2x128xf32>
    %c4 = arith.constant 4 : index
    %c0_61 = arith.constant 0 : index
    %152 = vector.load %arg24[%c4, %c0_61] : memref<8x128xf32, #tpu.memory_space<vmem>>, vector<2x128xf32>
    tpu.vector_store %arg24[%c4, %c0_61], %151 {strides = array<i32>} : memref<8x128xf32, #tpu.memory_space<vmem>>, vector<2x128xf32>,
    %153 = vector.extract_strided_slice %53 {offsets = [6, 0], sizes = [2, 384], strides = [1, 1]} : vector<8x384xf32> to vector<2x384xf32>
    %154 = arith.truncf %151 : vector<2x128xf32> to vector<2x128xbf16>
    %cst_62 = arith.constant dense<0.000000e+00> : vector<2x384xf32>
    %155 = tpu.matmul %154, %54, %cst_62 {dimension_numbers = #tpu.dot_dimension_numbers<[1], [0], [0], [1], [0, 0, 1, 1], [], []>} : vector<2x128xbf16>, vector<128x384xbf16>, vector<2x384xf32> -> vector<2x384xf32>
    %156 = vector.broadcast %55 : vector<1x384xf32> to vector<2x384xf32>
    %157 = arith.addf %155, %156 : vector<2x384xf32>
    %158 = vector.extract_strided_slice %153 {offsets = [0, 0], sizes = [2, 128], strides = [1, 1]} : vector<2x384xf32> to vector<2x128xf32>
    %159 = vector.extract_strided_slice %157 {offsets = [0, 0], sizes = [2, 128], strides = [1, 1]} : vector<2x384xf32> to vector<2x128xf32>
    %160 = arith.addf %158, %159 : vector<2x128xf32>
    %161 = arith.negf %160 : vector<2x128xf32>
    %162 = math.exp %161 : vector<2x128xf32>
    %cst_63 = arith.constant 1.000000e+00 : f32
    %163 = vector.broadcast %cst_63 : f32 to vector<2x128xf32>
    %164 = arith.addf %163, %162 : vector<2x128xf32>
    %165 = arith.divf %163, %164 : vector<2x128xf32>
    %166 = vector.extract_strided_slice %153 {offsets = [0, 128], sizes = [2, 128], strides = [1, 1]} : vector<2x384xf32> to vector<2x128xf32>
    %167 = vector.extract_strided_slice %157 {offsets = [0, 128], sizes = [2, 128], strides = [1, 1]} : vector<2x384xf32> to vector<2x128xf32>
    %168 = arith.addf %166, %167 : vector<2x128xf32>
    %169 = arith.negf %168 : vector<2x128xf32>
    %170 = math.exp %169 : vector<2x128xf32>
    %cst_64 = arith.constant 1.000000e+00 : f32
    %171 = vector.broadcast %cst_64 : f32 to vector<2x128xf32>
    %172 = arith.addf %171, %170 : vector<2x128xf32>
    %173 = arith.divf %171, %172 : vector<2x128xf32>
    %174 = vector.extract_strided_slice %153 {offsets = [0, 256], sizes = [2, 128], strides = [1, 1]} : vector<2x384xf32> to vector<2x128xf32>
    %175 = vector.extract_strided_slice %157 {offsets = [0, 256], sizes = [2, 128], strides = [1, 1]} : vector<2x384xf32> to vector<2x128xf32>
    %176 = arith.mulf %165, %175 : vector<2x128xf32>
    %177 = arith.addf %174, %176 : vector<2x128xf32>
    %178 = math.tanh %177 : vector<2x128xf32>
    %cst_65 = arith.constant 1.000000e+00 : f32
    %179 = vector.broadcast %cst_65 : f32 to vector<2x128xf32>
    %180 = arith.subf %179, %173 : vector<2x128xf32>
    %181 = arith.mulf %180, %178 : vector<2x128xf32>
    %182 = arith.mulf %173, %151 : vector<2x128xf32>
    %183 = arith.addf %181, %182 : vector<2x128xf32>
    %c6 = arith.constant 6 : index
    %c0_66 = arith.constant 0 : index
    %184 = vector.load %arg24[%c6, %c0_66] : memref<8x128xf32, #tpu.memory_space<vmem>>, vector<2x128xf32>
    tpu.vector_store %arg24[%c6, %c0_66], %183 {strides = array<i32>} : memref<8x128xf32, #tpu.memory_space<vmem>>, vector<2x128xf32>,
    %c0_67 = arith.constant 0 : index
    %c0_68 = arith.constant 0 : index
    %185 = vector.load %arg23[%c0_67, %c0_68] : memref<2x128xf32, #tpu.memory_space<vmem>>, vector<2x128xf32>
    tpu.vector_store %arg23[%c0_67, %c0_68], %183 {strides = array<i32>} : memref<2x128xf32, #tpu.memory_space<vmem>>, vector<2x128xf32>,
    %c0_69 = arith.constant 0 : index
    %c0_70 = arith.constant 0 : index
    %186 = vector.load %arg24[%c0_69, %c0_70] : memref<8x128xf32, #tpu.memory_space<vmem>>, vector<8x128xf32>
    %187 = arith.truncf %186 : vector<8x128xf32> to vector<8x128xbf16>
    %c0_71 = arith.constant 0 : index
    %c0_72 = arith.constant 0 : index
    %188 = vector.load %arg17[%c0_71, %c0_72] : memref<128x64xbf16, #tpu.memory_space<vmem>>, vector<128x64xbf16>
    %cst_73 = arith.constant dense<0.000000e+00> : vector<8x64xf32>
    %189 = tpu.matmul %187, %188, %cst_73 {dimension_numbers = #tpu.dot_dimension_numbers<[1], [0], [0], [1], [0, 0, 1, 1], [], []>} : vector<8x128xbf16>, vector<128x64xbf16>, vector<8x64xf32> -> vector<8x64xf32>
    %c0_74 = arith.constant 0 : index
    %c0_75 = arith.constant 0 : index
    %190 = vector.load %arg18[%c0_74, %c0_75] : memref<1x64xf32, #tpu.memory_space<vmem>>, vector<1x64xf32>
    %191 = vector.broadcast %190 : vector<1x64xf32> to vector<8x64xf32>
    %192 = arith.addf %189, %191 : vector<8x64xf32>
    %cst_76 = arith.constant 0.000000e+00 : f32
    %193 = vector.broadcast %cst_76 : f32 to vector<8x64xf32>
    %194 = arith.cmpf ogt, %192, %193 : vector<8x64xf32>
    %cst_77 = arith.constant 0.000000e+00 : f32
    %195 = vector.broadcast %cst_77 : f32 to vector<8x64xf32>
    %196 = arith.minimumf %192, %195 : vector<8x64xf32>
    %197 = math.exp %196 : vector<8x64xf32>
    %cst_78 = arith.constant 1.000000e+00 : f32
    %198 = vector.broadcast %cst_78 : f32 to vector<8x64xf32>
    %199 = arith.subf %197, %198 : vector<8x64xf32>
    %200 = arith.select %194, %192, %199 : vector<8x64xi1>, vector<8x64xf32>
    %c0_79 = arith.constant 0 : index
    %c0_80 = arith.constant 0 : index
    %201 = vector.load %arg19[%c0_79, %c0_80] : memref<64x128xf32, #tpu.memory_space<vmem>>, vector<64x128xf32>
    %cst_81 = arith.constant dense<0.000000e+00> : vector<8x128xf32>
    %202 = tpu.matmul %200, %201, %cst_81 {dimension_numbers = #tpu.dot_dimension_numbers<[1], [0], [0], [1], [0, 0, 1, 1], [], []>} : vector<8x64xf32>, vector<64x128xf32>, vector<8x128xf32> -> vector<8x128xf32>
    %c0_82 = arith.constant 0 : index
    %c0_83 = arith.constant 0 : index
    %203 = vector.load %arg20[%c0_82, %c0_83] : memref<1x128xf32, #tpu.memory_space<vmem>>, vector<1x128xf32>
    %204 = vector.broadcast %203 : vector<1x128xf32> to vector<8x128xf32>
    %205 = arith.addf %202, %204 : vector<8x128xf32>
    %206 = vector.extract_strided_slice %205 {offsets = [0, 0], sizes = [8, 5], strides = [1, 1]} : vector<8x128xf32> to vector<8x5xf32>
    %207 = vector.extract_strided_slice %205 {offsets = [0, 5], sizes = [8, 1], strides = [1, 1]} : vector<8x128xf32> to vector<8x1xf32>
    %cst_84 = arith.constant dense<0xFF800000> : vector<8xf32>
    %208 = vector.multi_reduction <maximumf>, %206, %cst_84 [1] : vector<8x5xf32> to vector<8xf32>
    %209 = vector.shape_cast %208 : vector<8xf32> to vector<8x1xf32>
    %210 = vector.broadcast %209 : vector<8x1xf32> to vector<8x5xf32>
    %211 = arith.subf %206, %210 : vector<8x5xf32>
    %212 = math.exp %211 : vector<8x5xf32>
    %cst_85 = arith.constant dense<0.000000e+00> : vector<8xf32>
    %213 = vector.multi_reduction <add>, %212, %cst_85 [1] : vector<8x5xf32> to vector<8xf32>
    %214 = vector.shape_cast %213 : vector<8xf32> to vector<8x1xf32>
    %215 = math.log %214 : vector<8x1xf32>
    %216 = vector.broadcast %215 : vector<8x1xf32> to vector<8x5xf32>
    %217 = arith.subf %211, %216 : vector<8x5xf32>
    %218 = math.exp %217 : vector<8x5xf32>
    %219 = arith.mulf %218, %217 : vector<8x5xf32>
    %cst_86 = arith.constant dense<0.000000e+00> : vector<8xf32>
    %220 = vector.multi_reduction <add>, %219, %cst_86 [1] : vector<8x5xf32> to vector<8xf32>
    %221 = vector.shape_cast %220 : vector<8xf32> to vector<8x1xf32>
    %cst_87 = arith.constant 0.000000e+00 : f32
    %222 = vector.broadcast %cst_87 : f32 to vector<8x1xf32>
    %223 = arith.subf %222, %221 : vector<8x1xf32>
    %224 = tpu.iota {dimensions = array<i32: 1>} : vector<8x5xi32>
    %225 = vector.broadcast %209 : vector<8x1xf32> to vector<8x5xf32>
    %226 = arith.cmpf oeq, %206, %225 : vector<8x5xf32>
    %c5_i32 = arith.constant 5 : i32
    %227 = vector.broadcast %c5_i32 : i32 to vector<8x5xi32>
    %228 = arith.select %226, %224, %227 : vector<8x5xi1>, vector<8x5xi32>
    %cst_88 = arith.constant dense<2147483647> : vector<8xi32>
    %229 = vector.multi_reduction <minsi>, %228, %cst_88 [1] : vector<8x5xi32> to vector<8xi32>
    %230 = vector.shape_cast %229 : vector<8xi32> to vector<8x1xi32>
    %231 = vector.broadcast %230 : vector<8x1xi32> to vector<8x5xi32>
    %232 = arith.cmpi eq, %224, %231 : vector<8x5xi32>
    %233 = arith.extui %232 : vector<8x5xi1> to vector<8x5xi32>
    %234 = arith.sitofp %233 : vector<8x5xi32> to vector<8x5xf32>
    %235 = arith.mulf %217, %234 : vector<8x5xf32>
    %cst_89 = arith.constant dense<0.000000e+00> : vector<8xf32>
    %236 = vector.multi_reduction <add>, %235, %cst_89 [1] : vector<8x5xf32> to vector<8xf32>
    %237 = vector.shape_cast %236 : vector<8xf32> to vector<8x1xf32>
    %238 = tpu.iota {dimensions = array<i32: 1>} : vector<8x128xi32>
    %c5_i32_90 = arith.constant 5 : i32
    %239 = vector.broadcast %c5_i32_90 : i32 to vector<8x128xi32>
    %240 = arith.cmpi slt, %238, %239 : vector<8x128xi32>
    %c5_i32_91 = arith.constant 5 : i32
    %241 = vector.broadcast %c5_i32_91 : i32 to vector<8x128xi32>
    %242 = arith.cmpi eq, %238, %241 : vector<8x128xi32>
    %243 = arith.sitofp %230 : vector<8x1xi32> to vector<8x1xf32>
    %c6_i32 = arith.constant 6 : i32
    %244 = vector.broadcast %c6_i32 : i32 to vector<8x128xi32>
    %245 = arith.cmpi eq, %238, %244 : vector<8x128xi32>
    %c7_i32 = arith.constant 7 : i32
    %246 = vector.broadcast %c7_i32 : i32 to vector<8x128xi32>
    %247 = arith.cmpi eq, %238, %246 : vector<8x128xi32>
    %c8_i32 = arith.constant 8 : i32
    %248 = vector.broadcast %c8_i32 : i32 to vector<8x128xi32>
    %249 = arith.cmpi eq, %238, %248 : vector<8x128xi32>
    %cst_92 = arith.constant 0.000000e+00 : f32
    %250 = vector.shape_cast %207 : vector<8x1xf32> to vector<8x1xf32>
    %251 = vector.broadcast %250 : vector<8x1xf32> to vector<8x128xf32>
    %252 = vector.broadcast %cst_92 : f32 to vector<8x128xf32>
    %253 = arith.select %249, %251, %252 : vector<8x128xi1>, vector<8x128xf32>
    %254 = vector.shape_cast %223 : vector<8x1xf32> to vector<8x1xf32>
    %255 = vector.broadcast %254 : vector<8x1xf32> to vector<8x128xf32>
    %256 = arith.select %247, %255, %253 : vector<8x128xi1>, vector<8x128xf32>
    %257 = vector.shape_cast %237 : vector<8x1xf32> to vector<8x1xf32>
    %258 = vector.broadcast %257 : vector<8x1xf32> to vector<8x128xf32>
    %259 = arith.select %245, %258, %256 : vector<8x128xi1>, vector<8x128xf32>
    %260 = vector.shape_cast %243 : vector<8x1xf32> to vector<8x1xf32>
    %261 = vector.broadcast %260 : vector<8x1xf32> to vector<8x128xf32>
    %262 = arith.select %242, %261, %259 : vector<8x128xi1>, vector<8x128xf32>
    %263 = arith.select %240, %205, %262 : vector<8x128xi1>, vector<8x128xf32>
    %c0_93 = arith.constant 0 : index
    %c0_94 = arith.constant 0 : index
    %264 = vector.load %arg22[%c0_93, %c0_94] : memref<8x128xf32, #tpu.memory_space<vmem>>, vector<8x128xf32>
    tpu.vector_store %arg22[%c0_93, %c0_94], %263 {strides = array<i32>} : memref<8x128xf32, #tpu.memory_space<vmem>>, vector<8x128xf32>,
    return
  }
}

</mosaic_0001>

<bundles_post_ra>
// kernel: squeeze.9
= control target key start
LH: loop header
LB: loop body
LE: loop exit
PB: predicated region body
PF: predicated region fallthrough
CT: control target
= control target key end

     0   :  { %s40_s8 = smov 122   ;;  %vm8_vm0 = vcmask 15360   ;;  %s41_s9 = smov 124   ;;  %s58_s0 = inlined_call_operand.vmem [shape: f32[8], index: 0, kind: input, shape index: {}]   ;;  %s59_s1 = inlined_call_operand.vmem [shape: f32[4,2,1], index: 1, kind: output, shape index: {}]  }
   0x1   :  { %v5_v0 = vld [vmem:[%s58_s0] sm:$0x1]  ;;  %s39_s0 = smov 126  }
   0x2   :  { %6 = vst [vmem:[#allocation1] sm:$0x1] %v5_v0 }
   0x9   :  { %v10_v1 = vld [vmem:[#allocation1] sm:$0x1]  }
   0xa   :  { %v22_v2 = vld [vmem:[#allocation1] sm:$0x1]   ;;  %11 = vrot.lane.b32.xlu0 %v10_v1, %s39_s0 }
   0xb   :  { %23 = vrot.lane.b32.xlu1 %v22_v2, %s40_s8  ;;  %v7_v3 = vld [vmem:[#allocation1] sm:$0x1]  }
   0xc   :  { %v16_v4 = vld [vmem:[#allocation1] sm:$0x1]   ;;  %9 = vst.msk [vmem:[#allocation0] sm:$0x1] %vm8_vm0, %v7_v3  }
   0xe   :  { %17 = vrot.lane.b32.xlu0 %v16_v4, %s41_s9 }
  0x7c   :  { %v12_v5 = vpop.permute.xlu0 %11  }
  0x7d   :  { %v24_v6 = vpop.permute.xlu1 %23   ;;  %15 = vst.msk [vmem:[#allocation0 + $0x1] sm:$0x1] %vm8_vm0, %v12_v5  }
  0x7e   :  { %27 = vst.msk [vmem:[#allocation0 + $0x3] sm:$0x1] %vm8_vm0, %v24_v6  }
  0x80   :  { %v18_v7 = vpop.permute.xlu0 %17  }
  0x81   :  { %21 = vst.msk [vmem:[#allocation0 + $0x2] sm:$0x1] %vm8_vm0, %v18_v7  }
  0x88   :  { %v32_v8 = vld [vmem:[#allocation0] sm:$0xf] }
  0x89   :  { %35 = vst [vmem:[%s59_s1] sm:$0xf] %v32_v8 }

// kernel: squeeze.8
= control target key start
LH: loop header
LB: loop body
LE: loop exit
PB: predicated region body
PF: predicated region fallthrough
CT: control target
= control target key end

     0   :  { %s40_s8 = smov 122   ;;  %vm8_vm0 = vcmask 15360   ;;  %s41_s9 = smov 124   ;;  %s58_s0 = inlined_call_operand.vmem [shape: f32[8], index: 0, kind: input, shape index: {}]   ;;  %s59_s1 = inlined_call_operand.vmem [shape: f32[4,2], index: 1, kind: output, shape index: {}]  }
   0x1   :  { %v5_v0 = vld [vmem:[%s58_s0] sm:$0x1]  ;;  %s39_s0 = smov 126  }
   0x2   :  { %6 = vst [vmem:[#allocation1] sm:$0x1] %v5_v0 }
   0x9   :  { %v10_v1 = vld [vmem:[#allocation1] sm:$0x1]  }
   0xa   :  { %v22_v2 = vld [vmem:[#allocation1] sm:$0x1]   ;;  %11 = vrot.lane.b32.xlu0 %v10_v1, %s39_s0 }
   0xb   :  { %23 = vrot.lane.b32.xlu1 %v22_v2, %s40_s8  ;;  %v7_v3 = vld [vmem:[#allocation1] sm:$0x1]  }
   0xc   :  { %v16_v4 = vld [vmem:[#allocation1] sm:$0x1]   ;;  %9 = vst.msk [vmem:[#allocation0] sm:$0x1] %vm8_vm0, %v7_v3  }
   0xe   :  { %17 = vrot.lane.b32.xlu0 %v16_v4, %s41_s9 }
  0x7c   :  { %v12_v5 = vpop.permute.xlu0 %11  }
  0x7d   :  { %v24_v6 = vpop.permute.xlu1 %23   ;;  %15 = vst.msk [vmem:[#allocation0 + $0x1] sm:$0x1] %vm8_vm0, %v12_v5  }
  0x7e   :  { %27 = vst.msk [vmem:[#allocation0 + $0x3] sm:$0x1] %vm8_vm0, %v24_v6  }
  0x80   :  { %v18_v7 = vpop.permute.xlu0 %17  }
  0x81   :  { %21 = vst.msk [vmem:[#allocation0 + $0x2] sm:$0x1] %vm8_vm0, %v18_v7  }
  0x88   :  { %v32_v8 = vld [vmem:[#allocation0] sm:$0xf] }
  0x89   :  { %35 = vst [vmem:[%s59_s1] sm:$0xf] %v32_v8 }

// kernel: ppo_nets_map_forward.1
= control target key start
LH: loop header
LB: loop body
LE: loop exit
PB: predicated region body
PF: predicated region fallthrough
CT: control target
= control target key end

     0   :  { %s8151_s0 = inlined_call_operand.vmem [shape: f32[8,768], index: 0, kind: input, shape index: {}]   ;;  %s8152_s1 = inlined_call_operand.vmem [shape: f32[8,768], index: 1, kind: input, shape index: {}]   ;;  %s8153_s2 = inlined_call_operand.hbm [shape: bf16[768,512], index: 2, kind: input, shape index: {}]   ;;  %s8154_s3 = inlined_call_operand.vmem [shape: f32[1,512], index: 3, kind: input, shape index: {}]   ;;  %s8155_s4 = inlined_call_operand.hbm [shape: bf16[768,512], index: 4, kind: input, shape index: {}]   ;;  %s8156_s5 = inlined_call_operand.hbm [shape: f32[1,512], index: 5, kind: input, shape index: {}]   ;;  %s8157_s6 = inlined_call_operand.vmem [shape: bf16[512,128], index: 6, kind: input, shape index: {}]   ;;  %s8158_s7 = inlined_call_operand.hbm [shape: f32[1,128], index: 7, kind: input, shape index: {}]   ;;  %s8159_s8 = inlined_call_operand.vmem [shape: bf16[512,128], index: 8, kind: input, shape index: {}]   ;;  %s8160_s9 = inlined_call_operand.hbm [shape: f32[1,128], index: 9, kind: input, shape index: {}]   ;;  %s8161_s10 = inlined_call_operand.vmem [shape: bf16[128,128], index: 10, kind: input, shape index: {}]   ;;  %s8162_s11 = inlined_call_operand.hbm [shape: bf16[128,128], index: 11, kind: input, shape index: {}]   ;;  %s8163_s12 = inlined_call_operand.hbm [shape: f32[1,128], index: 12, kind: input, shape index: {}]   ;;  %s8164_s13 = inlined_call_operand.hbm [shape: bf16[128,384], index: 13, kind: input, shape index: {}]   ;;  %s8165_s14 = inlined_call_operand.hbm [shape: f32[1,384], index: 14, kind: input, shape index: {}]   ;;  %s8166_s15 = inlined_call_operand.hbm [shape: bf16[128,384], index: 15, kind: input, shape index: {}]   ;;  %s8167_s16 = inlined_call_operand.hbm [shape: f32[1,384], index: 16, kind: input, shape index: {}]   ;;  %s8168_s17 = inlined_call_operand.vmem [shape: bf16[128,64], index: 17, kind: input, shape index: {}]   ;;  %s8169_s18 = inlined_call_operand.hbm [shape: f32[1,64], index: 18, kind: input, shape index: {}]   ;;  %s8170_s19 = inlined_call_operand.hbm [shape: f32[64,128], index: 19, kind: input, shape index: {}]   ;;  %s8171_s20 = inlined_call_operand.hbm [shape: f32[1,128], index: 20, kind: input, shape index: {}]   ;;  %s8172_s21 = inlined_call_operand.vmem [shape: f32[2,128], index: 21, kind: input, shape index: {}]   ;;  %s8173_s22 = inlined_call_operand.vmem [shape: f32[8,128], index: 22, kind: output, shape index: {0}]   ;;  %s8174_s23 = inlined_call_operand.hbm [shape: f32[2,128], index: 23, kind: output, shape index: {1}]  }
   0x1   :  { %8180 = sst [smem:[#allocation36_spill]] %s8151_s0 }
   0x2   :  { %8181 = sst [smem:[#allocation37_spill]] %s8152_s1 }
   0x3   :  { %8182 = sst [smem:[#allocation38_spill]] %s8153_s2 }
   0x4   :  { %8183 = sst [smem:[#allocation39_spill]] %s8154_s3 }
   0x5   :  { %8184 = sst [smem:[#allocation40_spill]] %s8155_s4 }
   0x6   :  { %8185 = sst [smem:[#allocation41_spill]] %s8156_s5 }
   0x7   :  { %8186 = sst [smem:[#allocation42_spill]] %s8157_s6 }
   0x8   :  { %8187 = sst [smem:[#allocation43_spill]] %s8158_s7 }
   0x9   :  { %29 = vsyncpa [#allocation4], 0 }
   0xa   :  { %30 = vsyncpa [#allocation7], 0 }
   0xb   :  { %31 = vsyncpa [#allocation10], 0 }
   0xc   :  { %32 = vsyncpa [#allocation13], 0 }
   0xd   :  { %33 = vsyncpa [#allocation16], 0 }
   0xe   :  { %34 = vsyncpa [#allocation19], 0 }
   0xf   :  { %35 = vsyncpa [#allocation22], 0 }
  0x10   :  { %36 = vsyncpa [#allocation25], 0 }
  0x11   :  { %37 = vsyncpa [#allocation5], 0  ;;  %s7242_s4 = smov [#allocation6]   ;;  %s7243_s24 = smov [#allocation9]  }
  0x12   :  { %s61_s30 = sshll.u32 %s7242_s4, 4  ;;  %s86_s25 = sshll.u32 %s7243_s24, 4  ;;  %s62_s30 = int_to_ptr.vmem [resolvable:$true] %s61_s30  ;;  %s87_s25 = int_to_ptr.vmem [resolvable:$true] %s86_s25 }
  0x13   :  { %s6932_s5 = scalar_lea.vmem %s62_s30, 24576  ;;  %p6937_p1 = scmp.lt.s32.totalorder %s62_s30, %s62_s30 }
  0x14   :  { %p6933_p0 = scmp.ne.s32.totalorder %s62_s30, %s6932_s5  ;;  %p6938_p2 = scmp.lt.s32.totalorder %s6932_s5, %s6932_s5 }
  0x16   :  { %p6939_p3 = por %p6938_p2, %p6937_p1 }
  0x18   :  { %p6940_p4 = pnand %p6939_p3, %p6933_p0 }
  0x1a   :  { %6943 = shalt.err (!%p6940_p4)
}
  0x1b   :  { %s8179_s1 = smov 256   ;;  %s7245_s26 = smov 16  }
  0x1c   :  { %s8188_s27 = sld [smem:[#allocation40_spill]]  ;;  %s6952_s7 = scalar_lea.vmem %s87_s25, 16 }
  0x1d   :  { %p6953_p5 = scmp.ne.s32.totalorder %s87_s25, %s6952_s7  ;;  %s6956_s28 = scalar_lea.vmem %s87_s25, 32 }
  0x1e   :  { %p6957_p6 = scmp.lt.s32.totalorder %s87_s25, %s87_s25  ;;  %p6958_p7 = scmp.lt.s32.totalorder %s6956_s28, %s6952_s7 }
  0x20   :  { %p6959_p8 = por %p6958_p7, %p6957_p6 }
  0x22   :  { %67 = dma.hbm_to_vmem [thread:$0]  %s8188_s27, 24576, %s62_s30, [#allocation7], %s8179_s1, %s8179_s1, %s7245_s26  }
  0x23   :  { %p6960_p9 = pnand %p6959_p8, %p6953_p5 }
  0x25   :  { %6963 = shalt.err (!%p6960_p9)
}
  0x26   :  { %s8189_s0 = sld [smem:[#allocation43_spill]]  ;;  %s7246_s4 = smov [#allocation12]  }
  0x27   :  { %s109_s24 = sshll.u32 %s7246_s4, 4  ;;  %s110_s24 = int_to_ptr.vmem [resolvable:$true] %s109_s24 }
  0x28   :  { %s6972_s5 = scalar_lea.vmem %s110_s24, 1024  ;;  %p6977_p11 = scmp.lt.s32.totalorder %s110_s24, %s110_s24 }
  0x29   :  { %p6973_p10 = scmp.ne.s32.totalorder %s110_s24, %s6972_s5  ;;  %p6978_p12 = scmp.lt.s32.totalorder %s6972_s5, %s6972_s5 }
  0x2b   :  { %p6979_p13 = por %p6978_p12, %p6977_p11 }
  0x2c   :  { %89 = dma.hbm_to_vmem [thread:$0]  %s8189_s0, 16, %s87_s25, [#allocation10]  }
  0x2d   :  { %p6980_p0 = pnand %p6979_p13, %p6973_p10 }
  0x2f   :  { %6983 = shalt.err (!%p6980_p0)
}
  0x30   :  { %s7247_s30 = smov 64   ;;  %s7248_s2 = smov 4  }
  0x31   :  { %115 = dma.hbm_to_vmem [thread:$0]  %s8162_s11, 1024, %s110_s24, [#allocation13], %s7247_s30, %s7247_s30, %s7248_s2  }
  0x32   :  { %s7249_s7 = smov [#allocation15]  }
  0x33   :  { %s131_s28 = sshll.u32 %s7249_s7, 4  ;;  %s132_s28 = int_to_ptr.vmem [resolvable:$true] %s131_s28 }
  0x34   :  { %s6992_s25 = scalar_lea.vmem %s132_s28, 3072  ;;  %p6997_p2 = scmp.lt.s32.totalorder %s132_s28, %s132_s28 }
  0x35   :  { %p6993_p1 = scmp.ne.s32.totalorder %s132_s28, %s6992_s25  ;;  %p6998_p3 = scmp.lt.s32.totalorder %s6992_s25, %s6992_s25 }
  0x37   :  { %p6999_p4 = por %p6998_p3, %p6997_p2 }
  0x39   :  { %p7000_p5 = pnand %p6999_p4, %p6993_p1 }
  0x3b   :  { %7003 = shalt.err (!%p7000_p5)
}
  0x3c   :  { %s7250_s29 = smov 192   ;;  %s7251_s3 = smov 12  }
  0x3d   :  { %137 = dma.hbm_to_vmem [thread:$0]  %s8164_s13, 3072, %s132_s28, [#allocation16], %s7250_s29, %s7250_s29, %s7251_s3  }
  0x3e   :  { %s7252_s5 = smov [#allocation18]   ;;  %s7253_s6 = smov [#allocation21]  }
  0x3f   :  { %s153_s1 = sshll.u32 %s7252_s5, 4  ;;  %s178_s11 = sshll.u32 %s7253_s6, 4  ;;  %s154_s1 = int_to_ptr.vmem [resolvable:$true] %s153_s1  ;;  %s179_s11 = int_to_ptr.vmem [resolvable:$true] %s178_s11 }
  0x40   :  { %s7012_s24 = scalar_lea.vmem %s154_s1, 3072  ;;  %p7017_p7 = scmp.lt.s32.totalorder %s154_s1, %s154_s1 }
  0x41   :  { %p7013_p6 = scmp.ne.s32.totalorder %s154_s1, %s7012_s24  ;;  %p7018_p8 = scmp.lt.s32.totalorder %s7012_s24, %s7012_s24 }
  0x43   :  { %p7019_p9 = por %p7018_p8, %p7017_p7 }
  0x45   :  { %p7020_p10 = pnand %p7019_p9, %p7013_p6 }
  0x47   :  { %7023 = shalt.err (!%p7020_p10)
}
  0x48   :  { %159 = dma.hbm_to_vmem [thread:$0]  %s8166_s15, 3072, %s154_s1, [#allocation19], %s7250_s29, %s7250_s29, %s7251_s3  }
  0x49   :  { %s7032_s27 = scalar_lea.vmem %s179_s11, 16  ;;  %s7036_s13 = scalar_lea.vmem %s179_s11, 32 }
  0x4a   :  { %p7033_p11 = scmp.ne.s32.totalorder %s179_s11, %s7032_s27  ;;  %p7037_p12 = scmp.lt.s32.totalorder %s179_s11, %s179_s11 }
  0x4b   :  { %p7038_p13 = scmp.lt.s32.totalorder %s7036_s13, %s7032_s27 }
  0x4d   :  { %p7039_p0 = por %p7038_p13, %p7037_p12 }
  0x4f   :  { %p7040_p1 = pnand %p7039_p0, %p7033_p11 }
  0x51   :  { %7043 = shalt.err (!%p7040_p1)
}
  0x52   :  { %181 = dma.hbm_to_vmem [thread:$0]  %s8169_s18, 16, %s179_s11, [#allocation22]  }
  0x53   :  { %s7254_s25 = smov [#allocation3]   ;;  %s7255_s4 = smov [#allocation8]  }
  0x54   :  { %s47_s0 = sshll.u32 %s7254_s25, 4  ;;  %s74_s5 = sshll.u32 %s7255_s4, 4  ;;  %s48_s0 = int_to_ptr.vmem [resolvable:$true] %s47_s0  ;;  %s75_s5 = int_to_ptr.vmem [resolvable:$true] %s74_s5 }
  0x55   :  { %s7052_s6 = scalar_lea.vmem %s48_s0, 24576  ;;  %p7057_p3 = scmp.lt.s32.totalorder %s48_s0, %s48_s0 }
  0x56   :  { %p7053_p2 = scmp.ne.s32.totalorder %s48_s0, %s7052_s6  ;;  %p7058_p4 = scmp.lt.s32.totalorder %s7052_s6, %s7052_s6 }
  0x58   :  { %p7059_p5 = por %p7058_p4, %p7057_p3 }
  0x5a   :  { %p7060_p6 = pnand %p7059_p5, %p7053_p2 }
  0x5c   :  { %7063 = shalt.err (!%p7060_p6)
}
  0x5d   :  { %s8190_s15 = smov 256   ;;  %s8191_s3 = sld [smem:[#allocation38_spill]] }
  0x5e   :  { %s7072_s18 = scalar_lea.vmem %s75_s5, 64  ;;  %p7077_p8 = scmp.lt.s32.totalorder %s75_s5, %s75_s5 }
  0x5f   :  { %p7073_p7 = scmp.ne.s32.totalorder %s75_s5, %s7072_s18  ;;  %p7078_p9 = scmp.lt.s32.totalorder %s7072_s18, %s7072_s18 }
  0x61   :  { %p7079_p10 = por %p7078_p9, %p7077_p8 }
  0x63   :  { %53 = dma.hbm_to_vmem [thread:$0]  %s8191_s3, 24576, %s48_s0, [#allocation4], %s8190_s15, %s8190_s15, %s7245_s26  }
  0x64   :  { %p7080_p11 = pnand %p7079_p10, %p7073_p7 }
  0x66   :  { %7083 = shalt.err (!%p7080_p11)
}
  0x67   :  { %s8192_s30 = sld [smem:[#allocation41_spill]]  ;;  %s7256_s2 = smov [#allocation11]  }
  0x68   :  { %s98_s27 = sshll.u32 %s7256_s2, 4  ;;  %s7257_s13 = smov [#allocation14]   ;;  %s99_s27 = int_to_ptr.vmem [resolvable:$true] %s98_s27 }
  0x69   :  { %s122_s7 = sshll.u32 %s7257_s13, 4  ;;  %s7092_s28 = scalar_lea.vmem %s99_s27, 16  ;;  %s123_s7 = int_to_ptr.vmem [resolvable:$true] %s122_s7 }
  0x6a   :  { %p7093_p12 = scmp.ne.s32.totalorder %s99_s27, %s7092_s28  ;;  %s7096_s26 = scalar_lea.vmem %s99_s27, 32 }
  0x6b   :  { %p7097_p13 = scmp.lt.s32.totalorder %s99_s27, %s99_s27  ;;  %p7098_p0 = scmp.lt.s32.totalorder %s7096_s26, %s7092_s28 }
  0x6d   :  { %77 = dma.hbm_to_vmem [thread:$0]  %s8192_s30, 64, %s75_s5, [#allocation7]  }
  0x6e   :  { %p7099_p1 = por %p7098_p0, %p7097_p13 }
  0x70   :  { %p7100_p2 = pnand %p7099_p1, %p7093_p12 }
  0x72   :  { %7103 = shalt.err (!%p7100_p2)
}
  0x73   :  { %101 = dma.hbm_to_vmem [thread:$0]  %s8160_s9, 16, %s99_s27, [#allocation10]  }
  0x74   :  { %s7112_s4 = scalar_lea.vmem %s123_s7, 16  ;;  %s7116_s5 = scalar_lea.vmem %s123_s7, 32 }
  0x75   :  { %p7113_p3 = scmp.ne.s32.totalorder %s123_s7, %s7112_s4  ;;  %p7117_p4 = scmp.lt.s32.totalorder %s123_s7, %s123_s7 }
  0x76   :  { %p7118_p5 = scmp.lt.s32.totalorder %s7116_s5, %s7112_s4 }
  0x78   :  { %p7119_p6 = por %p7118_p5, %p7117_p4 }
  0x7a   :  { %p7120_p7 = pnand %p7119_p6, %p7113_p3 }
  0x7c   :  { %7123 = shalt.err (!%p7120_p7)
}
  0x7d   :  { %125 = dma.hbm_to_vmem [thread:$0]  %s8163_s12, 16, %s123_s7, [#allocation13]  }
  0x7e   :  { %s7258_s1 = smov [#allocation17]   ;;  %s7259_s3 = smov [#allocation20]  }
  0x7f   :  { %s144_s29 = sshll.u32 %s7258_s1, 4  ;;  %s166_s18 = sshll.u32 %s7259_s3, 4  ;;  %s145_s29 = int_to_ptr.vmem [resolvable:$true] %s144_s29  ;;  %s167_s18 = int_to_ptr.vmem [resolvable:$true] %s166_s18 }
  0x80   :  { %s7132_s11 = scalar_lea.vmem %s145_s29, 48  ;;  %s7136_s9 = scalar_lea.vmem %s145_s29, 64 }
  0x81   :  { %p7133_p8 = scmp.ne.s32.totalorder %s145_s29, %s7132_s11  ;;  %p7137_p9 = scmp.lt.s32.totalorder %s145_s29, %s145_s29 }
  0x82   :  { %p7138_p10 = scmp.lt.s32.totalorder %s7136_s9, %s7132_s11 }
  0x84   :  { %p7139_p11 = por %p7138_p10, %p7137_p9 }
  0x86   :  { %p7140_p12 = pnand %p7139_p11, %p7133_p8 }
  0x88   :  { %7143 = shalt.err (!%p7140_p12)
}
  0x89   :  { %147 = dma.hbm_to_vmem [thread:$0]  %s8165_s14, 48, %s145_s29, [#allocation16]  }
  0x8a   :  { %s7152_s2 = scalar_lea.vmem %s167_s18, 48  ;;  %s7156_s12 = scalar_lea.vmem %s167_s18, 64 }
  0x8b   :  { %p7153_p13 = scmp.ne.s32.totalorder %s167_s18, %s7152_s2  ;;  %p7157_p0 = scmp.lt.s32.totalorder %s167_s18, %s167_s18 }
  0x8c   :  { %p7158_p1 = scmp.lt.s32.totalorder %s7156_s12, %s7152_s2 }
  0x8e   :  { %p7159_p2 = por %p7158_p1, %p7157_p0 }
  0x90   :  { %p7160_p3 = pnand %p7159_p2, %p7153_p13 }
  0x92   :  { %7163 = shalt.err (!%p7160_p3)
}
  0x93   :  { %169 = dma.hbm_to_vmem [thread:$0]  %s8167_s16, 48, %s167_s18, [#allocation19]  }
  0x94   :  { %s7260_s7 = smov [#allocation23]  }
  0x95   :  { %s187_s28 = sshll.u32 %s7260_s7, 4  ;;  %s188_s28 = int_to_ptr.vmem [resolvable:$true] %s187_s28 }
  0x96   :  { %s7172_s26 = scalar_lea.vmem %s188_s28, 1024  ;;  %p7177_p5 = scmp.lt.s32.totalorder %s188_s28, %s188_s28 }
  0x97   :  { %p7173_p4 = scmp.ne.s32.totalorder %s188_s28, %s7172_s26  ;;  %p7178_p6 = scmp.lt.s32.totalorder %s7172_s26, %s7172_s26 }
  0x99   :  { %p7179_p7 = por %p7178_p6, %p7177_p5 }
  0x9b   :  { %p7180_p8 = pnand %p7179_p7, %p7173_p4 }
  0x9d   :  { %7183 = shalt.err (!%p7180_p8)
}
  0x9e   :  { %s7261_s14 = smov 128   ;;  %s7262_s25 = smov 8  }
  0x9f   :  { %193 = dma.hbm_to_vmem [thread:$0]  %s8170_s19, 1024, %s188_s28, [#allocation22], %s7261_s14, %s7261_s14, %s7262_s25  }
  0xa0   :  { %s7263_s5 = smov [#allocation24]  }
  0xa1   :  { %s200_s6 = sshll.u32 %s7263_s5, 4  ;;  %s201_s6 = int_to_ptr.vmem [resolvable:$true] %s200_s6 }
  0xa2   :  { %s7192_s16 = scalar_lea.vmem %s201_s6, 16  ;;  %s7196_s15 = scalar_lea.vmem %s201_s6, 32 }
  0xa3   :  { %p7193_p9 = scmp.ne.s32.totalorder %s201_s6, %s7192_s16  ;;  %p7197_p10 = scmp.lt.s32.totalorder %s201_s6, %s201_s6 }
  0xa4   :  { %p7198_p11 = scmp.lt.s32.totalorder %s7196_s15, %s7192_s16 }
  0xa6   :  { %p7199_p12 = por %p7198_p11, %p7197_p10 }
  0xa8   :  { %p7200_p13 = pnand %p7199_p12, %p7193_p9 }
  0xaa   :  { %7203 = shalt.err (!%p7200_p13)
}
  0xab   :  { %203 = dma.hbm_to_vmem [thread:$0]  %s8171_s20, 16, %s201_s6, [#allocation25]  }
  0xac   :  { %7224 = dma.done.wait [#allocation4], 24576  }
  0xad   :  { %7225 = vsyncadd [#allocation4], 4294942720 }
  0xae   :  { %7226 = dma.done.wait [#allocation7], 24640  }
  0xaf   :  { %7227 = vsyncadd [#allocation7], 4294942656 }
  0xb0   :  { %7228 = dma.done.wait [#allocation10], 32  }
  0xb1   :  { %7229 = vsyncadd [#allocation10], 4294967264 }
  0xb2   :  { %7230 = dma.done.wait [#allocation13], 1040  }
  0xb3   :  { %7231 = vsyncadd [#allocation13], 4294966256 }
  0xb4   :  { %7232 = dma.done.wait [#allocation16], 3120  }
  0xb5   :  { %7233 = vsyncadd [#allocation16], 4294964176 }
  0xb6   :  { %7234 = dma.done.wait [#allocation19], 3120  }
  0xb7   :  { %7235 = vsyncadd [#allocation19], 4294964176 }
  0xb8   :  { %7236 = dma.done.wait [#allocation22], 1040  }
  0xb9   :  { %7237 = vsyncadd [#allocation22], 4294966256 }
  0xba   :  { %7238 = dma.done.wait [#allocation25], 16  }
  0xbb   :  { %7239 = vsyncadd [#allocation25], 4294967280  ;;  %v6145_v0 = vld [vmem:[#allocation3 + $0xe4] ss:$16 sps:$4 sm:$0xff]   ;;  %v6149_v2 = vld [vmem:[#allocation3 + $0xe0] ss:$16 sps:$4 sm:$0xff]  }
  0xbc   :  { %v6147_v1 = vld [vmem:[#allocation3 + $0x2e4] ss:$16 sps:$4 sm:$0xff]   ;;  %1435 = vmatprep.subr.bf16.mxu0 %v6145_v0  ;;  %v6150_v3 = vld [vmem:[#allocation3 + $0x2e0] ss:$16 sps:$4 sm:$0xff]   ;;  %s8193_s3 = sld [smem:[#allocation36_spill]]  ;;  %vm7265_vm0 = vmmov 0  }
  0xbd   :  { %1476 = vmatprep.subr.bf16.mxu1 %v6147_v1  ;;  %v6151_v4 = vld [vmem:[#allocation3 + $0xc4] ss:$16 sps:$4 sm:$0xff]   ;;  %1436 = vmatpush1.bf16.msra.mxu0 %v6149_v2  ;;  %v6155_v6 = vld [vmem:[#allocation3 + $0xc0] ss:$16 sps:$4 sm:$0xff]   ;;  %s8194_s14 = sld [smem:[#allocation37_spill]]  ;;  %vm5069_vm2 = vcmask 523264  }
  0xbe   :  { %1477 = vmatpush1.bf16.msra.mxu1 %v6150_v3  ;;  %v6153_v5 = vld [vmem:[#allocation3 + $0x2c4] ss:$16 sps:$4 sm:$0xff]   ;;  %1437 = vmatprep.subr.bf16.mxu0 %v6151_v4  ;;  %v6156_v7 = vld [vmem:[#allocation3 + $0x2c0] ss:$16 sps:$4 sm:$0xff]   ;;  %s8195_s6 = sld [smem:[#allocation39_spill]]  ;;  %vm5143_vm4 = vcmask 39936  }
  0xbf   :  { %1478 = vmatprep.subr.bf16.mxu1 %v6153_v5  ;;  %v6157_v8 = vld [vmem:[#allocation3 + $0xa4] ss:$16 sps:$4 sm:$0xff]   ;;  %v6161_v10 = vld [vmem:[#allocation3 + $0xa0] ss:$16 sps:$4 sm:$0xff]   ;;  %s8196_s24 = sld [smem:[#allocation42_spill]] }
  0xc0   :  { %v6159_v9 = vld [vmem:[#allocation3 + $0x2a4] ss:$16 sps:$4 sm:$0xff]   ;;  %v6162_v11 = vld [vmem:[#allocation3 + $0x2a0] ss:$16 sps:$4 sm:$0xff]  }
  0xc1   :  { %1438 = vmatpush1.bf16.msra.mxu0 %v6155_v6  ;;  %v6163_v12 = vld [vmem:[#allocation3 + $0x84] ss:$16 sps:$4 sm:$0xff]   ;;  %v6167_v14 = vld [vmem:[#allocation3 + $0x80] ss:$16 sps:$4 sm:$0xff]  }
  0xc2   :  { %1479 = vmatpush1.bf16.msra.mxu1 %v6156_v7  ;;  %1439 = vmatprep.subr.bf16.mxu0 %v6157_v8  ;;  %v6165_v13 = vld [vmem:[#allocation3 + $0x284] ss:$16 sps:$4 sm:$0xff]   ;;  %v6168_v15 = vld [vmem:[#allocation3 + $0x280] ss:$16 sps:$4 sm:$0xff]   ;;  %v249_v4 = vld [vmem:[%s8193_s3] sm:$0xff] }
  0xc3   :  { %1480 = vmatprep.subr.bf16.mxu1 %v6159_v9  ;;  %v6169_v16 = vld [vmem:[#allocation3 + $0x64] ss:$16 sps:$4 sm:$0xff]   ;;  %v6173_v18 = vld [vmem:[#allocation3 + $0x60] ss:$16 sps:$4 sm:$0xff]   ;;  %v251_v5 = vld [vmem:[%s8193_s3 + $0x10] sm:$0xff]  ;;  %v7455_v8 = vpack.c.bf16 %v249_v4, %v249_v4 }
  0xc4   :  { %v6171_v17 = vld [vmem:[#allocation3 + $0x264] ss:$16 sps:$4 sm:$0xff]   ;;  %v6174_v19 = vld [vmem:[#allocation3 + $0x260] ss:$16 sps:$4 sm:$0xff]   ;;  %v6246_v7 = vld [vmem:[#allocation3 + $0xec] ss:$16 sps:$4 sm:$0xff]   ;;  %v7457_v9 = vpack.c.bf16 %v251_v5, %v251_v5 }
  0xc5   :  { %1440 = vmatpush1.bf16.msra.mxu0 %v6161_v10  ;;  %v6175_v20 = vld [vmem:[#allocation3 + $0x44] ss:$16 sps:$4 sm:$0xff]   ;;  %v6179_v22 = vld [vmem:[#allocation3 + $0x40] ss:$16 sps:$4 sm:$0xff]   ;;  %v6330_v4 = vld [vmem:[#allocation3 + $0x12c] ss:$16 sps:$4 sm:$0xff]  }
  0xc6   :  { %1481 = vmatpush1.bf16.msra.mxu1 %v6162_v11  ;;  %1441 = vmatprep.subr.bf16.mxu0 %v6163_v12  ;;  %v6177_v21 = vld [vmem:[#allocation3 + $0x244] ss:$16 sps:$4 sm:$0xff]   ;;  %v6180_v23 = vld [vmem:[#allocation3 + $0x240] ss:$16 sps:$4 sm:$0xff]   ;;  %v6244_v11 = vld [vmem:[#allocation3 + $0xe8] ss:$16 sps:$4 sm:$0xff]  }
  0xc7   :  { %1482 = vmatprep.subr.bf16.mxu1 %v6165_v13  ;;  %v6181_v24 = vld [vmem:[#allocation3 + $0x24] ss:$16 sps:$4 sm:$0xff]   ;;  %v6185_v26 = vld [vmem:[#allocation3 + $0x20] ss:$16 sps:$4 sm:$0xff]   ;;  %v6252_v13 = vld [vmem:[#allocation3 + $0xcc] ss:$16 sps:$4 sm:$0xff]  }
  0xc8   :  { %v6183_v25 = vld [vmem:[#allocation3 + $0x224] ss:$16 sps:$4 sm:$0xff]   ;;  %v6186_v27 = vld [vmem:[#allocation3 + $0x220] ss:$16 sps:$4 sm:$0xff]  }
  0xc9   :  { %1442 = vmatpush1.bf16.msra.mxu0 %v6167_v14  ;;  %v6187_v28 = vld [vmem:[#allocation3 + $0x4] ss:$16 sps:$4 sm:$0xff]   ;;  %v6191_v30 = vld [vmem:[#allocation3] ss:$16 sps:$4 sm:$0xff]  }
  0xca   :  { %1483 = vmatpush1.bf16.msra.mxu1 %v6168_v15  ;;  %1443 = vmatprep.subr.bf16.mxu0 %v6169_v16  ;;  %v6189_v29 = vld [vmem:[#allocation3 + $0x204] ss:$16 sps:$4 sm:$0xff]   ;;  %v6192_v31 = vld [vmem:[#allocation3 + $0x200] ss:$16 sps:$4 sm:$0xff]   ;;  %v6250_v15 = vld [vmem:[#allocation3 + $0xc8] ss:$16 sps:$4 sm:$0xff]  }
  0xcb   :  { %1484 = vmatprep.subr.bf16.mxu1 %v6171_v17  ;;  %v6193_v32 = vld [vmem:[#allocation3 + $0x1e4] ss:$16 sps:$4 sm:$0xff]   ;;  %v6197_v34 = vld [vmem:[#allocation3 + $0x1e0] ss:$16 sps:$4 sm:$0xff]   ;;  %v6258_v17 = vld [vmem:[#allocation3 + $0xac] ss:$16 sps:$4 sm:$0xff]  }
  0xcc   :  { %v6195_v33 = vld [vmem:[#allocation3 + $0x3e4] ss:$16 sps:$4 sm:$0xff]   ;;  %v6198_v35 = vld [vmem:[#allocation3 + $0x3e0] ss:$16 sps:$4 sm:$0xff]  }
  0xcd   :  { %1444 = vmatpush1.bf16.msra.mxu0 %v6173_v18  ;;  %v6199_v36 = vld [vmem:[#allocation3 + $0x1c4] ss:$16 sps:$4 sm:$0xff]   ;;  %v6203_v38 = vld [vmem:[#allocation3 + $0x1c0] ss:$16 sps:$4 sm:$0xff]  }
  0xce   :  { %1485 = vmatpush1.bf16.msra.mxu1 %v6174_v19  ;;  %1445 = vmatprep.subr.bf16.mxu0 %v6175_v20  ;;  %v6201_v37 = vld [vmem:[#allocation3 + $0x3c4] ss:$16 sps:$4 sm:$0xff]   ;;  %v6204_v39 = vld [vmem:[#allocation3 + $0x3c0] ss:$16 sps:$4 sm:$0xff]   ;;  %v6256_v19 = vld [vmem:[#allocation3 + $0xa8] ss:$16 sps:$4 sm:$0xff]  }
  0xcf   :  { %1486 = vmatprep.subr.bf16.mxu1 %v6177_v21  ;;  %v6205_v40 = vld [vmem:[#allocation3 + $0x1a4] ss:$16 sps:$4 sm:$0xff]   ;;  %v6209_v42 = vld [vmem:[#allocation3 + $0x1a0] ss:$16 sps:$4 sm:$0xff]   ;;  %v6264_v21 = vld [vmem:[#allocation3 + $0x8c] ss:$16 sps:$4 sm:$0xff]  }
  0xd0   :  { %v6207_v41 = vld [vmem:[#allocation3 + $0x3a4] ss:$16 sps:$4 sm:$0xff]   ;;  %v6210_v43 = vld [vmem:[#allocation3 + $0x3a0] ss:$16 sps:$4 sm:$0xff]  }
  0xd1   :  { %1446 = vmatpush1.bf16.msra.mxu0 %v6179_v22  ;;  %v6211_v44 = vld [vmem:[#allocation3 + $0x184] ss:$16 sps:$4 sm:$0xff]   ;;  %v6215_v47 = vld [vmem:[#allocation3 + $0x180] ss:$16 sps:$4 sm:$0xff]  }
  0xd2   :  { %1487 = vmatpush1.bf16.msra.mxu1 %v6180_v23  ;;  %1447 = vmatprep.subr.bf16.mxu0 %v6181_v24  ;;  %v6213_v45 = vld [vmem:[#allocation3 + $0x384] ss:$16 sps:$4 sm:$0xff]   ;;  %v6216_v48 = vld [vmem:[#allocation3 + $0x380] ss:$16 sps:$4 sm:$0xff]   ;;  %v6262_v23 = vld [vmem:[#allocation3 + $0x88] ss:$16 sps:$4 sm:$0xff]  }
  0xd3   :  { %1488 = vmatprep.subr.bf16.mxu1 %v6183_v25  ;;  %v250_v46 = vld [vmem:[%s8193_s3 + $0x8] sm:$0xff]  ;;  %v252_v50 = vld [vmem:[%s8193_s3 + $0x18] sm:$0xff]  ;;  %v6270_v25 = vld [vmem:[#allocation3 + $0x6c] ss:$16 sps:$4 sm:$0xff]  }
  0xd4   :  { %v7440_v49 = vpack.c.bf16 %v250_v46, %v250_v46  ;;  %v6217_v51 = vld [vmem:[#allocation3 + $0x164] ss:$16 sps:$4 sm:$0xff]   ;;  %v7445_v52 = vpack.c.bf16 %v252_v50, %v252_v50  ;;  %v6221_v54 = vld [vmem:[#allocation3 + $0x160] ss:$16 sps:$4 sm:$0xff]  }
  0xd5   :  { %1448 = vmatpush1.bf16.msra.mxu0 %v6185_v26  ;;  %v6219_v53 = vld [vmem:[#allocation3 + $0x364] ss:$16 sps:$4 sm:$0xff]   ;;  %v6222_v55 = vld [vmem:[#allocation3 + $0x360] ss:$16 sps:$4 sm:$0xff]  }
  0xd6   :  { %1489 = vmatpush1.bf16.msra.mxu1 %v6186_v27  ;;  %1449 = vmatprep.subr.bf16.mxu0 %v6187_v28  ;;  %v6223_v56 = vld [vmem:[#allocation3 + $0x144] ss:$16 sps:$4 sm:$0xff]   ;;  %v6227_v58 = vld [vmem:[#allocation3 + $0x140] ss:$16 sps:$4 sm:$0xff]   ;;  %v6268_v27 = vld [vmem:[#allocation3 + $0x68] ss:$16 sps:$4 sm:$0xff]  }
  0xd7   :  { %1490 = vmatprep.subr.bf16.mxu1 %v6189_v29  ;;  %1467 = vmatprep.mubr.bf16.mxu0 %v7440_v49  ;;  %v6225_v57 = vld [vmem:[#allocation3 + $0x344] ss:$16 sps:$4 sm:$0xff]   ;;  %v6228_v59 = vld [vmem:[#allocation3 + $0x340] ss:$16 sps:$4 sm:$0xff]   ;;  %v6276_v29 = vld [vmem:[#allocation3 + $0x4c] ss:$16 sps:$4 sm:$0xff]  }
  0xd8   :  { %1508 = vmatprep.mubr.bf16.mxu1 %v7445_v52  ;;  %v6229_v60 = vld [vmem:[#allocation3 + $0x124] ss:$16 sps:$4 sm:$0xff]   ;;  %v6233_v62 = vld [vmem:[#allocation3 + $0x120] ss:$16 sps:$4 sm:$0xff]  }
  0xd9   :  { %1450 = vmatpush1.bf16.msra.mxu0 %v6191_v30  ;;  %v6231_v61 = vld [vmem:[#allocation3 + $0x324] ss:$16 sps:$4 sm:$0xff]   ;;  %v6234_v63 = vld [vmem:[#allocation3 + $0x320] ss:$16 sps:$4 sm:$0xff]  }
  0xda   :  { %1491 = vmatpush1.bf16.msra.mxu1 %v6192_v31  ;;  %1451 = vmatprep.subr.bf16.mxu0 %v6193_v32  ;;  %v6235_v0 = vld [vmem:[#allocation3 + $0x104] ss:$16 sps:$4 sm:$0xff]   ;;  %v6239_v2 = vld [vmem:[#allocation3 + $0x100] ss:$16 sps:$4 sm:$0xff]   ;;  %v6274_v31 = vld [vmem:[#allocation3 + $0x48] ss:$16 sps:$4 sm:$0xff]  }
  0xdb   :  { %1492 = vmatprep.subr.bf16.mxu1 %v6195_v33  ;;  %v6237_v1 = vld [vmem:[#allocation3 + $0x304] ss:$16 sps:$4 sm:$0xff]   ;;  %v6240_v3 = vld [vmem:[#allocation3 + $0x300] ss:$16 sps:$4 sm:$0xff]   ;;  %v6282_v33 = vld [vmem:[#allocation3 + $0x2c] ss:$16 sps:$4 sm:$0xff]  }
  0xdc   :  { %v6243_v6 = vld [vmem:[#allocation3 + $0x4e4] ss:$16 sps:$4 sm:$0xff]   ;;  %v6241_v10 = vld [vmem:[#allocation3 + $0x4e0] ss:$16 sps:$4 sm:$0xff]  }
  0xdd   :  { %1452 = vmatpush2.bf16.msra.mxu0 %v6197_v34  ;;  %v6249_v12 = vld [vmem:[#allocation3 + $0x4c4] ss:$16 sps:$4 sm:$0xff]   ;;  %v6247_v14 = vld [vmem:[#allocation3 + $0x4c0] ss:$16 sps:$4 sm:$0xff]  }
  0xde   :  { %1493 = vmatpush2.bf16.msra.mxu1 %v6198_v35  ;;  %1453 = vmatprep.subr.bf16.mxu0 %v6199_v36  ;;  %v6255_v16 = vld [vmem:[#allocation3 + $0x4a4] ss:$16 sps:$4 sm:$0xff]   ;;  %v6253_v18 = vld [vmem:[#allocation3 + $0x4a0] ss:$16 sps:$4 sm:$0xff]  }
  0xdf   :  { %1494 = vmatprep.subr.bf16.mxu1 %v6201_v37  ;;  %v6261_v20 = vld [vmem:[#allocation3 + $0x484] ss:$16 sps:$4 sm:$0xff]   ;;  %v6259_v22 = vld [vmem:[#allocation3 + $0x480] ss:$16 sps:$4 sm:$0xff]   ;;  %v6280_v37 = vld [vmem:[#allocation3 + $0x28] ss:$16 sps:$4 sm:$0xff]  }
  0xe0   :  { %v6267_v24 = vld [vmem:[#allocation3 + $0x464] ss:$16 sps:$4 sm:$0xff]   ;;  %v6265_v26 = vld [vmem:[#allocation3 + $0x460] ss:$16 sps:$4 sm:$0xff]  }
  0xe1   :  { %1454 = vmatpush2.bf16.msra.mxu0 %v6203_v38  ;;  %v6273_v28 = vld [vmem:[#allocation3 + $0x444] ss:$16 sps:$4 sm:$0xff]   ;;  %v6271_v30 = vld [vmem:[#allocation3 + $0x440] ss:$16 sps:$4 sm:$0xff]  }
  0xe2   :  { %1495 = vmatpush2.bf16.msra.mxu1 %v6204_v39  ;;  %1455 = vmatprep.subr.bf16.mxu0 %v6205_v40  ;;  %v6279_v32 = vld [vmem:[#allocation3 + $0x424] ss:$16 sps:$4 sm:$0xff]   ;;  %v6277_v36 = vld [vmem:[#allocation3 + $0x420] ss:$16 sps:$4 sm:$0xff]   ;;  %v6288_v39 = vld [vmem:[#allocation3 + $0xc] ss:$16 sps:$4 sm:$0xff]  }
  0xe3   :  { %1496 = vmatprep.subr.bf16.mxu1 %v6207_v41  ;;  %v254_v34 = vld [vmem:[%s8193_s3 + $0x28] sm:$0xff]  ;;  %v6286_v41 = vld [vmem:[#allocation3 + $0x8] ss:$16 sps:$4 sm:$0xff]  }
  0xe4   :  { %v7465_v35 = vpack.c.bf16 %v254_v34, %v254_v34  ;;  %v6285_v38 = vld [vmem:[#allocation3 + $0x404] ss:$16 sps:$4 sm:$0xff]   ;;  %v6283_v40 = vld [vmem:[#allocation3 + $0x400] ss:$16 sps:$4 sm:$0xff]   ;;  %v6372_v34 = vld [vmem:[#allocation3 + $0x44c] ss:$16 sps:$4 sm:$0xff]  }
  0xe5   :  { %1456 = vmatpush2.bf16.msra.mxu0 %v6209_v42  ;;  %v6291_v42 = vld [vmem:[#allocation3 + $0x5e4] ss:$16 sps:$4 sm:$0xff]   ;;  %v6325_v5 = vld [vmem:[#allocation3 + $0x520] ss:$16 sps:$4 sm:$0xff]  }
  0xe6   :  { %1497 = vmatpush2.bf16.msra.mxu1 %v6210_v43  ;;  %1457 = vmatprep.subr.bf16.mxu0 %v6211_v44  ;;  %v6294_v43 = vld [vmem:[#allocation3 + $0x1ec] ss:$16 sps:$4 sm:$0xff]   ;;  %v6289_v44 = vld [vmem:[#allocation3 + $0x5e0] ss:$16 sps:$4 sm:$0xff]   ;;  %v6297_v46 = vld [vmem:[#allocation3 + $0x5c4] ss:$16 sps:$4 sm:$0xff]  }
  0xe7   :  { %1498 = vmatprep.subr.bf16.mxu1 %v6213_v45  ;;  %v6292_v45 = vld [vmem:[#allocation3 + $0x1e8] ss:$16 sps:$4 sm:$0xff]   ;;  %v6303_v50 = vld [vmem:[#allocation3 + $0x5a4] ss:$16 sps:$4 sm:$0xff]  }
  0xe9   :  { %1458 = vmatpush2.bf16.msra.mxu0 %v6215_v47  ;;  %v6300_v47 = vld [vmem:[#allocation3 + $0x1cc] ss:$16 sps:$4 sm:$0xff]  }
  0xea   :  { %1499 = vmatpush2.bf16.msra.mxu1 %v6216_v48  ;;  %1459 = vmatprep.subr.bf16.mxu0 %v6217_v51  ;;  %v6295_v48 = vld [vmem:[#allocation3 + $0x5c0] ss:$16 sps:$4 sm:$0xff]   ;;  %v6306_v51 = vld [vmem:[#allocation3 + $0x1ac] ss:$16 sps:$4 sm:$0xff]  }
  0xeb   :  { %1500 = vmatprep.subr.bf16.mxu1 %v6219_v53  ;;  %v6301_v53 = vld [vmem:[#allocation3 + $0x5a0] ss:$16 sps:$4 sm:$0xff]  }
  0xed   :  { %1460 = vmatpush2.bf16.msra.mxu0 %v6221_v54  ;;  %v6304_v54 = vld [vmem:[#allocation3 + $0x1a8] ss:$16 sps:$4 sm:$0xff]  }
  0xee   :  { %1501 = vmatpush2.bf16.msra.mxu1 %v6222_v55  ;;  %1461 = vmatprep.subr.bf16.mxu0 %v6223_v56  ;;  %v6309_v55 = vld [vmem:[#allocation3 + $0x584] ss:$16 sps:$4 sm:$0xff]   ;;  %v6312_v56 = vld [vmem:[#allocation3 + $0x18c] ss:$16 sps:$4 sm:$0xff]  }
  0xef   :  { %1502 = vmatprep.subr.bf16.mxu1 %v6225_v57  ;;  %v6307_v57 = vld [vmem:[#allocation3 + $0x580] ss:$16 sps:$4 sm:$0xff]  }
  0xf1   :  { %1462 = vmatpush2.bf16.msra.mxu0 %v6227_v58  ;;  %v6310_v58 = vld [vmem:[#allocation3 + $0x188] ss:$16 sps:$4 sm:$0xff]  }
  0xf2   :  { %1503 = vmatpush2.bf16.msra.mxu1 %v6228_v59  ;;  %1463 = vmatprep.subr.bf16.mxu0 %v6229_v60  ;;  %v6315_v59 = vld [vmem:[#allocation3 + $0x564] ss:$16 sps:$4 sm:$0xff]   ;;  %v6318_v60 = vld [vmem:[#allocation3 + $0x16c] ss:$16 sps:$4 sm:$0xff]  }
  0xf3   :  { %1504 = vmatprep.subr.bf16.mxu1 %v6231_v61  ;;  %v6313_v61 = vld [vmem:[#allocation3 + $0x560] ss:$16 sps:$4 sm:$0xff]  }
  0xf5   :  { %1464 = vmatpush2.bf16.msra.mxu0 %v6233_v62  ;;  %v6316_v62 = vld [vmem:[#allocation3 + $0x168] ss:$16 sps:$4 sm:$0xff]  }
  0xf6   :  { %1505 = vmatpush2.bf16.msra.mxu1 %v6234_v63  ;;  %1465 = vmatprep.subr.bf16.mxu0 %v6235_v0  ;;  %v6321_v63 = vld [vmem:[#allocation3 + $0x544] ss:$16 sps:$4 sm:$0xff]   ;;  %v6324_v0 = vld [vmem:[#allocation3 + $0x14c] ss:$16 sps:$4 sm:$0xff]  }
  0xf7   :  { %1506 = vmatprep.subr.bf16.mxu1 %v6237_v1  ;;  %v6319_v1 = vld [vmem:[#allocation3 + $0x540] ss:$16 sps:$4 sm:$0xff]  }
  0xf9   :  { %1466 = vmatpush2.bf16.msra.mxu0 %v6239_v2  ;;  %v6322_v2 = vld [vmem:[#allocation3 + $0x148] ss:$16 sps:$4 sm:$0xff]  }
  0xfa   :  { %1507 = vmatpush2.bf16.msra.mxu1 %v6240_v3  ;;  %1517 = vmatprep.subr.bf16.mxu0 %v6243_v6  ;;  %v6327_v3 = vld [vmem:[#allocation3 + $0x524] ss:$16 sps:$4 sm:$0xff]   ;;  %v6328_v6 = vld [vmem:[#allocation3 + $0x128] ss:$16 sps:$4 sm:$0xff]  }
  0xfb   :  { %1558 = vmatprep.subr.bf16.mxu1 %v6246_v7  ;;  %v6333_v7 = vld [vmem:[#allocation3 + $0x504] ss:$16 sps:$4 sm:$0xff]  }
  0xfc   :  { %1468 = vmatmul.mubr.bf16.vlgmr.msra.gmra.mxu0 %v7455_v8 }
  0xfd   :  { %1509 = vmatmul.mubr.bf16.vlgmr.msra.gmra.mxu1 %v7457_v9  ;;  %1518 = vmatpush1.bf16.msra.mxu0 %v6241_v10  ;;  %v6336_v10 = vld [vmem:[#allocation3 + $0x10c] ss:$16 sps:$4 sm:$0xff]  }
  0xfe   :  { %1559 = vmatpush1.bf16.msra.mxu1 %v6244_v11  ;;  %1519 = vmatprep.subr.bf16.mxu0 %v6249_v12  ;;  %v6331_v11 = vld [vmem:[#allocation3 + $0x500] ss:$16 sps:$4 sm:$0xff]   ;;  %v6334_v12 = vld [vmem:[#allocation3 + $0x108] ss:$16 sps:$4 sm:$0xff]  }
  0xff   :  { %1560 = vmatprep.subr.bf16.mxu1 %v6252_v13  ;;  %1590 = vmatprep.mubr.bf16.mxu1 %v7440_v49  ;;  %v6298_v49 = vld [vmem:[#allocation3 + $0x1c8] ss:$16 sps:$4 sm:$0xff]  }
 0x100   :  { %1549 = vmatprep.mubr.bf16.mxu0 %v7465_v35  ;;  %v253_v13 = vld [vmem:[%s8193_s3 + $0x20] sm:$0xff] }
 0x101   :  { %1520 = vmatpush1.bf16.msra.mxu0 %v6247_v14  ;;  %v6339_v14 = vld [vmem:[#allocation3 + $0x2ec] ss:$16 sps:$4 sm:$0xff]  }
 0x102   :  { %1561 = vmatpush1.bf16.msra.mxu1 %v6250_v15  ;;  %1521 = vmatprep.subr.bf16.mxu0 %v6255_v16  ;;  %v6342_v15 = vld [vmem:[#allocation3 + $0x4ec] ss:$16 sps:$4 sm:$0xff]   ;;  %v7471_v16 = vpack.c.bf16 %v253_v13, %v253_v13 }
 0x103   :  { %1562 = vmatprep.subr.bf16.mxu1 %v6258_v17  ;;  %v6337_v17 = vld [vmem:[#allocation3 + $0x2e8] ss:$16 sps:$4 sm:$0xff]   ;;  %v6432_v13 = vld [vmem:[#allocation3 + $0x50c] ss:$16 sps:$4 sm:$0xff]  }
 0x105   :  { %1522 = vmatpush1.bf16.msra.mxu0 %v6253_v18  ;;  %v6340_v18 = vld [vmem:[#allocation3 + $0x4e8] ss:$16 sps:$4 sm:$0xff]  }
 0x106   :  { %1563 = vmatpush1.bf16.msra.mxu1 %v6256_v19  ;;  %1523 = vmatprep.subr.bf16.mxu0 %v6261_v20  ;;  %v6345_v19 = vld [vmem:[#allocation3 + $0x2cc] ss:$16 sps:$4 sm:$0xff]  }
 0x107   :  { %1564 = vmatprep.subr.bf16.mxu1 %v6264_v21  ;;  %v6348_v20 = vld [vmem:[#allocation3 + $0x4cc] ss:$16 sps:$4 sm:$0xff]   ;;  %v6343_v21 = vld [vmem:[#allocation3 + $0x2c8] ss:$16 sps:$4 sm:$0xff]  }
 0x109   :  { %1524 = vmatpush1.bf16.msra.mxu0 %v6259_v22  ;;  %v6346_v22 = vld [vmem:[#allocation3 + $0x4c8] ss:$16 sps:$4 sm:$0xff]  }
 0x10a   :  { %1565 = vmatpush1.bf16.msra.mxu1 %v6262_v23  ;;  %1525 = vmatprep.subr.bf16.mxu0 %v6267_v24  ;;  %v6351_v23 = vld [vmem:[#allocation3 + $0x2ac] ss:$16 sps:$4 sm:$0xff]  }
 0x10b   :  { %1566 = vmatprep.subr.bf16.mxu1 %v6270_v25  ;;  %v6354_v24 = vld [vmem:[#allocation3 + $0x4ac] ss:$16 sps:$4 sm:$0xff]   ;;  %v6349_v25 = vld [vmem:[#allocation3 + $0x2a8] ss:$16 sps:$4 sm:$0xff]  }
 0x10d   :  { %1526 = vmatpush1.bf16.msra.mxu0 %v6265_v26  ;;  %v6352_v26 = vld [vmem:[#allocation3 + $0x4a8] ss:$16 sps:$4 sm:$0xff]  }
 0x10e   :  { %1567 = vmatpush1.bf16.msra.mxu1 %v6268_v27  ;;  %1527 = vmatprep.subr.bf16.mxu0 %v6273_v28  ;;  %v6357_v27 = vld [vmem:[#allocation3 + $0x28c] ss:$16 sps:$4 sm:$0xff]   ;;  %v6355_v28 = vld [vmem:[#allocation3 + $0x288] ss:$16 sps:$4 sm:$0xff]  }
 0x10f   :  { %1568 = vmatprep.subr.bf16.mxu1 %v6276_v29  ;;  %v6358_v29 = vld [vmem:[#allocation3 + $0x488] ss:$16 sps:$4 sm:$0xff]  }
 0x111   :  { %1528 = vmatpush1.bf16.msra.mxu0 %v6271_v30  ;;  %v6363_v30 = vld [vmem:[#allocation3 + $0x26c] ss:$16 sps:$4 sm:$0xff]  }
 0x112   :  { %1569 = vmatpush1.bf16.msra.mxu1 %v6274_v31  ;;  %1529 = vmatprep.subr.bf16.mxu0 %v6279_v32  ;;  %v6366_v31 = vld [vmem:[#allocation3 + $0x46c] ss:$16 sps:$4 sm:$0xff]   ;;  %v6364_v32 = vld [vmem:[#allocation3 + $0x468] ss:$16 sps:$4 sm:$0xff]  }
 0x113   :  { %1570 = vmatprep.subr.bf16.mxu1 %v6282_v33  ;;  %v6369_v33 = vld [vmem:[#allocation3 + $0x24c] ss:$16 sps:$4 sm:$0xff]  }
 0x115   :  { %1530 = vmatpush1.bf16.msra.mxu0 %v6277_v36  ;;  %v6370_v36 = vld [vmem:[#allocation3 + $0x448] ss:$16 sps:$4 sm:$0xff]  }
 0x116   :  { %1571 = vmatpush1.bf16.msra.mxu1 %v6280_v37  ;;  %1531 = vmatprep.subr.bf16.mxu0 %v6285_v38  ;;  %v6375_v37 = vld [vmem:[#allocation3 + $0x22c] ss:$16 sps:$4 sm:$0xff]  }
 0x117   :  { %1572 = vmatprep.subr.bf16.mxu1 %v6288_v39  ;;  %v6378_v38 = vld [vmem:[#allocation3 + $0x42c] ss:$16 sps:$4 sm:$0xff]   ;;  %v6373_v39 = vld [vmem:[#allocation3 + $0x228] ss:$16 sps:$4 sm:$0xff]  }
 0x119   :  { %1532 = vmatpush1.bf16.msra.mxu0 %v6283_v40  ;;  %v6376_v40 = vld [vmem:[#allocation3 + $0x428] ss:$16 sps:$4 sm:$0xff]  }
 0x11a   :  { %1573 = vmatpush1.bf16.msra.mxu1 %v6286_v41  ;;  %1533 = vmatprep.subr.bf16.mxu0 %v6291_v42  ;;  %v6381_v41 = vld [vmem:[#allocation3 + $0x20c] ss:$16 sps:$4 sm:$0xff]  }
 0x11b   :  { %1574 = vmatprep.subr.bf16.mxu1 %v6294_v43  ;;  %v6384_v42 = vld [vmem:[#allocation3 + $0x40c] ss:$16 sps:$4 sm:$0xff]   ;;  %v6379_v43 = vld [vmem:[#allocation3 + $0x208] ss:$16 sps:$4 sm:$0xff]  }
 0x11d   :  { %1534 = vmatpush2.bf16.msra.mxu0 %v6289_v44  ;;  %v6382_v44 = vld [vmem:[#allocation3 + $0x408] ss:$16 sps:$4 sm:$0xff]  }
 0x11e   :  { %1575 = vmatpush2.bf16.msra.mxu1 %v6292_v45  ;;  %1535 = vmatprep.subr.bf16.mxu0 %v6297_v46  ;;  %v6387_v45 = vld [vmem:[#allocation3 + $0x3ec] ss:$16 sps:$4 sm:$0xff]  }
 0x11f   :  { %1576 = vmatprep.subr.bf16.mxu1 %v6300_v47  ;;  %v6390_v46 = vld [vmem:[#allocation3 + $0x5ec] ss:$16 sps:$4 sm:$0xff]   ;;  %v6385_v47 = vld [vmem:[#allocation3 + $0x3e8] ss:$16 sps:$4 sm:$0xff]  }
 0x121   :  { %1536 = vmatpush2.bf16.msra.mxu0 %v6295_v48  ;;  %v6388_v48 = vld [vmem:[#allocation3 + $0x5e8] ss:$16 sps:$4 sm:$0xff]  }
 0x122   :  { %1577 = vmatpush2.bf16.msra.mxu1 %v6298_v49  ;;  %1537 = vmatprep.subr.bf16.mxu0 %v6303_v50  ;;  %v6393_v49 = vld [vmem:[#allocation3 + $0x3cc] ss:$16 sps:$4 sm:$0xff]  }
 0x123   :  { %1578 = vmatprep.subr.bf16.mxu1 %v6306_v51  ;;  %v6396_v50 = vld [vmem:[#allocation3 + $0x5cc] ss:$16 sps:$4 sm:$0xff]   ;;  %v6391_v51 = vld [vmem:[#allocation3 + $0x3c8] ss:$16 sps:$4 sm:$0xff]  }
 0x125   :  { %1538 = vmatpush2.bf16.msra.mxu0 %v6301_v53  ;;  %v6394_v53 = vld [vmem:[#allocation3 + $0x5c8] ss:$16 sps:$4 sm:$0xff]  }
 0x126   :  { %1579 = vmatpush2.bf16.msra.mxu1 %v6304_v54  ;;  %1539 = vmatprep.subr.bf16.mxu0 %v6309_v55  ;;  %v6399_v54 = vld [vmem:[#allocation3 + $0x3ac] ss:$16 sps:$4 sm:$0xff]  }
 0x127   :  { %1580 = vmatprep.subr.bf16.mxu1 %v6312_v56  ;;  %v6402_v55 = vld [vmem:[#allocation3 + $0x5ac] ss:$16 sps:$4 sm:$0xff]   ;;  %v6397_v56 = vld [vmem:[#allocation3 + $0x3a8] ss:$16 sps:$4 sm:$0xff]  }
 0x129   :  { %1540 = vmatpush2.bf16.msra.mxu0 %v6307_v57  ;;  %v6400_v57 = vld [vmem:[#allocation3 + $0x5a8] ss:$16 sps:$4 sm:$0xff]  }
 0x12a   :  { %1581 = vmatpush2.bf16.msra.mxu1 %v6310_v58  ;;  %1541 = vmatprep.subr.bf16.mxu0 %v6315_v59  ;;  %v6405_v58 = vld [vmem:[#allocation3 + $0x38c] ss:$16 sps:$4 sm:$0xff]  }
 0x12b   :  { %1582 = vmatprep.subr.bf16.mxu1 %v6318_v60  ;;  %v6408_v59 = vld [vmem:[#allocation3 + $0x58c] ss:$16 sps:$4 sm:$0xff]   ;;  %v6403_v60 = vld [vmem:[#allocation3 + $0x388] ss:$16 sps:$4 sm:$0xff]  }
 0x12d   :  { %1542 = vmatpush2.bf16.msra.mxu0 %v6313_v61  ;;  %v6406_v61 = vld [vmem:[#allocation3 + $0x588] ss:$16 sps:$4 sm:$0xff]  }
 0x12e   :  { %1583 = vmatpush2.bf16.msra.mxu1 %v6316_v62  ;;  %1543 = vmatprep.subr.bf16.mxu0 %v6321_v63  ;;  %v6411_v62 = vld [vmem:[#allocation3 + $0x36c] ss:$16 sps:$4 sm:$0xff]  }
 0x12f   :  { %1584 = vmatprep.subr.bf16.mxu1 %v6324_v0  ;;  %v6414_v63 = vld [vmem:[#allocation3 + $0x56c] ss:$16 sps:$4 sm:$0xff]   ;;  %v6409_v0 = vld [vmem:[#allocation3 + $0x368] ss:$16 sps:$4 sm:$0xff]  }
 0x131   :  { %1544 = vmatpush2.bf16.msra.mxu0 %v6319_v1  ;;  %v6412_v1 = vld [vmem:[#allocation3 + $0x568] ss:$16 sps:$4 sm:$0xff]  }
 0x132   :  { %1585 = vmatpush2.bf16.msra.mxu1 %v6322_v2  ;;  %1545 = vmatprep.subr.bf16.mxu0 %v6327_v3  ;;  %v6417_v2 = vld [vmem:[#allocation3 + $0x34c] ss:$16 sps:$4 sm:$0xff]  }
 0x133   :  { %1586 = vmatprep.subr.bf16.mxu1 %v6330_v4  ;;  %v6420_v3 = vld [vmem:[#allocation3 + $0x54c] ss:$16 sps:$4 sm:$0xff]   ;;  %v6415_v4 = vld [vmem:[#allocation3 + $0x348] ss:$16 sps:$4 sm:$0xff]  }
 0x135   :  { %1546 = vmatpush2.bf16.msra.mxu0 %v6325_v5  ;;  %v6418_v5 = vld [vmem:[#allocation3 + $0x548] ss:$16 sps:$4 sm:$0xff]  }
 0x136   :  { %1587 = vmatpush2.bf16.msra.mxu1 %v6328_v6  ;;  %1547 = vmatprep.subr.bf16.mxu0 %v6333_v7  ;;  %v6423_v6 = vld [vmem:[#allocation3 + $0x32c] ss:$16 sps:$4 sm:$0xff]  }
 0x137   :  { %1588 = vmatprep.subr.bf16.mxu1 %v6336_v10  ;;  %v6426_v7 = vld [vmem:[#allocation3 + $0x52c] ss:$16 sps:$4 sm:$0xff]   ;;  %v6421_v10 = vld [vmem:[#allocation3 + $0x328] ss:$16 sps:$4 sm:$0xff]  }
 0x139   :  { %1548 = vmatpush2.bf16.msra.mxu0 %v6331_v11  ;;  %v6424_v11 = vld [vmem:[#allocation3 + $0x528] ss:$16 sps:$4 sm:$0xff]  }
 0x13a   :  { %1589 = vmatpush2.bf16.msra.mxu1 %v6334_v12  ;;  %1599 = vmatprep.subr.bf16.mxu0 %v6339_v14  ;;  %v6429_v12 = vld [vmem:[#allocation3 + $0x30c] ss:$16 sps:$4 sm:$0xff]   ;;  %v6427_v14 = vld [vmem:[#allocation3 + $0x308] ss:$16 sps:$4 sm:$0xff]  }
 0x13b   :  { %1640 = vmatprep.subr.bf16.mxu1 %v6342_v15  ;;  %v6430_v15 = vld [vmem:[#allocation3 + $0x508] ss:$16 sps:$4 sm:$0xff]  }
 0x13c   :  { %1550 = vmatmul.mubr.bf16.vlgmr.msra.gmra.mxu0 %v7471_v16 }
 0x13d   :  { %1591 = vmatmul.mubr.bf16.vlgmr.msra.gmra.mxu1 %v7455_v8  ;;  %1600 = vmatpush1.bf16.msra.mxu0 %v6337_v17  ;;  %v6360_v8 = vld [vmem:[#allocation3 + $0x48c] ss:$16 sps:$4 sm:$0xff]   ;;  %v6435_v17 = vld [vmem:[#allocation6 + $0xe4] ss:$16 sps:$4 sm:$0xff]  }
 0x13e   :  { %1641 = vmatpush1.bf16.msra.mxu1 %v6340_v18  ;;  %1601 = vmatprep.subr.bf16.mxu0 %v6345_v19  ;;  %v6438_v18 = vld [vmem:[#allocation6 + $0x2e4] ss:$16 sps:$4 sm:$0xff]   ;;  %v6433_v19 = vld [vmem:[#allocation6 + $0xe0] ss:$16 sps:$4 sm:$0xff]  }
 0x13f   :  { %1642 = vmatprep.subr.bf16.mxu1 %v6348_v20  ;;  %1631 = vmatprep.mubr.bf16.mxu0 %v7445_v52  ;;  %v6361_v52 = vld [vmem:[#allocation3 + $0x268] ss:$16 sps:$4 sm:$0xff]   ;;  %v1686_v20 = vld [vmem:[%s8194_s14 + $0x8] sm:$0xff] }
 0x140   :  { %1672 = vmatprep.mubr.bf16.mxu1 %v7465_v35  ;;  %v6367_v35 = vld [vmem:[#allocation3 + $0x248] ss:$16 sps:$4 sm:$0xff]  }
 0x141   :  { %1602 = vmatpush1.bf16.msra.mxu0 %v6343_v21  ;;  %v1688_v21 = vld [vmem:[%s8194_s14 + $0x18] sm:$0xff] }
 0x142   :  { %1643 = vmatpush1.bf16.msra.mxu1 %v6346_v22  ;;  %1603 = vmatprep.subr.bf16.mxu0 %v6351_v23  ;;  %v6436_v22 = vld [vmem:[#allocation6 + $0x2e0] ss:$16 sps:$4 sm:$0xff]   ;;  %v6441_v23 = vld [vmem:[#allocation6 + $0xc4] ss:$16 sps:$4 sm:$0xff]  }
 0x143   :  { %1644 = vmatprep.subr.bf16.mxu1 %v6354_v24  ;;  %v6444_v24 = vld [vmem:[#allocation6 + $0x2c4] ss:$16 sps:$4 sm:$0xff]  }
 0x145   :  { %1604 = vmatpush1.bf16.msra.mxu0 %v6349_v25  ;;  %v7483_v25 = vpack.c.bf16 %v1686_v20, %v1686_v20  ;;  %v6528_v20 = vld [vmem:[#allocation6 + $0x304] ss:$16 sps:$4 sm:$0xff]  }
 0x146   :  { %1645 = vmatpush1.bf16.msra.mxu1 %v6352_v26  ;;  %1605 = vmatprep.subr.bf16.mxu0 %v6357_v27  ;;  %v7485_v26 = vpack.c.bf16 %v1688_v21, %v1688_v21  ;;  %v6439_v27 = vld [vmem:[#allocation6 + $0xc0] ss:$16 sps:$4 sm:$0xff]  }
 0x147   :  { %1646 = vmatprep.subr.bf16.mxu1 %v6360_v8  ;;  %v6442_v8 = vld [vmem:[#allocation6 + $0x2c0] ss:$16 sps:$4 sm:$0xff]  }
 0x148   :  { %v6523_v21 = vld [vmem:[#allocation6 + $0x100] ss:$16 sps:$4 sm:$0xff]  }
 0x149   :  { %1606 = vmatpush1.bf16.msra.mxu0 %v6355_v28  ;;  %v6447_v28 = vld [vmem:[#allocation6 + $0xa4] ss:$16 sps:$4 sm:$0xff]  }
 0x14a   :  { %1647 = vmatpush1.bf16.msra.mxu1 %v6358_v29  ;;  %1607 = vmatprep.subr.bf16.mxu0 %v6363_v30  ;;  %v6450_v29 = vld [vmem:[#allocation6 + $0x2a4] ss:$16 sps:$4 sm:$0xff]   ;;  %v6445_v30 = vld [vmem:[#allocation6 + $0xa0] ss:$16 sps:$4 sm:$0xff]  }
 0x14b   :  { %1648 = vmatprep.subr.bf16.mxu1 %v6366_v31  ;;  %v6448_v31 = vld [vmem:[#allocation6 + $0x2a0] ss:$16 sps:$4 sm:$0xff]  }
 0x14d   :  { %1608 = vmatpush1.bf16.msra.mxu0 %v6361_v52  ;;  %v6453_v52 = vld [vmem:[#allocation6 + $0x84] ss:$16 sps:$4 sm:$0xff]  }
 0x14e   :  { %1649 = vmatpush1.bf16.msra.mxu1 %v6364_v32  ;;  %1609 = vmatprep.subr.bf16.mxu0 %v6369_v33  ;;  %v6454_v32 = vld [vmem:[#allocation6 + $0x280] ss:$16 sps:$4 sm:$0xff]   ;;  %v6459_v33 = vld [vmem:[#allocation6 + $0x64] ss:$16 sps:$4 sm:$0xff]  }
 0x14f   :  { %1650 = vmatprep.subr.bf16.mxu1 %v6372_v34  ;;  %v6462_v34 = vld [vmem:[#allocation6 + $0x264] ss:$16 sps:$4 sm:$0xff]  }
 0x151   :  { %1610 = vmatpush1.bf16.msra.mxu0 %v6367_v35  ;;  %v6457_v35 = vld [vmem:[#allocation6 + $0x60] ss:$16 sps:$4 sm:$0xff]  }
 0x152   :  { %1651 = vmatpush1.bf16.msra.mxu1 %v6370_v36  ;;  %1611 = vmatprep.subr.bf16.mxu0 %v6375_v37  ;;  %v6460_v36 = vld [vmem:[#allocation6 + $0x260] ss:$16 sps:$4 sm:$0xff]   ;;  %v6465_v37 = vld [vmem:[#allocation6 + $0x44] ss:$16 sps:$4 sm:$0xff]  }
 0x153   :  { %1652 = vmatprep.subr.bf16.mxu1 %v6378_v38  ;;  %v6468_v38 = vld [vmem:[#allocation6 + $0x244] ss:$16 sps:$4 sm:$0xff]  }
 0x155   :  { %1612 = vmatpush1.bf16.msra.mxu0 %v6373_v39  ;;  %v6463_v39 = vld [vmem:[#allocation6 + $0x40] ss:$16 sps:$4 sm:$0xff]  }
 0x156   :  { %1653 = vmatpush1.bf16.msra.mxu1 %v6376_v40  ;;  %1613 = vmatprep.subr.bf16.mxu0 %v6381_v41  ;;  %v6466_v40 = vld [vmem:[#allocation6 + $0x240] ss:$16 sps:$4 sm:$0xff]   ;;  %v6471_v41 = vld [vmem:[#allocation6 + $0x24] ss:$16 sps:$4 sm:$0xff]  }
 0x157   :  { %1654 = vmatprep.subr.bf16.mxu1 %v6384_v42  ;;  %v6474_v42 = vld [vmem:[#allocation6 + $0x224] ss:$16 sps:$4 sm:$0xff]  }
 0x159   :  { %1614 = vmatpush1.bf16.msra.mxu0 %v6379_v43  ;;  %v6469_v43 = vld [vmem:[#allocation6 + $0x20] ss:$16 sps:$4 sm:$0xff]  }
 0x15a   :  { %1655 = vmatpush1.bf16.msra.mxu1 %v6382_v44  ;;  %1615 = vmatprep.subr.bf16.mxu0 %v6387_v45  ;;  %v6472_v44 = vld [vmem:[#allocation6 + $0x220] ss:$16 sps:$4 sm:$0xff]   ;;  %v6477_v45 = vld [vmem:[#allocation6 + $0x4] ss:$16 sps:$4 sm:$0xff]  }
 0x15b   :  { %1656 = vmatprep.subr.bf16.mxu1 %v6390_v46  ;;  %v6480_v46 = vld [vmem:[#allocation6 + $0x204] ss:$16 sps:$4 sm:$0xff]  }
 0x15d   :  { %1616 = vmatpush2.bf16.msra.mxu0 %v6385_v47  ;;  %v6475_v47 = vld [vmem:[#allocation6] ss:$16 sps:$4 sm:$0xff]  }
 0x15e   :  { %1657 = vmatpush2.bf16.msra.mxu1 %v6388_v48  ;;  %1617 = vmatprep.subr.bf16.mxu0 %v6393_v49  ;;  %v6478_v48 = vld [vmem:[#allocation6 + $0x200] ss:$16 sps:$4 sm:$0xff]   ;;  %v6483_v49 = vld [vmem:[#allocation6 + $0x1e4] ss:$16 sps:$4 sm:$0xff]  }
 0x15f   :  { %1658 = vmatprep.subr.bf16.mxu1 %v6396_v50  ;;  %v6486_v50 = vld [vmem:[#allocation6 + $0x3e4] ss:$16 sps:$4 sm:$0xff]  }
 0x161   :  { %1618 = vmatpush2.bf16.msra.mxu0 %v6391_v51  ;;  %v6481_v51 = vld [vmem:[#allocation6 + $0x1e0] ss:$16 sps:$4 sm:$0xff]  }
 0x162   :  { %1659 = vmatpush2.bf16.msra.mxu1 %v6394_v53  ;;  %1619 = vmatprep.subr.bf16.mxu0 %v6399_v54  ;;  %v6484_v53 = vld [vmem:[#allocation6 + $0x3e0] ss:$16 sps:$4 sm:$0xff]   ;;  %v6489_v54 = vld [vmem:[#allocation6 + $0x1c4] ss:$16 sps:$4 sm:$0xff]  }
 0x163   :  { %1660 = vmatprep.subr.bf16.mxu1 %v6402_v55  ;;  %v6492_v55 = vld [vmem:[#allocation6 + $0x3c4] ss:$16 sps:$4 sm:$0xff]  }
 0x165   :  { %1620 = vmatpush2.bf16.msra.mxu0 %v6397_v56  ;;  %v6487_v56 = vld [vmem:[#allocation6 + $0x1c0] ss:$16 sps:$4 sm:$0xff]  }
 0x166   :  { %1661 = vmatpush2.bf16.msra.mxu1 %v6400_v57  ;;  %1621 = vmatprep.subr.bf16.mxu0 %v6405_v58  ;;  %v6490_v57 = vld [vmem:[#allocation6 + $0x3c0] ss:$16 sps:$4 sm:$0xff]   ;;  %v6495_v58 = vld [vmem:[#allocation6 + $0x1a4] ss:$16 sps:$4 sm:$0xff]  }
 0x167   :  { %1662 = vmatprep.subr.bf16.mxu1 %v6408_v59  ;;  %v6498_v59 = vld [vmem:[#allocation6 + $0x3a4] ss:$16 sps:$4 sm:$0xff]  }
 0x169   :  { %1622 = vmatpush2.bf16.msra.mxu0 %v6403_v60  ;;  %v6493_v60 = vld [vmem:[#allocation6 + $0x1a0] ss:$16 sps:$4 sm:$0xff]  }
 0x16a   :  { %1663 = vmatpush2.bf16.msra.mxu1 %v6406_v61  ;;  %1623 = vmatprep.subr.bf16.mxu0 %v6411_v62  ;;  %v6496_v61 = vld [vmem:[#allocation6 + $0x3a0] ss:$16 sps:$4 sm:$0xff]   ;;  %v6501_v62 = vld [vmem:[#allocation6 + $0x184] ss:$16 sps:$4 sm:$0xff]  }
 0x16b   :  { %1664 = vmatprep.subr.bf16.mxu1 %v6414_v63  ;;  %v6504_v63 = vld [vmem:[#allocation6 + $0x384] ss:$16 sps:$4 sm:$0xff]  }
 0x16d   :  { %1624 = vmatpush2.bf16.msra.mxu0 %v6409_v0  ;;  %v6499_v0 = vld [vmem:[#allocation6 + $0x180] ss:$16 sps:$4 sm:$0xff]  }
 0x16e   :  { %1665 = vmatpush2.bf16.msra.mxu1 %v6412_v1  ;;  %1625 = vmatprep.subr.bf16.mxu0 %v6417_v2  ;;  %v6502_v1 = vld [vmem:[#allocation6 + $0x380] ss:$16 sps:$4 sm:$0xff]   ;;  %v6507_v2 = vld [vmem:[#allocation6 + $0x164] ss:$16 sps:$4 sm:$0xff]  }
 0x16f   :  { %1666 = vmatprep.subr.bf16.mxu1 %v6420_v3  ;;  %v6510_v3 = vld [vmem:[#allocation6 + $0x364] ss:$16 sps:$4 sm:$0xff]  }
 0x171   :  { %1626 = vmatpush2.bf16.msra.mxu0 %v6415_v4  ;;  %v6505_v4 = vld [vmem:[#allocation6 + $0x160] ss:$16 sps:$4 sm:$0xff]  }
 0x172   :  { %1667 = vmatpush2.bf16.msra.mxu1 %v6418_v5  ;;  %1627 = vmatprep.subr.bf16.mxu0 %v6423_v6  ;;  %v6508_v5 = vld [vmem:[#allocation6 + $0x360] ss:$16 sps:$4 sm:$0xff]   ;;  %v6513_v6 = vld [vmem:[#allocation6 + $0x144] ss:$16 sps:$4 sm:$0xff]  }
 0x173   :  { %1668 = vmatprep.subr.bf16.mxu1 %v6426_v7  ;;  %v6516_v7 = vld [vmem:[#allocation6 + $0x344] ss:$16 sps:$4 sm:$0xff]  }
 0x175   :  { %1628 = vmatpush2.bf16.msra.mxu0 %v6421_v10  ;;  %v6511_v10 = vld [vmem:[#allocation6 + $0x140] ss:$16 sps:$4 sm:$0xff]  }
 0x176   :  { %1669 = vmatpush2.bf16.msra.mxu1 %v6424_v11  ;;  %1629 = vmatprep.subr.bf16.mxu0 %v6429_v12  ;;  %v6514_v11 = vld [vmem:[#allocation6 + $0x340] ss:$16 sps:$4 sm:$0xff]   ;;  %v455_v12 = vlaneseq }
 0x177   :  { %1670 = vmatprep.subr.bf16.mxu1 %v6432_v13  ;;  %v6519_v13 = vld [vmem:[#allocation6 + $0x124] ss:$16 sps:$4 sm:$0xff]  }
 0x179   :  { %1630 = vmatpush2.bf16.msra.mxu0 %v6427_v14  ;;  %v6522_v14 = vld [vmem:[#allocation6 + $0x324] ss:$16 sps:$4 sm:$0xff]  }
 0x17a   :  { %1671 = vmatpush2.bf16.msra.mxu1 %v6430_v15  ;;  %2871 = vmatprep.subr.bf16.mxu0 %v6435_v17  ;;  %v6517_v15 = vld [vmem:[#allocation6 + $0x120] ss:$16 sps:$4 sm:$0xff]  }
 0x17b   :  { %2912 = vmatprep.subr.bf16.mxu1 %v6438_v18  ;;  %v6520_v17 = vld [vmem:[#allocation6 + $0x320] ss:$16 sps:$4 sm:$0xff]   ;;  %v7492_v18 = vshrl.u32 %v455_v12, 7 }
 0x17c   :  { %1632 = vmatmul.mubr.bf16.vlgmr.msra.gmra.mxu0 %v7457_v9  ;;  %v6456_v9 = vld [vmem:[#allocation6 + $0x284] ss:$16 sps:$4 sm:$0xff]  }
 0x17d   :  { %1673 = vmatmul.mubr.bf16.vlgmr.msra.gmra.mxu1 %v7471_v16  ;;  %2872 = vmatpush1.bf16.msra.mxu0 %v6433_v19  ;;  %v6451_v16 = vld [vmem:[#allocation6 + $0x80] ss:$16 sps:$4 sm:$0xff]   ;;  %v6525_v19 = vld [vmem:[#allocation6 + $0x104] ss:$16 sps:$4 sm:$0xff]  }
 0x17e   :  { %2913 = vmatpush1.bf16.msra.mxu1 %v6436_v22  ;;  %2873 = vmatprep.subr.bf16.mxu0 %v6441_v23  ;;  %v6526_v22 = vld [vmem:[#allocation6 + $0x300] ss:$16 sps:$4 sm:$0xff]   ;;  %v453_v23 = vld [vmem:[%s8195_s6] sm:$0xf] }
 0x17f   :  { %2914 = vmatprep.subr.bf16.mxu1 %v6444_v24  ;;  %2903 = vmatprep.mubr.bf16.mxu0 %v7483_v25  ;;  %v1685_v24 = vld [vmem:[%s8194_s14] sm:$0xff] }
 0x180   :  { %2944 = vmatprep.mubr.bf16.mxu1 %v7485_v26 }
 0x181   :  { %2874 = vmatpush1.bf16.msra.mxu0 %v6439_v27  ;;  %v7501_v27 = vsub.s32 0, %v7492_v18 }
 0x182   :  { %2915 = vmatpush1.bf16.msra.mxu1 %v6442_v8  ;;  %2875 = vmatprep.subr.bf16.mxu0 %v6447_v28  ;;  %v1687_v8 = vld [vmem:[%s8194_s14 + $0x10] sm:$0xff]  ;;  %v6531_v28 = vld [vmem:[#allocation6 + $0x4e4] ss:$16 sps:$4 sm:$0xff]  }
 0x183   :  { %2916 = vmatprep.subr.bf16.mxu1 %v6450_v29  ;;  %v6534_v29 = vld [vmem:[#allocation6 + $0xec] ss:$16 sps:$4 sm:$0xff]  }
 0x185   :  { %2876 = vmatpush1.bf16.msra.mxu0 %v6445_v30  ;;  %v6529_v30 = vld [vmem:[#allocation6 + $0x4e0] ss:$16 sps:$4 sm:$0xff]  }
 0x186   :  { %2917 = vmatpush1.bf16.msra.mxu1 %v6448_v31  ;;  %2877 = vmatprep.subr.bf16.mxu0 %v6453_v52  ;;  %v7507_v31 = vsub.s32 1, %v7492_v18  ;;  %v7509_v52 = vpack.c.bf16 %v1685_v24, %v1685_v24  ;;  %v6586_v24 = vld [vmem:[#allocation6 + $0x1c8] ss:$16 sps:$4 sm:$0xff]  }
 0x187   :  { %2918 = vmatprep.subr.bf16.mxu1 %v6456_v9  ;;  %v7511_v9 = vpack.c.bf16 %v1687_v8, %v1687_v8  ;;  %v6591_v8 = vld [vmem:[#allocation6 + $0x5a4] ss:$16 sps:$4 sm:$0xff]  }
 0x189   :  { %2878 = vmatpush1.bf16.msra.mxu0 %v6451_v16  ;;  %v1690_v16 = vld [vmem:[%s8194_s14 + $0x28] sm:$0xff] }
 0x18a   :  { %2919 = vmatpush1.bf16.msra.mxu1 %v6454_v32  ;;  %2879 = vmatprep.subr.bf16.mxu0 %v6459_v33  ;;  %v458_v32 = vrot.slane %v453_v23, %v7501_v27  ;;  %v6532_v33 = vld [vmem:[#allocation6 + $0xe8] ss:$16 sps:$4 sm:$0xff]  }
 0x18b   :  { %2920 = vmatprep.subr.bf16.mxu1 %v6462_v34  ;;  %v6537_v34 = vld [vmem:[#allocation6 + $0x4c4] ss:$16 sps:$4 sm:$0xff]  }
 0x18d   :  { %2880 = vmatpush1.bf16.msra.mxu0 %v6457_v35  ;;  %v6540_v35 = vld [vmem:[#allocation6 + $0xcc] ss:$16 sps:$4 sm:$0xff]  }
 0x18e   :  { %2921 = vmatpush1.bf16.msra.mxu1 %v6460_v36  ;;  %2881 = vmatprep.subr.bf16.mxu0 %v6465_v37  ;;  %v462_v36 = vrot.slane %v453_v23, %v7507_v31  ;;  %v6535_v37 = vld [vmem:[#allocation6 + $0x4c0] ss:$16 sps:$4 sm:$0xff]  }
 0x18f   :  { %2922 = vmatprep.subr.bf16.mxu1 %v6468_v38  ;;  %v7518_v38 = vpack.c.bf16 %v1690_v16, %v1690_v16  ;;  %v6583_v23 = vld [vmem:[#allocation6 + $0x5c0] ss:$16 sps:$4 sm:$0xff]   ;;  %v6597_v16 = vld [vmem:[#allocation6 + $0x584] ss:$16 sps:$4 sm:$0xff]  }
 0x191   :  { %2882 = vmatpush1.bf16.msra.mxu0 %v6463_v39 }
 0x192   :  { %2923 = vmatpush1.bf16.msra.mxu1 %v6466_v40  ;;  %2883 = vmatprep.subr.bf16.mxu0 %v6471_v41  ;;  %v6538_v41 = vld [vmem:[#allocation6 + $0xc8] ss:$16 sps:$4 sm:$0xff]  }
 0x193   :  { %2924 = vmatprep.subr.bf16.mxu1 %v6474_v42 }
 0x195   :  { %2884 = vmatpush1.bf16.msra.mxu0 %v6469_v43  ;;  %v6543_v43 = vld [vmem:[#allocation6 + $0x4a4] ss:$16 sps:$4 sm:$0xff]  }
 0x196   :  { %2925 = vmatpush1.bf16.msra.mxu1 %v6472_v44  ;;  %2885 = vmatprep.subr.bf16.mxu0 %v6477_v45 }
 0x197   :  { %2926 = vmatprep.subr.bf16.mxu1 %v6480_v46  ;;  %v6546_v46 = vld [vmem:[#allocation6 + $0xac] ss:$16 sps:$4 sm:$0xff]  }
 0x199   :  { %2886 = vmatpush1.bf16.msra.mxu0 %v6475_v47 }
 0x19a   :  { %2927 = vmatpush1.bf16.msra.mxu1 %v6478_v48  ;;  %2887 = vmatprep.subr.bf16.mxu0 %v6483_v49  ;;  %v6541_v49 = vld [vmem:[#allocation6 + $0x4a0] ss:$16 sps:$4 sm:$0xff]  }
 0x19b   :  { %2928 = vmatprep.subr.bf16.mxu1 %v6486_v50 }
 0x19d   :  { %2888 = vmatpush2.bf16.msra.mxu0 %v6481_v51 }
 0x19e   :  { %2929 = vmatpush2.bf16.msra.mxu1 %v6484_v53  ;;  %2889 = vmatprep.subr.bf16.mxu0 %v6489_v54  ;;  %v6544_v53 = vld [vmem:[#allocation6 + $0xa8] ss:$16 sps:$4 sm:$0xff]  }
 0x19f   :  { %2930 = vmatprep.subr.bf16.mxu1 %v6492_v55  ;;  %v6549_v55 = vld [vmem:[#allocation6 + $0x484] ss:$16 sps:$4 sm:$0xff]  }
 0x1a1   :  { %2890 = vmatpush2.bf16.msra.mxu0 %v6487_v56 }
 0x1a2   :  { %2931 = vmatpush2.bf16.msra.mxu1 %v6490_v57  ;;  %2891 = vmatprep.subr.bf16.mxu0 %v6495_v58  ;;  %v6552_v58 = vld [vmem:[#allocation6 + $0x8c] ss:$16 sps:$4 sm:$0xff]  }
 0x1a3   :  { %2932 = vmatprep.subr.bf16.mxu1 %v6498_v59  ;;  %v6547_v59 = vld [vmem:[#allocation6 + $0x480] ss:$16 sps:$4 sm:$0xff]  }
 0x1a5   :  { %2892 = vmatpush2.bf16.msra.mxu0 %v6493_v60  ;;  %v6550_v60 = vld [vmem:[#allocation6 + $0x88] ss:$16 sps:$4 sm:$0xff]  }
 0x1a6   :  { %2933 = vmatpush2.bf16.msra.mxu1 %v6496_v61  ;;  %2893 = vmatprep.subr.bf16.mxu0 %v6501_v62  ;;  %v6555_v61 = vld [vmem:[#allocation6 + $0x464] ss:$16 sps:$4 sm:$0xff]   ;;  %v6553_v62 = vld [vmem:[#allocation6 + $0x460] ss:$16 sps:$4 sm:$0xff]  }
 0x1a7   :  { %2934 = vmatprep.subr.bf16.mxu1 %v6504_v63  ;;  %v6556_v63 = vld [vmem:[#allocation6 + $0x68] ss:$16 sps:$4 sm:$0xff]  }
 0x1a9   :  { %2894 = vmatpush2.bf16.msra.mxu0 %v6499_v0  ;;  %v6561_v0 = vld [vmem:[#allocation6 + $0x444] ss:$16 sps:$4 sm:$0xff]  }
 0x1aa   :  { %2935 = vmatpush2.bf16.msra.mxu1 %v6502_v1  ;;  %2895 = vmatprep.subr.bf16.mxu0 %v6507_v2  ;;  %v6564_v1 = vld [vmem:[#allocation6 + $0x4c] ss:$16 sps:$4 sm:$0xff]   ;;  %v6559_v2 = vld [vmem:[#allocation6 + $0x440] ss:$16 sps:$4 sm:$0xff]  }
 0x1ab   :  { %2936 = vmatprep.subr.bf16.mxu1 %v6510_v3  ;;  %v6562_v3 = vld [vmem:[#allocation6 + $0x48] ss:$16 sps:$4 sm:$0xff]  }
 0x1ad   :  { %2896 = vmatpush2.bf16.msra.mxu0 %v6505_v4  ;;  %v6567_v4 = vld [vmem:[#allocation6 + $0x424] ss:$16 sps:$4 sm:$0xff]  }
 0x1ae   :  { %2937 = vmatpush2.bf16.msra.mxu1 %v6508_v5  ;;  %2897 = vmatprep.subr.bf16.mxu0 %v6513_v6  ;;  %v6570_v5 = vld [vmem:[#allocation6 + $0x2c] ss:$16 sps:$4 sm:$0xff]   ;;  %v6565_v6 = vld [vmem:[#allocation6 + $0x420] ss:$16 sps:$4 sm:$0xff]  }
 0x1af   :  { %2938 = vmatprep.subr.bf16.mxu1 %v6516_v7  ;;  %v6568_v7 = vld [vmem:[#allocation6 + $0x28] ss:$16 sps:$4 sm:$0xff]  }
 0x1b1   :  { %2898 = vmatpush2.bf16.msra.mxu0 %v6511_v10  ;;  %v6573_v10 = vld [vmem:[#allocation6 + $0x404] ss:$16 sps:$4 sm:$0xff]  }
 0x1b2   :  { %2939 = vmatpush2.bf16.msra.mxu1 %v6514_v11  ;;  %2899 = vmatprep.subr.bf16.mxu0 %v6519_v13  ;;  %v6576_v11 = vld [vmem:[#allocation6 + $0xc] ss:$16 sps:$4 sm:$0xff]   ;;  %v6571_v13 = vld [vmem:[#allocation6 + $0x400] ss:$16 sps:$4 sm:$0xff]  }
 0x1b3   :  { %2940 = vmatprep.subr.bf16.mxu1 %v6522_v14  ;;  %v6574_v14 = vld [vmem:[#allocation6 + $0x8] ss:$16 sps:$4 sm:$0xff]  }
 0x1b5   :  { %2900 = vmatpush2.bf16.msra.mxu0 %v6517_v15  ;;  %v6579_v15 = vld [vmem:[#allocation6 + $0x5e4] ss:$16 sps:$4 sm:$0xff]  }
 0x1b6   :  { %2941 = vmatpush2.bf16.msra.mxu1 %v6520_v17  ;;  %2901 = vmatprep.subr.bf16.mxu0 %v6525_v19  ;;  %v6582_v17 = vld [vmem:[#allocation6 + $0x1ec] ss:$16 sps:$4 sm:$0xff]   ;;  %v6577_v19 = vld [vmem:[#allocation6 + $0x5e0] ss:$16 sps:$4 sm:$0xff]  }
 0x1b7   :  { %2942 = vmatprep.subr.bf16.mxu1 %v6528_v20  ;;  %v6580_v20 = vld [vmem:[#allocation6 + $0x1e8] ss:$16 sps:$4 sm:$0xff]  }
 0x1b9   :  { %2902 = vmatpush2.bf16.msra.mxu0 %v6523_v21  ;;  %v6585_v21 = vld [vmem:[#allocation6 + $0x5c4] ss:$16 sps:$4 sm:$0xff]  }
 0x1ba   :  { %2943 = vmatpush2.bf16.msra.mxu1 %v6526_v22  ;;  %2953 = vmatprep.subr.bf16.mxu0 %v6531_v28  ;;  %v6588_v22 = vld [vmem:[#allocation6 + $0x1cc] ss:$16 sps:$4 sm:$0xff]  }
 0x1bb   :  { %2994 = vmatprep.subr.bf16.mxu1 %v6534_v29  ;;  %v6594_v28 = vld [vmem:[#allocation6 + $0x1ac] ss:$16 sps:$4 sm:$0xff]   ;;  %v6589_v29 = vld [vmem:[#allocation6 + $0x5a0] ss:$16 sps:$4 sm:$0xff]  }
 0x1bc   :  { %v1469_v39 = vpop.f32.mrf.mxu0  ;;  %2904 = vmatmul.mubr.bf16.vlgmr.msra.gmra.mxu0 %v7509_v52 }
 0x1bd   :  { %v1510_v40 = vpop.f32.mrf.mxu1  ;;  %2945 = vmatmul.mubr.bf16.vlgmr.msra.gmra.mxu1 %v7511_v9  ;;  %v1470_v42 = vadd.f32 %v1469_v39, %v458_v32  ;;  %2954 = vmatpush1.bf16.msra.mxu0 %v6529_v30  ;;  %v6592_v30 = vld [vmem:[#allocation6 + $0x1a8] ss:$16 sps:$4 sm:$0xff]   ;;  %v6600_v32 = vld [vmem:[#allocation6 + $0x18c] ss:$16 sps:$4 sm:$0xff]  }
 0x1be   :  { %2995 = vmatpush1.bf16.msra.mxu1 %v6532_v33  ;;  %v1471_v44 = vpop.f32.mrf.mxu0  ;;  %2955 = vmatprep.subr.bf16.mxu0 %v6537_v34  ;;  %v6595_v33 = vld [vmem:[#allocation6 + $0x580] ss:$16 sps:$4 sm:$0xff]   ;;  %v6598_v34 = vld [vmem:[#allocation6 + $0x188] ss:$16 sps:$4 sm:$0xff]  }
 0x1bf   :  { %v1512_v45 = vpop.f32.mrf.mxu1  ;;  %2996 = vmatprep.subr.bf16.mxu1 %v6540_v35  ;;  %v7522_v47 = vadd.f32 %v1510_v40, %v1470_v42  ;;  %v1472_v48 = vadd.f32 %v1471_v44, %v462_v36  ;;  %2985 = vmatprep.mubr.bf16.mxu0 %v7518_v38  ;;  %v6603_v35 = vld [vmem:[#allocation6 + $0x564] ss:$16 sps:$4 sm:$0xff]   ;;  %v6606_v36 = vld [vmem:[#allocation6 + $0x16c] ss:$16 sps:$4 sm:$0xff]   ;;  %v6604_v39 = vld [vmem:[#allocation6 + $0x168] ss:$16 sps:$4 sm:$0xff]  }
 0x1c0   :  { %3026 = vmatprep.mubr.bf16.mxu1 %v7483_v25  ;;  %v1473_v50 = vpop.f32.mrf.mxu0  ;;  %v6558_v25 = vld [vmem:[#allocation6 + $0x6c] ss:$16 sps:$4 sm:$0xff]   ;;  %v6609_v40 = vld [vmem:[#allocation6 + $0x544] ss:$16 sps:$4 sm:$0xff]   ;;  %v6607_v42 = vld [vmem:[#allocation6 + $0x540] ss:$16 sps:$4 sm:$0xff]  }
 0x1c1   :  { %v1514_v51 = vpop.f32.mrf.mxu1  ;;  %v7526_v54 = vadd.f32 %v1512_v45, %v1472_v48  ;;  %2956 = vmatpush1.bf16.msra.mxu0 %v6535_v37  ;;  %v6601_v37 = vld [vmem:[#allocation6 + $0x560] ss:$16 sps:$4 sm:$0xff]   ;;  %v6615_v44 = vld [vmem:[#allocation6 + $0x524] ss:$16 sps:$4 sm:$0xff]   ;;  %v6618_v45 = vld [vmem:[#allocation6 + $0x12c] ss:$16 sps:$4 sm:$0xff]  }
 0x1c2   :  { %2997 = vmatpush1.bf16.msra.mxu1 %v6538_v41  ;;  %v1474_v56 = vpop.f32.mrf.mxu0  ;;  %2957 = vmatprep.subr.bf16.mxu0 %v6543_v43  ;;  %v6612_v41 = vld [vmem:[#allocation6 + $0x14c] ss:$16 sps:$4 sm:$0xff]   ;;  %v6610_v43 = vld [vmem:[#allocation6 + $0x148] ss:$16 sps:$4 sm:$0xff]   ;;  %v6619_v51 = vld [vmem:[#allocation6 + $0x500] ss:$16 sps:$4 sm:$0xff]  }
 0x1c3   :  { %v1515_v57 = vpop.f32.mrf.mxu1  ;;  %2998 = vmatprep.subr.bf16.mxu1 %v6546_v46  ;;  %v6613_v46 = vld [vmem:[#allocation6 + $0x520] ss:$16 sps:$4 sm:$0xff]   ;;  %v6616_v48 = vld [vmem:[#allocation6 + $0x128] ss:$16 sps:$4 sm:$0xff]   ;;  %v6624_v50 = vld [vmem:[#allocation6 + $0x10c] ss:$16 sps:$4 sm:$0xff]  }
 0x1c4   :  { %v6627_v56 = vld [vmem:[#allocation6 + $0x2ec] ss:$16 sps:$4 sm:$0xff]  }
 0x1c5   :  { %2958 = vmatpush1.bf16.msra.mxu0 %v6541_v49  ;;  %v6621_v49 = vld [vmem:[#allocation6 + $0x504] ss:$16 sps:$4 sm:$0xff]   ;;  %v6630_v57 = vld [vmem:[#allocation6 + $0x4ec] ss:$16 sps:$4 sm:$0xff]  }
 0x1c6   :  { %2999 = vmatpush1.bf16.msra.mxu1 %v6544_v53  ;;  %2959 = vmatprep.subr.bf16.mxu0 %v6549_v55  ;;  %v6622_v53 = vld [vmem:[#allocation6 + $0x108] ss:$16 sps:$4 sm:$0xff]  }
 0x1c7   :  { %3000 = vmatprep.subr.bf16.mxu1 %v6552_v58  ;;  %v1689_v55 = vld [vmem:[%s8194_s14 + $0x20] sm:$0xff] }
 0x1c8   :  { %v6625_v58 = vld [vmem:[#allocation6 + $0x2e8] ss:$16 sps:$4 sm:$0xff]  }
 0x1c9   :  { %2960 = vmatpush1.bf16.msra.mxu0 %v6547_v59  ;;  %v6628_v59 = vld [vmem:[#allocation6 + $0x4e8] ss:$16 sps:$4 sm:$0xff]  }
 0x1ca   :  { %3001 = vmatpush1.bf16.msra.mxu1 %v6550_v60  ;;  %2961 = vmatprep.subr.bf16.mxu0 %v6555_v61  ;;  %v7531_v60 = vpack.c.bf16 %v1689_v55, %v1689_v55  ;;  %v6633_v61 = vld [vmem:[#allocation6 + $0x2cc] ss:$16 sps:$4 sm:$0xff]   ;;  %v6694_v55 = vld [vmem:[#allocation6 + $0x588] ss:$16 sps:$4 sm:$0xff]  }
 0x1cb   :  { %3002 = vmatprep.subr.bf16.mxu1 %v6558_v25  ;;  %v6636_v25 = vld [vmem:[#allocation6 + $0x4cc] ss:$16 sps:$4 sm:$0xff]  }
 0x1cd   :  { %2962 = vmatpush1.bf16.msra.mxu0 %v6553_v62  ;;  %v6631_v62 = vld [vmem:[#allocation6 + $0x2c8] ss:$16 sps:$4 sm:$0xff]  }
 0x1ce   :  { %3003 = vmatpush1.bf16.msra.mxu1 %v6556_v63  ;;  %2963 = vmatprep.subr.bf16.mxu0 %v6561_v0  ;;  %v6634_v63 = vld [vmem:[#allocation6 + $0x4c8] ss:$16 sps:$4 sm:$0xff]  }
 0x1cf   :  { %3004 = vmatprep.subr.bf16.mxu1 %v6564_v1 }
 0x1d1   :  { %2964 = vmatpush1.bf16.msra.mxu0 %v6559_v2  ;;  %v6639_v2 = vld [vmem:[#allocation6 + $0x2ac] ss:$16 sps:$4 sm:$0xff]  }
 0x1d2   :  { %3005 = vmatpush1.bf16.msra.mxu1 %v6562_v3  ;;  %2965 = vmatprep.subr.bf16.mxu0 %v6567_v4  ;;  %v6642_v3 = vld [vmem:[#allocation6 + $0x4ac] ss:$16 sps:$4 sm:$0xff]  }
 0x1d3   :  { %3006 = vmatprep.subr.bf16.mxu1 %v6570_v5 }
 0x1d5   :  { %2966 = vmatpush1.bf16.msra.mxu0 %v6565_v6 }
 0x1d6   :  { %3007 = vmatpush1.bf16.msra.mxu1 %v6568_v7  ;;  %2967 = vmatprep.subr.bf16.mxu0 %v6573_v10  ;;  %v6637_v7 = vld [vmem:[#allocation6 + $0x2a8] ss:$16 sps:$4 sm:$0xff]  }
 0x1d7   :  { %3008 = vmatprep.subr.bf16.mxu1 %v6576_v11  ;;  %v6640_v10 = vld [vmem:[#allocation6 + $0x4a8] ss:$16 sps:$4 sm:$0xff]  }
 0x1d9   :  { %2968 = vmatpush1.bf16.msra.mxu0 %v6571_v13 }
 0x1da   :  { %3009 = vmatpush1.bf16.msra.mxu1 %v6574_v14  ;;  %2969 = vmatprep.subr.bf16.mxu0 %v6579_v15  ;;  %v6645_v14 = vld [vmem:[#allocation6 + $0x28c] ss:$16 sps:$4 sm:$0xff]  }
 0x1db   :  { %3010 = vmatprep.subr.bf16.mxu1 %v6582_v17  ;;  %v6648_v15 = vld [vmem:[#allocation6 + $0x48c] ss:$16 sps:$4 sm:$0xff]   ;;  %v6643_v17 = vld [vmem:[#allocation6 + $0x288] ss:$16 sps:$4 sm:$0xff]  }
 0x1dd   :  { %2970 = vmatpush2.bf16.msra.mxu0 %v6577_v19  ;;  %v6646_v19 = vld [vmem:[#allocation6 + $0x488] ss:$16 sps:$4 sm:$0xff]  }
 0x1de   :  { %3011 = vmatpush2.bf16.msra.mxu1 %v6580_v20  ;;  %2971 = vmatprep.subr.bf16.mxu0 %v6585_v21  ;;  %v6651_v20 = vld [vmem:[#allocation6 + $0x26c] ss:$16 sps:$4 sm:$0xff]  }
 0x1df   :  { %3012 = vmatprep.subr.bf16.mxu1 %v6588_v22  ;;  %v6654_v21 = vld [vmem:[#allocation6 + $0x46c] ss:$16 sps:$4 sm:$0xff]  }
 0x1e0   :  { %v6657_v22 = vld [vmem:[#allocation6 + $0x24c] ss:$16 sps:$4 sm:$0xff]  }
 0x1e1   :  { %2972 = vmatpush2.bf16.msra.mxu0 %v6583_v23  ;;  %v6660_v23 = vld [vmem:[#allocation6 + $0x44c] ss:$16 sps:$4 sm:$0xff]  }
 0x1e2   :  { %3013 = vmatpush2.bf16.msra.mxu1 %v6586_v24  ;;  %2973 = vmatprep.subr.bf16.mxu0 %v6591_v8  ;;  %v6655_v24 = vld [vmem:[#allocation6 + $0x248] ss:$16 sps:$4 sm:$0xff]  }
 0x1e3   :  { %3014 = vmatprep.subr.bf16.mxu1 %v6594_v28  ;;  %v6658_v8 = vld [vmem:[#allocation6 + $0x448] ss:$16 sps:$4 sm:$0xff]   ;;  %v6663_v28 = vld [vmem:[#allocation6 + $0x22c] ss:$16 sps:$4 sm:$0xff]  }
 0x1e5   :  { %2974 = vmatpush2.bf16.msra.mxu0 %v6589_v29  ;;  %v6666_v29 = vld [vmem:[#allocation6 + $0x42c] ss:$16 sps:$4 sm:$0xff]  }
 0x1e6   :  { %3015 = vmatpush2.bf16.msra.mxu1 %v6592_v30  ;;  %2975 = vmatprep.subr.bf16.mxu0 %v6597_v16  ;;  %v6661_v30 = vld [vmem:[#allocation6 + $0x228] ss:$16 sps:$4 sm:$0xff]  }
 0x1e7   :  { %3016 = vmatprep.subr.bf16.mxu1 %v6600_v32  ;;  %v6664_v16 = vld [vmem:[#allocation6 + $0x428] ss:$16 sps:$4 sm:$0xff]   ;;  %v6669_v32 = vld [vmem:[#allocation6 + $0x20c] ss:$16 sps:$4 sm:$0xff]  }
 0x1e9   :  { %2976 = vmatpush2.bf16.msra.mxu0 %v6595_v33  ;;  %v6672_v33 = vld [vmem:[#allocation6 + $0x40c] ss:$16 sps:$4 sm:$0xff]  }
 0x1ea   :  { %3017 = vmatpush2.bf16.msra.mxu1 %v6598_v34  ;;  %2977 = vmatprep.subr.bf16.mxu0 %v6603_v35  ;;  %v6667_v34 = vld [vmem:[#allocation6 + $0x208] ss:$16 sps:$4 sm:$0xff]  }
 0x1eb   :  { %3018 = vmatprep.subr.bf16.mxu1 %v6606_v36  ;;  %v6670_v35 = vld [vmem:[#allocation6 + $0x408] ss:$16 sps:$4 sm:$0xff]   ;;  %v6675_v36 = vld [vmem:[#allocation6 + $0x3ec] ss:$16 sps:$4 sm:$0xff]  }
 0x1ed   :  { %2978 = vmatpush2.bf16.msra.mxu0 %v6601_v37  ;;  %v6678_v37 = vld [vmem:[#allocation6 + $0x5ec] ss:$16 sps:$4 sm:$0xff]  }
 0x1ee   :  { %3019 = vmatpush2.bf16.msra.mxu1 %v6604_v39  ;;  %2979 = vmatprep.subr.bf16.mxu0 %v6609_v40  ;;  %v6673_v39 = vld [vmem:[#allocation6 + $0x3e8] ss:$16 sps:$4 sm:$0xff]  }
 0x1ef   :  { %3020 = vmatprep.subr.bf16.mxu1 %v6612_v41  ;;  %v6676_v40 = vld [vmem:[#allocation6 + $0x5e8] ss:$16 sps:$4 sm:$0xff]   ;;  %v6681_v41 = vld [vmem:[#allocation6 + $0x3cc] ss:$16 sps:$4 sm:$0xff]  }
 0x1f1   :  { %2980 = vmatpush2.bf16.msra.mxu0 %v6607_v42  ;;  %v6684_v42 = vld [vmem:[#allocation6 + $0x5cc] ss:$16 sps:$4 sm:$0xff]  }
 0x1f2   :  { %3021 = vmatpush2.bf16.msra.mxu1 %v6610_v43  ;;  %2981 = vmatprep.subr.bf16.mxu0 %v6615_v44  ;;  %v6679_v43 = vld [vmem:[#allocation6 + $0x3c8] ss:$16 sps:$4 sm:$0xff]  }
 0x1f3   :  { %3022 = vmatprep.subr.bf16.mxu1 %v6618_v45  ;;  %v6682_v44 = vld [vmem:[#allocation6 + $0x5c8] ss:$16 sps:$4 sm:$0xff]   ;;  %v6687_v45 = vld [vmem:[#allocation6 + $0x3ac] ss:$16 sps:$4 sm:$0xff]  }
 0x1f5   :  { %2982 = vmatpush2.bf16.msra.mxu0 %v6613_v46  ;;  %v6690_v46 = vld [vmem:[#allocation6 + $0x5ac] ss:$16 sps:$4 sm:$0xff]  }
 0x1f6   :  { %3023 = vmatpush2.bf16.msra.mxu1 %v6616_v48  ;;  %2983 = vmatprep.subr.bf16.mxu0 %v6621_v49  ;;  %v6685_v48 = vld [vmem:[#allocation6 + $0x3a8] ss:$16 sps:$4 sm:$0xff]  }
 0x1f7   :  { %3024 = vmatprep.subr.bf16.mxu1 %v6624_v50  ;;  %v6688_v49 = vld [vmem:[#allocation6 + $0x5a8] ss:$16 sps:$4 sm:$0xff]   ;;  %v6693_v50 = vld [vmem:[#allocation6 + $0x38c] ss:$16 sps:$4 sm:$0xff]  }
 0x1f9   :  { %2984 = vmatpush2.bf16.msra.mxu0 %v6619_v51  ;;  %v6696_v51 = vld [vmem:[#allocation6 + $0x58c] ss:$16 sps:$4 sm:$0xff]  }
 0x1fa   :  { %3025 = vmatpush2.bf16.msra.mxu1 %v6622_v53  ;;  %3035 = vmatprep.subr.bf16.mxu0 %v6627_v56  ;;  %v6691_v53 = vld [vmem:[#allocation6 + $0x388] ss:$16 sps:$4 sm:$0xff]   ;;  %v6699_v56 = vld [vmem:[#allocation6 + $0x36c] ss:$16 sps:$4 sm:$0xff]  }
 0x1fb   :  { %3076 = vmatprep.subr.bf16.mxu1 %v6630_v57  ;;  %v6702_v57 = vld [vmem:[#allocation6 + $0x56c] ss:$16 sps:$4 sm:$0xff]  }
 0x1fc   :  { %v1551_v0 = vpop.f32.mrf.mxu0  ;;  %2986 = vmatmul.mubr.bf16.vlgmr.msra.gmra.mxu0 %v7531_v60 }
 0x1fd   :  { %v7533_v1 = vpop.f32.mrf.mxu1  ;;  %3027 = vmatmul.mubr.bf16.vlgmr.msra.gmra.mxu1 %v7509_v52  ;;  %v7538_v4 = vadd.f32 %v1551_v0, %v7522_v47  ;;  %3036 = vmatpush1.bf16.msra.mxu0 %v6625_v58  ;;  %v6697_v58 = vld [vmem:[#allocation6 + $0x368] ss:$16 sps:$4 sm:$0xff]   ;;  %v6711_v0 = vld [vmem:[#allocation6 + $0x32c] ss:$16 sps:$4 sm:$0xff]  }
 0x1fe   :  { %3077 = vmatpush1.bf16.msra.mxu1 %v6628_v59  ;;  %v7540_v5 = vpop.f32.mrf.mxu0  ;;  %3037 = vmatprep.subr.bf16.mxu0 %v6633_v61  ;;  %v6700_v59 = vld [vmem:[#allocation6 + $0x568] ss:$16 sps:$4 sm:$0xff]   ;;  %v6705_v61 = vld [vmem:[#allocation6 + $0x34c] ss:$16 sps:$4 sm:$0xff]  }
 0x1ff   :  { %v7542_v6 = vpop.f32.mrf.mxu1  ;;  %3078 = vmatprep.subr.bf16.mxu1 %v6636_v25  ;;  %3067 = vmatprep.mubr.bf16.mxu0 %v7485_v26  ;;  %v6649_v26 = vld [vmem:[#allocation6 + $0x268] ss:$16 sps:$4 sm:$0xff]   ;;  %v6708_v25 = vld [vmem:[#allocation6 + $0x54c] ss:$16 sps:$4 sm:$0xff]  }
 0x200   :  { %3108 = vmatprep.mubr.bf16.mxu1 %v7518_v38  ;;  %v1555_v52 = vpop.f32.mrf.mxu0  ;;  %v6652_v38 = vld [vmem:[#allocation6 + $0x468] ss:$16 sps:$4 sm:$0xff]  }
 0x201   :  { %v1596_v11 = vpop.f32.mrf.mxu1  ;;  %3038 = vmatpush1.bf16.msra.mxu0 %v6631_v62  ;;  %v6703_v62 = vld [vmem:[#allocation6 + $0x348] ss:$16 sps:$4 sm:$0xff]   ;;  %v6720_v52 = vld [vmem:[#allocation6 + $0x50c] ss:$16 sps:$4 sm:$0xff]  }
 0x202   :  { %3079 = vmatpush1.bf16.msra.mxu1 %v6634_v63  ;;  %v1556_v47 = vpop.f32.mrf.mxu0  ;;  %3039 = vmatprep.subr.bf16.mxu0 %v6639_v2  ;;  %v6706_v63 = vld [vmem:[#allocation6 + $0x548] ss:$16 sps:$4 sm:$0xff]   ;;  %v6714_v2 = vld [vmem:[#allocation6 + $0x52c] ss:$16 sps:$4 sm:$0xff]   ;;  %v1554_v11 = vadd.f32 %v7540_v5, %v7526_v54 }
 0x203   :  { %v1597_v13 = vpop.f32.mrf.mxu1  ;;  %3080 = vmatprep.subr.bf16.mxu1 %v6642_v3  ;;  %v6709_v3 = vld [vmem:[#allocation6 + $0x328] ss:$16 sps:$4 sm:$0xff]   ;;  %v469_v47 = vsub.s32 3, %v7492_v18 }
 0x204   :  { %v6715_v13 = vld [vmem:[#allocation6 + $0x308] ss:$16 sps:$4 sm:$0xff]  }
 0x205   :  { %3040 = vmatpush1.bf16.msra.mxu0 %v6637_v7  ;;  %v6712_v7 = vld [vmem:[#allocation6 + $0x528] ss:$16 sps:$4 sm:$0xff]  }
 0x206   :  { %3081 = vmatpush1.bf16.msra.mxu1 %v6640_v10  ;;  %3041 = vmatprep.subr.bf16.mxu0 %v6645_v14  ;;  %v6717_v10 = vld [vmem:[#allocation6 + $0x30c] ss:$16 sps:$4 sm:$0xff]   ;;  %v6718_v14 = vld [vmem:[#allocation6 + $0x508] ss:$16 sps:$4 sm:$0xff]  }
 0x207   :  { %3082 = vmatprep.subr.bf16.mxu1 %v6648_v15  ;;  %v6721_v15 = vld [vmem:[%s8196_s24 + $0x78] sm:$0xff]   ;;  %v7558_v54 = vld [vmem:[%s8195_s6] sm:$0xf] }
 0x208   :  { %v470_v5 = vrot.slane %v7558_v54, %v469_v47 }
 0x209   :  { %3042 = vmatpush1.bf16.msra.mxu0 %v6643_v17  ;;  %v6722_v17 = vld [vmem:[%s8196_s24 + $0xf8] sm:$0xff]  }
 0x20a   :  { %3083 = vmatpush1.bf16.msra.mxu1 %v6646_v19  ;;  %3043 = vmatprep.subr.bf16.mxu0 %v6651_v20  ;;  %v1682_v19 = vmax.f32 %v1554_v11, 0.0  ;;  %v6723_v20 = vld [vmem:[%s8196_s24 + $0x38] sm:$0xff]  }
 0x20b   :  { %3084 = vmatprep.subr.bf16.mxu1 %v6654_v21  ;;  %v6724_v21 = vld [vmem:[%s8196_s24 + $0xb8] sm:$0xff]  }
 0x20c   :  { %v6753_v11 = vld [vmem:[%s8159_s8 + $0x78] sm:$0xff]  }
 0x20d   :  { %3044 = vmatpush1.bf16.msra.mxu0 %v6649_v26  ;;  %v6725_v26 = vld [vmem:[%s8196_s24 + $0x70] sm:$0xff]  }
 0x20e   :  { %3085 = vmatpush1.bf16.msra.mxu1 %v6652_v38  ;;  %3045 = vmatprep.subr.bf16.mxu0 %v6657_v22  ;;  %v3122_v38 = vpack.c.bf16 %v1682_v19, %v1682_v19  ;;  %v6726_v22 = vld [vmem:[%s8196_s24 + $0xf0] sm:$0xff]   ;;  %v6770_v19 = vld [vmem:[%s8159_s8 + $0xb8] sm:$0xff]  }
 0x20f   :  { %3086 = vmatprep.subr.bf16.mxu1 %v6660_v23 }
 0x211   :  { %3046 = vmatpush1.bf16.msra.mxu0 %v6655_v24 }
 0x212   :  { %3087 = vmatpush1.bf16.msra.mxu1 %v6658_v8  ;;  %3047 = vmatprep.subr.bf16.mxu0 %v6663_v28  ;;  %v1595_v8 = vadd.f32 %v7542_v6, %v470_v5  ;;  %v6727_v28 = vld [vmem:[%s8196_s24 + $0x30] sm:$0xff]   ;;  %v6730_v6 = vld [vmem:[%s8196_s24 + $0xe8] sm:$0xff]  }
 0x213   :  { %3088 = vmatprep.subr.bf16.mxu1 %v6666_v29  ;;  %v6771_v5 = vld [vmem:[%s8159_s8 + $0xf0] sm:$0xff]  }
 0x215   :  { %3048 = vmatpush1.bf16.msra.mxu0 %v6661_v30 }
 0x216   :  { %3089 = vmatpush1.bf16.msra.mxu1 %v6664_v16  ;;  %3049 = vmatprep.subr.bf16.mxu0 %v6669_v32  ;;  %v6728_v16 = vld [vmem:[%s8196_s24 + $0xb0] sm:$0xff]  }
 0x217   :  { %3090 = vmatprep.subr.bf16.mxu1 %v6672_v33 }
 0x219   :  { %3050 = vmatpush1.bf16.msra.mxu0 %v6667_v34 }
 0x21a   :  { %3091 = vmatpush1.bf16.msra.mxu1 %v6670_v35  ;;  %3051 = vmatprep.subr.bf16.mxu0 %v6675_v36  ;;  %v6731_v35 = vld [vmem:[%s8196_s24 + $0x28] sm:$0xff]  }
 0x21b   :  { %3092 = vmatprep.subr.bf16.mxu1 %v6678_v37 }
 0x21d   :  { %3052 = vmatpush2.bf16.msra.mxu0 %v6673_v39  ;;  %v6732_v39 = vld [vmem:[%s8196_s24 + $0xa8] sm:$0xff]  }
 0x21e   :  { %3093 = vmatpush2.bf16.msra.mxu1 %v6676_v40  ;;  %3053 = vmatprep.subr.bf16.mxu0 %v6681_v41  ;;  %v6733_v40 = vld [vmem:[%s8196_s24 + $0x60] sm:$0xff]  }
 0x21f   :  { %3094 = vmatprep.subr.bf16.mxu1 %v6684_v42  ;;  %v6734_v42 = vld [vmem:[%s8196_s24 + $0xe0] sm:$0xff]  }
 0x221   :  { %3054 = vmatpush2.bf16.msra.mxu0 %v6679_v43  ;;  %v7605_v43 = vsub.s32 2, %v7492_v18  ;;  %v6785_v18 = vld [vmem:[%s8161_s10 + $0x38] sm:$0xff]  }
 0x222   :  { %3095 = vmatpush2.bf16.msra.mxu1 %v6682_v44  ;;  %3055 = vmatprep.subr.bf16.mxu0 %v6687_v45  ;;  %v6735_v45 = vld [vmem:[%s8196_s24 + $0x20] sm:$0xff]  }
 0x223   :  { %3096 = vmatprep.subr.bf16.mxu1 %v6690_v46  ;;  %v6736_v46 = vld [vmem:[%s8196_s24 + $0xa0] sm:$0xff]  }
 0x225   :  { %3056 = vmatpush2.bf16.msra.mxu0 %v6685_v48  ;;  %v6737_v48 = vld [vmem:[%s8196_s24 + $0x58] sm:$0xff]  }
 0x226   :  { %3097 = vmatpush2.bf16.msra.mxu1 %v6688_v49  ;;  %3057 = vmatprep.subr.bf16.mxu0 %v6693_v50  ;;  %v6738_v49 = vld [vmem:[%s8196_s24 + $0xd8] sm:$0xff]   ;;  %v466_v50 = vrot.slane %v7558_v54, %v7605_v43 }
 0x227   :  { %3098 = vmatprep.subr.bf16.mxu1 %v6696_v51  ;;  %v6739_v51 = vld [vmem:[%s8196_s24 + $0x18] sm:$0xff]  }
 0x229   :  { %3058 = vmatpush2.bf16.msra.mxu0 %v6691_v53  ;;  %v6740_v53 = vld [vmem:[%s8196_s24 + $0x98] sm:$0xff]  }
 0x22a   :  { %3099 = vmatpush2.bf16.msra.mxu1 %v6694_v55  ;;  %3059 = vmatprep.subr.bf16.mxu0 %v6699_v56  ;;  %v6741_v55 = vld [vmem:[%s8196_s24 + $0x50] sm:$0xff]  }
 0x22b   :  { %3100 = vmatprep.subr.bf16.mxu1 %v6702_v57  ;;  %v6742_v56 = vld [vmem:[%s8196_s24 + $0xd0] sm:$0xff]   ;;  %v1593_v57 = vadd.f32 %v7533_v1, %v466_v50  ;;  %v6746_v1 = vld [vmem:[%s8196_s24 + $0xc8] sm:$0xff]  }
 0x22d   :  { %3060 = vmatpush2.bf16.msra.mxu0 %v6697_v58  ;;  %v6743_v58 = vld [vmem:[%s8196_s24 + $0x10] sm:$0xff]  }
 0x22e   :  { %3101 = vmatpush2.bf16.msra.mxu1 %v6700_v59  ;;  %3061 = vmatprep.subr.bf16.mxu0 %v6705_v61  ;;  %v6744_v59 = vld [vmem:[%s8196_s24 + $0x90] sm:$0xff]   ;;  %v6745_v61 = vld [vmem:[%s8196_s24 + $0x48] sm:$0xff]  }
 0x22f   :  { %3102 = vmatprep.subr.bf16.mxu1 %v6708_v25 }
 0x231   :  { %3062 = vmatpush2.bf16.msra.mxu0 %v6703_v62  ;;  %v6747_v62 = vld [vmem:[%s8196_s24 + $0x8] sm:$0xff]  }
 0x232   :  { %3103 = vmatpush2.bf16.msra.mxu1 %v6706_v63  ;;  %3063 = vmatprep.subr.bf16.mxu0 %v6711_v0  ;;  %v6748_v63 = vld [vmem:[%s8196_s24 + $0x88] sm:$0xff]   ;;  %v6749_v0 = vld [vmem:[%s8196_s24 + $0x40] sm:$0xff]  }
 0x233   :  { %3104 = vmatprep.subr.bf16.mxu1 %v6714_v2 }
 0x235   :  { %3064 = vmatpush2.bf16.msra.mxu0 %v6709_v3  ;;  %v6750_v3 = vld [vmem:[%s8196_s24 + $0xc0] sm:$0xff]  }
 0x236   :  { %3105 = vmatpush2.bf16.msra.mxu1 %v6712_v7  ;;  %3065 = vmatprep.subr.bf16.mxu0 %v6717_v10  ;;  %v6751_v7 = vld [vmem:[%s8196_s24] sm:$0xff]   ;;  %v1681_v10 = vmax.f32 %v7538_v4, 0.0  ;;  %v6754_v4 = vld [vmem:[%s8159_s8 + $0x38] sm:$0xff]  }
 0x237   :  { %3106 = vmatprep.subr.bf16.mxu1 %v6720_v52  ;;  %v6752_v52 = vld [vmem:[%s8196_s24 + $0x80] sm:$0xff]  }
 0x239   :  { %3066 = vmatpush2.bf16.msra.mxu0 %v6715_v13 }
 0x23a   :  { %3107 = vmatpush2.bf16.msra.mxu1 %v6718_v14  ;;  %5769 = vmatprep.subr.bf16.mxu0 %v6721_v15  ;;  %v6769_v14 = vld [vmem:[%s8159_s8 + $0xf8] sm:$0xff]   ;;  %v3121_v15 = vpack.c.bf16 %v1681_v10, %v1681_v10 }
 0x23b   :  { %5791 = vmatprep.subr.bf16.mxu1 %v6722_v17  ;;  %v6755_v17 = vld [vmem:[%s8159_s8 + $0x70] sm:$0xff]  }
 0x23c   :  { %v1633_v23 = vpop.f32.mrf.mxu0  ;;  %3068 = vmatmul.mubr.bf16.vlgmr.msra.gmra.mxu0 %v7511_v9  ;;  %v6729_v9 = vld [vmem:[%s8196_s24 + $0x68] sm:$0xff]  }
 0x23d   :  { %v7575_v24 = vpop.f32.mrf.mxu1  ;;  %3109 = vmatmul.mubr.bf16.vlgmr.msra.gmra.mxu1 %v7531_v60  ;;  %5770 = vmatpush3.bf16.msra.mxu0 %v6723_v20  ;;  %v1634_v25 = vadd.f32 %v1633_v23, %v1593_v57  ;;  %v6756_v20 = vld [vmem:[%s8159_s8 + $0x30] sm:$0xff]   ;;  %v6759_v23 = vld [vmem:[%s8159_s8 + $0x60] sm:$0xff]   ;;  %v1889_v57 = vld [vmem:[#allocation8] sm:$0xf] }
 0x23e   :  { %3420 = vmatprep.mubr.bf16.mxu0 %v3122_v38  ;;  %5792 = vmatpush3.bf16.msra.mxu1 %v6724_v21  ;;  %v1635_v29 = vpop.f32.mrf.mxu0  ;;  %v6757_v21 = vld [vmem:[%s8159_s8 + $0x68] sm:$0xff]  }
 0x23f   :  { %v1676_v30 = vpop.f32.mrf.mxu1  ;;  %5771 = vmatprep.subr.bf16.mxu0 %v6725_v26  ;;  %v1636_v60 = vadd.f32 %v1635_v29, %v1595_v8  ;;  %5793 = vmatprep.subr.bf16.mxu1 %v6726_v22  ;;  %v1675_v2 = vadd.f32 %v7575_v24, %v1634_v25  ;;  %v6772_v26 = vld [vmem:[%s8159_s8 + $0xb0] sm:$0xff]   ;;  %v6773_v38 = vld [vmem:[%s8159_s8 + $0xe8] sm:$0xff]   ;;  %v6775_v8 = vld [vmem:[%s8159_s8 + $0xe0] sm:$0xff]  }
 0x240   :  { %v1637_v32 = vpop.f32.mrf.mxu0  ;;  %v6758_v22 = vld [vmem:[%s8159_s8 + $0x28] sm:$0xff]   ;;  %v6761_v29 = vld [vmem:[%s8159_s8 + $0x58] sm:$0xff]  }
 0x241   :  { %v1678_v33 = vpop.f32.mrf.mxu1  ;;  %v1677_v34 = vadd.f32 %v1676_v30, %v1636_v60  ;;  %5772 = vmatpush3.bf16.msra.mxu0 %v6727_v28  ;;  %v1683_v13 = vmax.f32 %v1675_v2, 0.0  ;;  %v6774_v24 = vld [vmem:[%s8159_s8 + $0xa8] sm:$0xff]   ;;  %v6760_v28 = vld [vmem:[%s8159_s8 + $0x20] sm:$0xff]   ;;  %v6763_v60 = vld [vmem:[%s8159_s8 + $0x50] sm:$0xff]  }
 0x242   :  { %5794 = vmatpush3.bf16.msra.mxu1 %v6728_v16  ;;  %v1638_v36 = vpop.f32.mrf.mxu0  ;;  %5773 = vmatprep.subr.bf16.mxu0 %v6729_v9  ;;  %v6776_v30 = vld [vmem:[%s8159_s8 + $0xa0] sm:$0xff]   ;;  %v6777_v16 = vld [vmem:[%s8159_s8 + $0xd8] sm:$0xff]   ;;  %v6779_v32 = vld [vmem:[%s8159_s8 + $0xd0] sm:$0xff]  }
 0x243   :  { %v1679_v37 = vpop.f32.mrf.mxu1  ;;  %v1684_v41 = vmax.f32 %v1677_v34, 0.0  ;;  %5795 = vmatprep.subr.bf16.mxu1 %v6730_v6  ;;  %v3123_v54 = vpack.c.bf16 %v1683_v13, %v1683_v13  ;;  %v6762_v9 = vld [vmem:[%s8159_s8 + $0x18] sm:$0xff]   ;;  %v6764_v33 = vld [vmem:[%s8159_s8 + $0x10] sm:$0xff]   ;;  %v6765_v34 = vld [vmem:[%s8159_s8 + $0x48] sm:$0xff]  }
 0x244   :  { %v6778_v6 = vld [vmem:[%s8159_s8 + $0x98] sm:$0xff]   ;;  %v6767_v36 = vld [vmem:[%s8159_s8 + $0x40] sm:$0xff]  }
 0x245   :  { %v3124_v44 = vpack.c.bf16 %v1684_v41, %v1684_v41  ;;  %5774 = vmatpush3.bf16.msra.mxu0 %v6731_v35  ;;  %v6766_v35 = vld [vmem:[%s8159_s8 + $0x8] sm:$0xff]   ;;  %v6768_v37 = vld [vmem:[%s8159_s8] sm:$0xff]  }
 0x246   :  { %5796 = vmatpush3.bf16.msra.mxu1 %v6732_v39  ;;  %5775 = vmatprep.subr.bf16.mxu0 %v6733_v40  ;;  %v6780_v39 = vld [vmem:[%s8159_s8 + $0x90] sm:$0xff]  }
 0x247   :  { %3460 = vmatprep.mubr.bf16.mxu1 %v3124_v44  ;;  %5797 = vmatprep.subr.bf16.mxu1 %v6734_v42 }
 0x249   :  { %5776 = vmatpush3.bf16.msra.mxu0 %v6735_v45  ;;  %v6781_v45 = vld [vmem:[%s8159_s8 + $0xc8] sm:$0xff]  }
 0x24a   :  { %5798 = vmatpush3.bf16.msra.mxu1 %v6736_v46  ;;  %5777 = vmatprep.subr.bf16.mxu0 %v6737_v48  ;;  %v6782_v46 = vld [vmem:[%s8159_s8 + $0x88] sm:$0xff]  }
 0x24b   :  { %5799 = vmatprep.subr.bf16.mxu1 %v6738_v49 }
 0x24d   :  { %5778 = vmatpush3.bf16.msra.mxu0 %v6739_v51 }
 0x24e   :  { %5800 = vmatpush3.bf16.msra.mxu1 %v6740_v53  ;;  %5779 = vmatprep.subr.bf16.mxu0 %v6741_v55  ;;  %v6783_v53 = vld [vmem:[%s8159_s8 + $0xc0] sm:$0xff]  }
 0x24f   :  { %5801 = vmatprep.subr.bf16.mxu1 %v6742_v56  ;;  %v6784_v55 = vld [vmem:[%s8159_s8 + $0x80] sm:$0xff]   ;;  %v7264_v56 = vmov 0.0  }
 0x251   :  { %5780 = vmatpush3.bf16.msra.mxu0 %v6743_v58  ;;  %v1894_v58 = vrot.slane %v1889_v57, %v7501_v27 }
 0x252   :  { %5802 = vmatpush3.bf16.msra.mxu1 %v6744_v59  ;;  %5781 = vmatprep.subr.bf16.mxu0 %v6745_v61  ;;  %v1898_v59 = vrot.slane %v1889_v57, %v7507_v31 }
 0x253   :  { %5803 = vmatprep.subr.bf16.mxu1 %v6746_v1 }
 0x255   :  { %5782 = vmatpush3.bf16.msra.mxu0 %v6747_v62 }
 0x256   :  { %5804 = vmatpush3.bf16.msra.mxu1 %v6748_v63  ;;  %5783 = vmatprep.subr.bf16.mxu0 %v6749_v0 }
 0x257   :  { %5805 = vmatprep.subr.bf16.mxu1 %v6750_v3 }
 0x259   :  { %5784 = vmatpush3.bf16.msra.mxu0 %v6751_v7 }
 0x25a   :  { %5806 = vmatpush3.bf16.msra.mxu1 %v6752_v52  ;;  %5813 = vmatprep.subr.bf16.mxu0 %v6753_v11 }
 0x25b   :  { %5835 = vmatprep.subr.bf16.mxu1 %v6769_v14 }
 0x25c   :  { %3421 = vmatmul.mubr.bf16.vlgmr.msra.gmra.mxu0 %v3121_v15 }
 0x25d   :  { %3461 = vmatmul.mubr.bf16.vlgmr.msra.gmra.mxu1 %v3123_v54  ;;  %5814 = vmatpush3.bf16.msra.mxu0 %v6754_v4  ;;  %v1902_v54 = vrot.slane %v1889_v57, %v7605_v43 }
 0x25e   :  { %5815 = vmatprep.subr.bf16.mxu0 %v6755_v17  ;;  %5836 = vmatpush3.bf16.msra.mxu1 %v6770_v19 }
 0x25f   :  { %5837 = vmatprep.subr.bf16.mxu1 %v6771_v5  ;;  %v1906_v5 = vrot.slane %v1889_v57, %v469_v47 }
 0x261   :  { %5816 = vmatpush3.bf16.msra.mxu0 %v6756_v20 }
 0x262   :  { %5817 = vmatprep.subr.bf16.mxu0 %v6757_v21  ;;  %5838 = vmatpush3.bf16.msra.mxu1 %v6772_v26 }
 0x263   :  { %5839 = vmatprep.subr.bf16.mxu1 %v6773_v38 }
 0x265   :  { %5818 = vmatpush3.bf16.msra.mxu0 %v6758_v22 }
 0x266   :  { %5819 = vmatprep.subr.bf16.mxu0 %v6759_v23  ;;  %5840 = vmatpush3.bf16.msra.mxu1 %v6774_v24 }
 0x267   :  { %5841 = vmatprep.subr.bf16.mxu1 %v6775_v8 }
 0x269   :  { %5820 = vmatpush3.bf16.msra.mxu0 %v6760_v28 }
 0x26a   :  { %5821 = vmatprep.subr.bf16.mxu0 %v6761_v29  ;;  %5842 = vmatpush3.bf16.msra.mxu1 %v6776_v30 }
 0x26b   :  { %5843 = vmatprep.subr.bf16.mxu1 %v6777_v16 }
 0x26d   :  { %5822 = vmatpush3.bf16.msra.mxu0 %v6762_v9 }
 0x26e   :  { %5823 = vmatprep.subr.bf16.mxu0 %v6763_v60  ;;  %5844 = vmatpush3.bf16.msra.mxu1 %v6778_v6 }
 0x26f   :  { %5845 = vmatprep.subr.bf16.mxu1 %v6779_v32 }
 0x271   :  { %5824 = vmatpush3.bf16.msra.mxu0 %v6764_v33 }
 0x272   :  { %5825 = vmatprep.subr.bf16.mxu0 %v6765_v34  ;;  %5846 = vmatpush3.bf16.msra.mxu1 %v6780_v39  ;;  %v6786_v34 = vld [vmem:[%s8161_s10 + $0x30] sm:$0xff]   ;;  %v6788_v39 = vld [vmem:[%s8161_s10 + $0x20] sm:$0xff]  }
 0x273   :  { %5847 = vmatprep.subr.bf16.mxu1 %v6781_v45  ;;  %v6797_v45 = vld [vmem:[#allocation12 + $0x18] sm:$0xff]  }
 0x275   :  { %5826 = vmatpush3.bf16.msra.mxu0 %v6766_v35  ;;  %v6793_v35 = vld [vmem:[#allocation12 + $0x38] sm:$0xff]  }
 0x276   :  { %5827 = vmatprep.subr.bf16.mxu0 %v6767_v36  ;;  %5848 = vmatpush3.bf16.msra.mxu1 %v6782_v46  ;;  %v6787_v36 = vld [vmem:[%s8161_s10 + $0x28] sm:$0xff]  }
 0x277   :  { %5849 = vmatprep.subr.bf16.mxu1 %v6783_v53  ;;  %v6798_v53 = vld [vmem:[#allocation12 + $0x10] sm:$0xff]  }
 0x279   :  { %5828 = vmatpush3.bf16.msra.mxu0 %v6768_v37  ;;  %v6794_v37 = vld [vmem:[#allocation12 + $0x30] sm:$0xff]  }
 0x27a   :  { %5850 = vmatpush3.bf16.msra.mxu1 %v6784_v55  ;;  %5938 = vmatprep.subr.bf16.mxu0 %v7264_v56 }
 0x27b   :  { %5958 = vmatprep.subr.bf16.mxu1 %v7264_v56 }
 0x27c   :  { %v2905_v40 = vpop.f32.mrf.mxu0 }
 0x27d   :  { %v2946_v41 = vpop.f32.mrf.mxu1  ;;  %v2906_v61 = vadd.f32 %v2905_v40, %v1894_v58  ;;  %v6795_v40 = vld [vmem:[#allocation12 + $0x28] sm:$0xff]  }
 0x27e   :  { %v2907_v42 = vpop.f32.mrf.mxu0 }
 0x27f   :  { %v2948_v44 = vpop.f32.mrf.mxu1  ;;  %v2908_v25 = vadd.f32 %v2907_v42, %v1898_v59  ;;  %v2947_v1 = vadd.f32 %v2946_v41, %v2906_v61  ;;  %v6789_v41 = vld [vmem:[%s8161_s10 + $0x18] sm:$0xff]   ;;  %v6796_v42 = vld [vmem:[#allocation12 + $0x20] sm:$0xff]  }
 0x280   :  { %v2909_v48 = vpop.f32.mrf.mxu0 }
 0x281   :  { %v2950_v49 = vpop.f32.mrf.mxu1  ;;  %v2949_v0 = vadd.f32 %v2948_v44, %v2908_v25  ;;  %v6790_v44 = vld [vmem:[%s8161_s10 + $0x10] sm:$0xff]  }
 0x282   :  { %v2910_v50 = vpop.f32.mrf.mxu0  ;;  %v6791_v49 = vld [vmem:[%s8161_s10 + $0x8] sm:$0xff]  }
 0x283   :  { %v2951_v51 = vpop.f32.mrf.mxu1  ;;  %v5616_v50 = vld [vmem:[#allocation9] ss:$0 sm:$0xff] }
 0x2bc   :  { %v2987_v62 = vpop.f32.mrf.mxu0 }
 0x2bd   :  { %v3028_v63 = vpop.f32.mrf.mxu1  ;;  %v2988_v2 = vadd.f32 %v2987_v62, %v2947_v1  ;;  %v6792_v1 = vld [vmem:[%s8161_s10] sm:$0xff]  }
 0x2be   :  { %v2989_v3 = vpop.f32.mrf.mxu0  ;;  %v3029_v20 = vadd.f32 %v3028_v63, %v1902_v54 }
 0x2bf   :  { %v3030_v7 = vpop.f32.mrf.mxu1  ;;  %v2990_v10 = vadd.f32 %v2989_v3, %v2949_v0  ;;  %v3117_v52 = vmax.f32 %v2988_v2, 0.0  ;;  %v6799_v3 = vld [vmem:[#allocation12 + $0x8] sm:$0xff]  }
 0x2c0   :  { %v2991_v11 = vpop.f32.mrf.mxu0  ;;  %v3031_v38 = vadd.f32 %v3030_v7, %v1906_v5  ;;  %v6800_v7 = vld [vmem:[#allocation12] sm:$0xff]  }
 0x2c1   :  { %v3032_v13 = vpop.f32.mrf.mxu1  ;;  %v3118_v14 = vmax.f32 %v2990_v10, 0.0  ;;  %v3468_v19 = vpack.c.bf16 %v3117_v52, %v3117_v52  ;;  %v6803_v10 = vld [vmem:[#allocation15 + $0xac] ss:$12 sps:$4 sm:$0xff]   ;;  %v6804_v52 = vld [vmem:[#allocation15 + $0xb0] ss:$12 sps:$4 sm:$0xff]  }
 0x2c2   :  { %v2992_v4 = vpop.f32.mrf.mxu0 }
 0x2c3   :  { %v3033_v15 = vpop.f32.mrf.mxu1  ;;  %v3469_v17 = vpack.c.bf16 %v3118_v14, %v3118_v14 }
 0x2c5   :  { %3767 = vmatprep.mubr.bf16.mxu0 %v3469_v17  ;;  %v5649_v17 = vld [vmem:[#allocation11] ss:$0 sm:$0xff] }
 0x2c6   :  { %3768 = vmatmul.mubr.bf16.vlgmr.msra.gmra.mxu0 %v3468_v19 }
 0x2c7   :  { %5954 = vmatprep.mubr.msk.bf16.mxu0 %vm7265_vm0, %v7264_v56  ;;  %5939 = vmatpush3.bf16.msra.mxu0 %v6793_v35  ;;  %v6817_v35 = vld [vmem:[#allocation15 + $0x48] ss:$12 sps:$4 sm:$0xff]  }
 0x2c8   :  { %5940 = vmatprep.subr.bf16.mxu0 %v7264_v56 }
 0x2cb   :  { %5941 = vmatpush3.bf16.msra.mxu0 %v6794_v37  ;;  %v6823_v37 = vld [vmem:[#allocation15 + $0x34] ss:$12 sps:$4 sm:$0xff]  }
 0x2cc   :  { %5942 = vmatprep.subr.bf16.mxu0 %v7264_v56 }
 0x2cf   :  { %5943 = vmatpush3.bf16.msra.mxu0 %v6795_v40  ;;  %v6824_v40 = vld [vmem:[#allocation15 + $0x38] ss:$12 sps:$4 sm:$0xff]  }
 0x2d0   :  { %5944 = vmatprep.subr.bf16.mxu0 %v7264_v56 }
 0x2d3   :  { %5945 = vmatpush3.bf16.msra.mxu0 %v6796_v42  ;;  %v6825_v42 = vld [vmem:[#allocation15 + $0x18] ss:$12 sps:$4 sm:$0xff]  }
 0x2d4   :  { %5946 = vmatprep.subr.bf16.mxu0 %v7264_v56 }
 0x2d7   :  { %5947 = vmatpush3.bf16.msra.mxu0 %v6797_v45  ;;  %v6831_v45 = vld [vmem:[#allocation15 + $0x4] ss:$12 sps:$4 sm:$0xff]  }
 0x2d8   :  { %5948 = vmatprep.subr.bf16.mxu0 %v7264_v56 }
 0x2db   :  { %5949 = vmatpush3.bf16.msra.mxu0 %v6798_v53  ;;  %v5698_v53 = vld [vmem:[#allocation14] ss:$0 sm:$0xff] }
 0x2dc   :  { %5950 = vmatprep.subr.bf16.mxu0 %v7264_v56 }
 0x2df   :  { %5951 = vmatpush3.bf16.msra.mxu0 %v6799_v3  ;;  %v7828_v3 = vld [vmem:[#allocation18 + $0xb0] ss:$12 sps:$4 sm:$0xff]  }
 0x2e0   :  { %5952 = vmatprep.subr.bf16.mxu0 %v7264_v56 }
 0x2e3   :  { %5953 = vmatpush3.bf16.msra.mxu0 %v6800_v7 }
 0x2e4   :  { %4217 = vmatprep.subr.bf16.mxu0 %v6803_v10  ;;  %v7830_v10 = vld [vmem:[#allocation18 + $0x94] ss:$12 sps:$4 sm:$0xff]  }
 0x2fc   :  { %v3069_v21 = vpop.f32.mrf.mxu0 }
 0x2fd   :  { %v3110_v26 = vpop.f32.mrf.mxu1  ;;  %v3070_v22 = vadd.f32 %v3069_v21, %v3029_v20 }
 0x2fe   :  { %v3071_v23 = vpop.f32.mrf.mxu0 }
 0x2ff   :  { %v3112_v24 = vpop.f32.mrf.mxu1  ;;  %v3111_v8 = vadd.f32 %v3110_v26, %v3070_v22  ;;  %v3072_v28 = vadd.f32 %v3071_v23, %v3031_v38  ;;  %v6801_v22 = vld [vmem:[#allocation15 + $0xa8] ss:$12 sps:$4 sm:$0xff]  }
 0x300   :  { %v3073_v29 = vpop.f32.mrf.mxu0 }
 0x301   :  { %v3114_v30 = vpop.f32.mrf.mxu1  ;;  %v3113_v16 = vadd.f32 %v3112_v24, %v3072_v28  ;;  %v3119_v9 = vmax.f32 %v3111_v8, 0.0  ;;  %v6807_v24 = vld [vmem:[#allocation15 + $0x94] ss:$12 sps:$4 sm:$0xff]   ;;  %v6805_v8 = vld [vmem:[#allocation15 + $0x90] ss:$12 sps:$4 sm:$0xff]  }
 0x302   :  { %v3074_v60 = vpop.f32.mrf.mxu0 }
 0x303   :  { %v3115_v6 = vpop.f32.mrf.mxu1  ;;  %v3120_v32 = vmax.f32 %v3113_v16, 0.0  ;;  %v3470_v47 = vpack.c.bf16 %v3119_v9, %v3119_v9  ;;  %v6808_v9 = vld [vmem:[#allocation15 + $0x98] ss:$12 sps:$4 sm:$0xff]   ;;  %v6811_v60 = vld [vmem:[#allocation15 + $0x7c] ss:$12 sps:$4 sm:$0xff]  }
 0x304   :  { %v6809_v6 = vld [vmem:[#allocation15 + $0x78] ss:$12 sps:$4 sm:$0xff]  }
 0x305   :  { %v3471_v33 = vpack.c.bf16 %v3120_v32, %v3120_v32  ;;  %v6812_v32 = vld [vmem:[#allocation15 + $0x80] ss:$12 sps:$4 sm:$0xff]  }
 0x307   :  { %3807 = vmatprep.mubr.bf16.mxu1 %v3471_v33  ;;  %v6815_v33 = vld [vmem:[#allocation15 + $0x64] ss:$12 sps:$4 sm:$0xff]  }
 0x308   :  { %3808 = vmatmul.mubr.bf16.vlgmr.msra.gmra.mxu1 %v3470_v47  ;;  %v6816_v47 = vld [vmem:[#allocation15 + $0x68] ss:$12 sps:$4 sm:$0xff]  }
 0x309   :  { %5959 = vmatpush3.bf16.msra.mxu1 %v6785_v18  ;;  %5974 = vmatprep.mubr.msk.bf16.mxu1 %vm7265_vm0, %v7264_v56  ;;  %v6813_v18 = vld [vmem:[#allocation15 + $0x60] ss:$12 sps:$4 sm:$0xff]  }
 0x30a   :  { %5960 = vmatprep.subr.bf16.mxu1 %v7264_v56 }
 0x30d   :  { %5961 = vmatpush3.bf16.msra.mxu1 %v6786_v34  ;;  %v6819_v34 = vld [vmem:[#allocation15 + $0x4c] ss:$12 sps:$4 sm:$0xff]  }
 0x30e   :  { %5962 = vmatprep.subr.bf16.mxu1 %v7264_v56 }
 0x311   :  { %5963 = vmatpush3.bf16.msra.mxu1 %v6787_v36  ;;  %v6820_v36 = vld [vmem:[#allocation15 + $0x50] ss:$12 sps:$4 sm:$0xff]  }
 0x312   :  { %5964 = vmatprep.subr.bf16.mxu1 %v7264_v56 }
 0x315   :  { %5965 = vmatpush3.bf16.msra.mxu1 %v6788_v39  ;;  %v6821_v39 = vld [vmem:[#allocation15 + $0x30] ss:$12 sps:$4 sm:$0xff]  }
 0x316   :  { %5966 = vmatprep.subr.bf16.mxu1 %v7264_v56 }
 0x319   :  { %5967 = vmatpush3.bf16.msra.mxu1 %v6789_v41  ;;  %v6827_v41 = vld [vmem:[#allocation15 + $0x1c] ss:$12 sps:$4 sm:$0xff]  }
 0x31a   :  { %5968 = vmatprep.subr.bf16.mxu1 %v7264_v56 }
 0x31c   :  { %v5785_v46 = vpop.f32.mrf.mxu0 }
 0x31d   :  { %v5807_v48 = vpop.f32.mrf.mxu1  ;;  %5969 = vmatpush3.bf16.msra.mxu1 %v6790_v44  ;;  %v6828_v44 = vld [vmem:[#allocation15 + $0x20] ss:$12 sps:$4 sm:$0xff]  }
 0x31e   :  { %v5786_v51 = vpop.f32.mrf.mxu0  ;;  %5970 = vmatprep.subr.bf16.mxu1 %v7264_v56 }
 0x31f   :  { %v5787_v55 = vadd.f32 %v5786_v51, %v5785_v46  ;;  %v5808_v57 = vpop.f32.mrf.mxu1  ;;  %v6829_v46 = vld [vmem:[#allocation15] ss:$12 sps:$4 sm:$0xff]  }
 0x320   :  { %v5788_v58 = vpop.f32.mrf.mxu0  ;;  %v5809_v61 = vadd.f32 %v5808_v57, %v5807_v48  ;;  %v6832_v48 = vld [vmem:[#allocation15 + $0x8] ss:$12 sps:$4 sm:$0xff]  }
 0x321   :  { %v3423_v59 = vadd.f32 %v5787_v55, %v5616_v50  ;;  %v5810_v25 = vpop.f32.mrf.mxu1  ;;  %5971 = vmatpush3.bf16.msra.mxu1 %v6791_v49  ;;  %v7821_v49 = vld [vmem:[#allocation18 + $0xac] ss:$12 sps:$4 sm:$0xff]   ;;  %v7266_v50 = vmov 0  }
 0x322   :  { %v5789_v62 = vpop.f32.mrf.mxu0  ;;  %5972 = vmatprep.subr.bf16.mxu1 %v7264_v56 }
 0x323   :  { %v3463_v63 = vadd.f32 %v5809_v61, %v3423_v59  ;;  %v5811_v0 = vpop.f32.mrf.mxu1 }
 0x325   :  { %v3815_v2 = vpack.c.bf16 %v3463_v63, %v3463_v63  ;;  %5973 = vmatpush3.bf16.msra.mxu1 %v6792_v1 }
 0x326   :  { %5978 = vmatprep.subr.bf16.mxu1 %v7264_v56 }
 0x328   :  { %5975 = vmatmul.mubr.bf16.vlgmr.msra.gmra.mxu1 %v3815_v2  ;;  %v7826_v2 = vld [vmem:[#allocation18 + $0xa8] ss:$12 sps:$4 sm:$0xff]  }
 0x329   :  { %5994 = vmatprep.mubr.msk.bf16.mxu1 %vm7265_vm0, %v7264_v56  ;;  %5979 = vmatpush3.bf16.msra.mxu1 %v6804_v52  ;;  %v7833_v52 = vld [vmem:[#allocation18 + $0x90] ss:$12 sps:$4 sm:$0xff]  }
 0x32a   :  { %5980 = vmatprep.subr.bf16.mxu1 %v7264_v56 }
 0x32d   :  { %5981 = vmatpush3.bf16.msra.mxu1 %v6808_v9 }
 0x32e   :  { %5982 = vmatprep.subr.bf16.mxu1 %v7264_v56 }
 0x331   :  { %5983 = vmatpush3.bf16.msra.mxu1 %v6812_v32 }
 0x332   :  { %5984 = vmatprep.subr.bf16.mxu1 %v7264_v56 }
 0x335   :  { %5985 = vmatpush3.bf16.msra.mxu1 %v6816_v47 }
 0x336   :  { %5986 = vmatprep.subr.bf16.mxu1 %v7264_v56 }
 0x339   :  { %5987 = vmatpush3.bf16.msra.mxu1 %v6820_v36  ;;  %v4330_v36 = vld [vmem:[#allocation20] sm:$0x7] }
 0x33a   :  { %5988 = vmatprep.subr.bf16.mxu1 %v7264_v56 }
 0x33d   :  { %5989 = vmatpush3.bf16.msra.mxu1 %v6824_v40 }
 0x33e   :  { %5990 = vmatprep.subr.bf16.mxu1 %v7264_v56 }
 0x341   :  { %5991 = vmatpush3.bf16.msra.mxu1 %v6828_v44 }
 0x342   :  { %5992 = vmatprep.subr.bf16.mxu1 %v7264_v56 }
 0x345   :  { %5993 = vmatpush3.bf16.msra.mxu1 %v6832_v48 }
 0x346   :  { %5998 = vmatprep.subr.bf16.mxu1 %v7264_v56 }
 0x386   :  { %v5829_v11 = vpop.f32.mrf.mxu0 }
 0x388   :  { %v5830_v13 = vpop.f32.mrf.mxu0 }
 0x389   :  { %v5831_v14 = vadd.f32 %v5830_v13, %v5829_v11  ;;  %v7836_v11 = vld [vmem:[#allocation18 + $0x98] ss:$12 sps:$4 sm:$0xff]   ;;  %v7839_v13 = vld [vmem:[#allocation18 + $0x7c] ss:$12 sps:$4 sm:$0xff]  }
 0x38a   :  { %v5832_v4 = vpop.f32.mrf.mxu0 }
 0x38b   :  { %v3770_v5 = vadd.f32 %v5831_v14, %v5649_v17  ;;  %v7846_v14 = vld [vmem:[#allocation18 + $0x78] ss:$12 sps:$4 sm:$0xff]   ;;  %v7849_v4 = vld [vmem:[#allocation18 + $0x80] ss:$12 sps:$4 sm:$0xff]  }
 0x38c   :  { %v5833_v15 = vpop.f32.mrf.mxu0  ;;  %v7856_v17 = vld [vmem:[#allocation18 + $0x60] ss:$12 sps:$4 sm:$0xff]  }
 0x38d   :  { %v7852_v15 = vld [vmem:[#allocation18 + $0x64] ss:$12 sps:$4 sm:$0xff]  }
 0x3c8   :  { %v5851_v19 = vpop.f32.mrf.mxu1 }
 0x3ca   :  { %v5852_v54 = vpop.f32.mrf.mxu1 }
 0x3cb   :  { %v5853_v20 = vadd.f32 %v5852_v54, %v5851_v19  ;;  %v7859_v19 = vld [vmem:[#allocation18 + $0x68] ss:$12 sps:$4 sm:$0xff]   ;;  %v7862_v54 = vld [vmem:[#allocation18 + $0x4c] ss:$12 sps:$4 sm:$0xff]  }
 0x3cc   :  { %v5854_v21 = vpop.f32.mrf.mxu1 }
 0x3cd   :  { %v3810_v26 = vadd.f32 %v5853_v20, %v3770_v5  ;;  %v7866_v5 = vld [vmem:[#allocation18 + $0x48] ss:$12 sps:$4 sm:$0xff]   ;;  %v7869_v20 = vld [vmem:[#allocation18 + $0x50] ss:$12 sps:$4 sm:$0xff]  }
 0x3ce   :  { %v5855_v38 = vpop.f32.mrf.mxu1  ;;  %v7872_v21 = vld [vmem:[#allocation18 + $0x34] ss:$12 sps:$4 sm:$0xff]  }
 0x3cf   :  { %v3832_v23 = vpack.c.bf16 %v3810_v26, %v3810_v26  ;;  %v7876_v26 = vld [vmem:[#allocation18 + $0x30] ss:$12 sps:$4 sm:$0xff]   ;;  %v7879_v38 = vld [vmem:[#allocation18 + $0x38] ss:$12 sps:$4 sm:$0xff]  }
 0x3d1   :  { %5955 = vmatmul.mubr.bf16.vlgmr.msra.gmra.mxu0 %v3832_v23  ;;  %v7886_v23 = vld [vmem:[#allocation18 + $0x18] ss:$12 sps:$4 sm:$0xff]  }
 0x3d2   :  { %4218 = vmatpush1.bf16.msra.mxu0 %v6801_v22  ;;  %4249 = vmatprep.mubr.bf16.mxu0 %v7266_v50  ;;  %v7882_v22 = vld [vmem:[#allocation18 + $0x1c] ss:$12 sps:$4 sm:$0xff]  }
 0x3d3   :  { %4219 = vmatprep.subr.bf16.mxu0 %v6807_v24  ;;  %v7889_v24 = vld [vmem:[#allocation18 + $0x20] ss:$12 sps:$4 sm:$0xff]  }
 0x3d6   :  { %4220 = vmatpush1.bf16.msra.mxu0 %v6805_v8  ;;  %v7892_v8 = vld [vmem:[#allocation18 + $0x4] ss:$12 sps:$4 sm:$0xff]  }
 0x3d7   :  { %4221 = vmatprep.subr.bf16.mxu0 %v6811_v60 }
 0x3da   :  { %4222 = vmatpush1.bf16.msra.mxu0 %v6809_v6 }
 0x3db   :  { %4223 = vmatprep.subr.bf16.mxu0 %v6815_v33 }
 0x3de   :  { %4224 = vmatpush1.bf16.msra.mxu0 %v6813_v18 }
 0x3df   :  { %4225 = vmatprep.subr.bf16.mxu0 %v6819_v34 }
 0x3e2   :  { %4226 = vmatpush1.bf16.msra.mxu0 %v6817_v35  ;;  %v4072_v35 = vld [vmem:[#allocation17] sm:$0x7] }
 0x3e3   :  { %4227 = vmatprep.subr.bf16.mxu0 %v6823_v37  ;;  %v4077_v37 = vrot.slane %v4072_v35, %v7501_v27 }
 0x3e6   :  { %4228 = vmatpush1.bf16.msra.mxu0 %v6821_v39  ;;  %v7951_v39 = vrot.slane %v4330_v36, %v7501_v27 }
 0x3e7   :  { %4229 = vmatprep.subr.bf16.mxu0 %v6827_v41 }
 0x3e8   :  { %v4019_v28 = vpop.f32.mrf.mxu1 }
 0x3ea   :  { %v5976_v29 = vpop.f32.mrf.mxu1  ;;  %4230 = vmatpush1.bf16.msra.mxu0 %v6825_v42 }
 0x3eb   :  { %4231 = vmatprep.subr.bf16.mxu0 %v6831_v45  ;;  %v7901_v29 = vld [vmem:[%s8172_s21] sm:$0x3]  ;;  %v7957_v45 = vrot.slane %v4330_v36, %v7507_v31 }
 0x3ec   :  { %v4022_v30 = vpop.f32.mrf.mxu1 }
 0x3ed   :  { %v7904_v30 = vld [vmem:[#allocation18 + $0x8] ss:$12 sps:$4 sm:$0xff]  }
 0x3ee   :  { %v5977_v16 = vpop.f32.mrf.mxu1  ;;  %4232 = vmatpush1.bf16.msra.mxu0 %v6829_v46 }
 0x3ef   :  { %4477 = vmatprep.subr.bf16.mxu0 %v7821_v49  ;;  %v4332_v16 = vpack.c.bf16 %v7901_v29, %v7901_v29 }
 0x491   :  { %v3931_v51 = vpop.f32.mrf.mxu0 }
 0x492   :  { %v4020_v55 = vadd.f32 %v4019_v28, %v3931_v51  ;;  %v7896_v28 = vld [vmem:[#allocation18] ss:$12 sps:$4 sm:$0xff]   ;;  %v4081_v51 = vrot.slane %v4072_v35, %v7507_v31  ;;  %v7966_v31 = vrot.slane %v4330_v36, %v7605_v43 }
 0x493   :  { %v5956_v57 = vpop.f32.mrf.mxu0 }
 0x494   :  { %v4032_v58 = vadd.f32 %v5698_v53, %v4020_v55 }
 0x495   :  { %v3934_v59 = vpop.f32.mrf.mxu0 }
 0x496   :  { %v4034_v61 = vmin.f32 %v4032_v58, 0.0  ;;  %vm4033_vm1 = vcmp.gt.f32.partialorder %v4032_v58, 0.0 }
 0x497   :  { %v5957_v25 = vpop.f32.mrf.mxu0 }
 0x498   :  { %v4035_v1 = vmul.f32 1.442695, %v4034_v61 }
 0x49a   :  { %6873 = vpow2.f32 %v4035_v1 }
 0x4a7   :  { %v6874_v62 = vpop.eup %6873 }
 0x4a8   :  { %v5699_v63 = vadd.f32 -1.0, %v6874_v62 }
 0x4aa   :  { %v4038_v0 = vsel %vm4033_vm1, %v4032_v58, %v5699_v63 }
 0x4ab   :  { %v4039_v7 = vpack.c.bf16 %v4038_v0, %v4038_v0 }
 0x4ad   :  { %4250 = vmatmul.mubr.bf16.vlgmr.msra.gmra.mxu0 %v4039_v7  ;;  %5995 = vmatmul.mubr.bf16.vlgmr.msra.gmra.mxu1 %v4039_v7 }
 0x4ae   :  { %4478 = vmatpush1.bf16.msra.mxu0 %v7826_v2  ;;  %5999 = vmatpush3.bf16.msra.mxu1 %v7828_v3 }
 0x4af   :  { %4479 = vmatprep.subr.bf16.mxu0 %v7830_v10  ;;  %4509 = vmatprep.mubr.bf16.mxu0 %v7266_v50 }
 0x4b0   :  { %6000 = vmatprep.subr.bf16.mxu1 %v7264_v56  ;;  %6014 = vmatprep.mubr.msk.bf16.mxu1 %vm7265_vm0, %v7264_v56 }
 0x4b2   :  { %4480 = vmatpush1.bf16.msra.mxu0 %v7833_v52  ;;  %6001 = vmatpush3.bf16.msra.mxu1 %v7836_v11 }
 0x4b3   :  { %4481 = vmatprep.subr.bf16.mxu0 %v7839_v13  ;;  %6002 = vmatprep.subr.bf16.mxu1 %v7264_v56 }
 0x4b6   :  { %4482 = vmatpush1.bf16.msra.mxu0 %v7846_v14  ;;  %6003 = vmatpush3.bf16.msra.mxu1 %v7849_v4 }
 0x4b7   :  { %4483 = vmatprep.subr.bf16.mxu0 %v7852_v15  ;;  %6004 = vmatprep.subr.bf16.mxu1 %v7264_v56 }
 0x4ba   :  { %4484 = vmatpush1.bf16.msra.mxu0 %v7856_v17  ;;  %6005 = vmatpush3.bf16.msra.mxu1 %v7859_v19 }
 0x4bb   :  { %4485 = vmatprep.subr.bf16.mxu0 %v7862_v54  ;;  %6006 = vmatprep.subr.bf16.mxu1 %v7264_v56 }
 0x4be   :  { %4486 = vmatpush1.bf16.msra.mxu0 %v7866_v5  ;;  %6007 = vmatpush3.bf16.msra.mxu1 %v7869_v20 }
 0x4bf   :  { %4487 = vmatprep.subr.bf16.mxu0 %v7872_v21  ;;  %6008 = vmatprep.subr.bf16.mxu1 %v7264_v56 }
 0x4c2   :  { %4488 = vmatpush1.bf16.msra.mxu0 %v7876_v26  ;;  %6009 = vmatpush3.bf16.msra.mxu1 %v7879_v38 }
 0x4c3   :  { %4489 = vmatprep.subr.bf16.mxu0 %v7882_v22  ;;  %6010 = vmatprep.subr.bf16.mxu1 %v7264_v56 }
 0x4c6   :  { %4490 = vmatpush1.bf16.msra.mxu0 %v7886_v23  ;;  %6011 = vmatpush3.bf16.msra.mxu1 %v7889_v24 }
 0x4c7   :  { %4491 = vmatprep.subr.bf16.mxu0 %v7892_v8  ;;  %6012 = vmatprep.subr.bf16.mxu1 %v7264_v56 }
 0x4ca   :  { %4492 = vmatpush1.bf16.msra.mxu0 %v7896_v28  ;;  %6013 = vmatpush3.bf16.msra.mxu1 %v7904_v30 }
 0x4cb   :  { %4581 = vmatprep.subr.bf16.mxu0 %v7821_v49  ;;  %6018 = vmatprep.subr.bf16.mxu1 %v7264_v56 }
 0x4cd   :  { %4510 = vmatmul.mubr.bf16.vlgmr.msra.gmra.mxu0 %v4332_v16  ;;  %6015 = vmatmul.mubr.bf16.vlgmr.msra.gmra.mxu1 %v4332_v16  ;;  %v4085_v16 = vrot.slane %v4072_v35, %v7605_v43 }
 0x4ce   :  { %4582 = vmatpush1.bf16.msra.mxu0 %v7826_v2  ;;  %6019 = vmatpush3.bf16.msra.mxu1 %v7828_v3 }
 0x4cf   :  { %4583 = vmatprep.subr.bf16.mxu0 %v7830_v10  ;;  %6020 = vmatprep.subr.bf16.mxu1 %v7264_v56 }
 0x4d0   :  { %4613 = vmatprep.mubr.bf16.mxu0 %v7266_v50  ;;  %6034 = vmatprep.mubr.msk.bf16.mxu1 %vm7265_vm0, %v7264_v56 }
 0x4d2   :  { %4584 = vmatpush1.bf16.msra.mxu0 %v7833_v52  ;;  %6021 = vmatpush3.bf16.msra.mxu1 %v7836_v11 }
 0x4d3   :  { %4585 = vmatprep.subr.bf16.mxu0 %v7839_v13  ;;  %6022 = vmatprep.subr.bf16.mxu1 %v7264_v56 }
 0x4d6   :  { %4586 = vmatpush1.bf16.msra.mxu0 %v7846_v14  ;;  %6023 = vmatpush3.bf16.msra.mxu1 %v7849_v4 }
 0x4d7   :  { %4587 = vmatprep.subr.bf16.mxu0 %v7852_v15  ;;  %6024 = vmatprep.subr.bf16.mxu1 %v7264_v56 }
 0x4da   :  { %4588 = vmatpush1.bf16.msra.mxu0 %v7856_v17  ;;  %6025 = vmatpush3.bf16.msra.mxu1 %v7859_v19 }
 0x4db   :  { %4589 = vmatprep.subr.bf16.mxu0 %v7862_v54  ;;  %6026 = vmatprep.subr.bf16.mxu1 %v7264_v56 }
 0x4de   :  { %4590 = vmatpush1.bf16.msra.mxu0 %v7866_v5  ;;  %6027 = vmatpush3.bf16.msra.mxu1 %v7869_v20 }
 0x4df   :  { %4591 = vmatprep.subr.bf16.mxu0 %v7872_v21  ;;  %6028 = vmatprep.subr.bf16.mxu1 %v7264_v56 }
 0x4e2   :  { %4592 = vmatpush1.bf16.msra.mxu0 %v7876_v26  ;;  %6029 = vmatpush3.bf16.msra.mxu1 %v7879_v38 }
 0x4e3   :  { %4593 = vmatprep.subr.bf16.mxu0 %v7882_v22  ;;  %6030 = vmatprep.subr.bf16.mxu1 %v7264_v56 }
 0x4e6   :  { %4594 = vmatpush1.bf16.msra.mxu0 %v7886_v23  ;;  %6031 = vmatpush3.bf16.msra.mxu1 %v7889_v24 }
 0x4e7   :  { %4595 = vmatprep.subr.bf16.mxu0 %v7892_v8  ;;  %6032 = vmatprep.subr.bf16.mxu1 %v7264_v56 }
 0x4ea   :  { %4596 = vmatpush1.bf16.msra.mxu0 %v7896_v28  ;;  %6033 = vmatpush3.bf16.msra.mxu1 %v7904_v30 }
 0x4eb   :  { %4700 = vmatprep.subr.bf16.mxu0 %v7821_v49  ;;  %6038 = vmatprep.subr.bf16.mxu1 %v7264_v56 }
 0x56d   :  { %v4251_v9 = vpop.f32.mrf.mxu0  ;;  %v4292_v60 = vpop.f32.mrf.mxu1 }
 0x56e   :  { %v7953_v42 = vadd.f32 %v4251_v9, %v4077_v37 }
 0x56f   :  { %v4253_v6 = vpop.f32.mrf.mxu0  ;;  %v5996_v32 = vpop.f32.mrf.mxu1 }
 0x570   :  { %v7962_v25 = vadd.f32 %v4253_v6, %v4081_v51  ;;  %v7970_v6 = vadd.f32 %v4292_v60, %v4085_v16 }
 0x571   :  { %v4255_v33 = vpop.f32.mrf.mxu0  ;;  %v4295_v18 = vpop.f32.mrf.mxu1 }
 0x573   :  { %v4256_v47 = vpop.f32.mrf.mxu0  ;;  %v5997_v34 = vpop.f32.mrf.mxu1 }
 0x58d   :  { %v4511_v40 = vpop.f32.mrf.mxu0  ;;  %v4552_v41 = vpop.f32.mrf.mxu1 }
 0x58e   :  { %v4512_v44 = vadd.f32 %v4511_v40, %v7951_v39  ;;  %v4553_v32 = vadd.f32 %v4552_v41, %v7966_v31 }
 0x58f   :  { %v4513_v46 = vpop.f32.mrf.mxu0  ;;  %v6016_v48 = vpop.f32.mrf.mxu1 }
 0x590   :  { %v4558_v53 = vadd.f32 %v4512_v44, %v7953_v42  ;;  %v4514_v27 = vadd.f32 %v4513_v46, %v7957_v45 }
 0x591   :  { %v4515_v55 = vpop.f32.mrf.mxu0  ;;  %v4555_v57 = vpop.f32.mrf.mxu1 }
 0x592   :  { %v5748_v58 = vmul.f32 -1.442695, %v4558_v53  ;;  %v4565_v1 = vadd.f32 %v4514_v27, %v7962_v25 }
 0x593   :  { %v4516_v59 = vpop.f32.mrf.mxu0  ;;  %v6017_v61 = vpop.f32.mrf.mxu1 }
 0x594   :  { %6875 = vpow2.f32 %v5748_v58  ;;  %v5749_v62 = vmul.f32 -1.442695, %v4565_v1 }
 0x596   :  { %6877 = vpow2.f32 %v5749_v62 }
 0x5a1   :  { %v6876_v63 = vpop.eup %6875 }
 0x5a2   :  { %v4562_v0 = vadd.f32 1.0, %v6876_v63 }
 0x5a3   :  { %v6878_v7 = vpop.eup %6877 }
 0x5a4   :  { %6879 = vrcp.f32 %v4562_v0  ;;  %v4569_v9 = vadd.f32 1.0, %v6878_v7 }
 0x5a6   :  { %6881 = vrcp.f32 %v4569_v9 }
 0x5b1   :  { %v6880_v33 = vpop.eup %6879 }
 0x5b2   :  { %v4572_v18 = vmul.f32 %v6880_v33, %v4553_v32 }
 0x5b3   :  { %v6882_v34 = vpop.eup %6881 }
 0x5b4   :  { %v4573_v47 = vadd.f32 %v4572_v18, %v7970_v6  ;;  %v4575_v37 = vsub.f32 1.0, %v6882_v34  ;;  %v4577_v36 = vmul.f32 %v6882_v34, %v7901_v29 }
 0x5b6   :  { %6883 = vtanh.f32 %v4573_v47 }
 0x5c3   :  { %v6884_v40 = vpop.eup %6883 }
 0x5c4   :  { %v4576_v44 = vmul.f32 %v6884_v40, %v4575_v37 }
 0x5c6   :  { %v7974_v46 = vadd.f32 %v4577_v36, %v4576_v44 }
 0x5c8   :  { %4579 = vst [vmem:[#allocation2] sm:$0x3] %v7974_v46  ;;  %v4580_v43 = vpack.c.bf16 %v7974_v46, %v7974_v46  ;;  %v4691_v40 = vrot.slane %v7974_v46, 6 }
 0x5ca   :  { %4614 = vmatmul.mubr.bf16.vlgmr.msra.gmra.mxu0 %v4580_v43  ;;  %6035 = vmatmul.mubr.bf16.vlgmr.msra.gmra.mxu1 %v4580_v43 }
 0x5cb   :  { %4701 = vmatpush1.bf16.msra.mxu0 %v7826_v2  ;;  %6039 = vmatpush3.bf16.msra.mxu1 %v7828_v3 }
 0x5cc   :  { %4702 = vmatprep.subr.bf16.mxu0 %v7830_v10  ;;  %6040 = vmatprep.subr.bf16.mxu1 %v7264_v56 }
 0x5cd   :  { %4732 = vmatprep.mubr.bf16.mxu0 %v7266_v50  ;;  %6054 = vmatprep.mubr.msk.bf16.mxu1 %vm7265_vm0, %v7264_v56 }
 0x5cf   :  { %4703 = vmatpush1.bf16.msra.mxu0 %v7833_v52  ;;  %6041 = vmatpush3.bf16.msra.mxu1 %v7836_v11 }
 0x5d0   :  { %4704 = vmatprep.subr.bf16.mxu0 %v7839_v13  ;;  %6042 = vmatprep.subr.bf16.mxu1 %v7264_v56 }
 0x5d3   :  { %4705 = vmatpush1.bf16.msra.mxu0 %v7846_v14  ;;  %6043 = vmatpush3.bf16.msra.mxu1 %v7849_v4 }
 0x5d4   :  { %4706 = vmatprep.subr.bf16.mxu0 %v7852_v15  ;;  %6044 = vmatprep.subr.bf16.mxu1 %v7264_v56 }
 0x5d7   :  { %4707 = vmatpush1.bf16.msra.mxu0 %v7856_v17  ;;  %6045 = vmatpush3.bf16.msra.mxu1 %v7859_v19 }
 0x5d8   :  { %4708 = vmatprep.subr.bf16.mxu0 %v7862_v54  ;;  %6046 = vmatprep.subr.bf16.mxu1 %v7264_v56 }
 0x5db   :  { %4709 = vmatpush1.bf16.msra.mxu0 %v7866_v5  ;;  %6047 = vmatpush3.bf16.msra.mxu1 %v7869_v20 }
 0x5dc   :  { %4710 = vmatprep.subr.bf16.mxu0 %v7872_v21  ;;  %6048 = vmatprep.subr.bf16.mxu1 %v7264_v56 }
 0x5df   :  { %4711 = vmatpush1.bf16.msra.mxu0 %v7876_v26  ;;  %6049 = vmatpush3.bf16.msra.mxu1 %v7879_v38 }
 0x5e0   :  { %4712 = vmatprep.subr.bf16.mxu0 %v7882_v22  ;;  %6050 = vmatprep.subr.bf16.mxu1 %v7264_v56 }
 0x5e3   :  { %4713 = vmatpush1.bf16.msra.mxu0 %v7886_v23  ;;  %6051 = vmatpush3.bf16.msra.mxu1 %v7889_v24 }
 0x5e4   :  { %4714 = vmatprep.subr.bf16.mxu0 %v7892_v8  ;;  %6052 = vmatprep.subr.bf16.mxu1 %v7264_v56 }
 0x5e7   :  { %4715 = vmatpush1.bf16.msra.mxu0 %v7896_v28  ;;  %6053 = vmatpush3.bf16.msra.mxu1 %v7904_v30 }
 0x5e8   :  { %4819 = vmatprep.subr.bf16.mxu0 %v7821_v49  ;;  %6058 = vmatprep.subr.bf16.mxu1 %v7264_v56 }
 0x68a   :  { %v4615_v29 = vpop.f32.mrf.mxu0  ;;  %v4656_v60 = vpop.f32.mrf.mxu1 }
 0x68b   :  { %v4616_v35 = vadd.f32 %v4615_v29, %v7951_v39  ;;  %v4657_v16 = vadd.f32 %v4656_v60, %v7966_v31 }
 0x68c   :  { %v4617_v41 = vpop.f32.mrf.mxu0  ;;  %v6036_v48 = vpop.f32.mrf.mxu1 }
 0x68d   :  { %v4663_v51 = vrot.slane %v4616_v35, 6  ;;  %v4618_v53 = vadd.f32 %v4617_v41, %v7957_v45  ;;  %v4683_v32 = vrot.slane %v4657_v16, 6  ;;  %v6872_v16 = vld [vmem:[%s8168_s17] sm:$0xff]  }
 0x68e   :  { %v4619_v55 = vpop.f32.mrf.mxu0  ;;  %v4659_v57 = vpop.f32.mrf.mxu1 }
 0x68f   :  { %v4665_v58 = vadd.f32 %v4663_v51, %v7953_v42  ;;  %v4673_v1 = vrot.slane %v4618_v53, 6 }
 0x690   :  { %v4620_v27 = vpop.f32.mrf.mxu0  ;;  %v6037_v59 = vpop.f32.mrf.mxu1 }
 0x691   :  { %v5750_v61 = vmul.f32 -1.442695, %v4665_v58  ;;  %v4675_v49 = vadd.f32 %v4673_v1, %v7962_v25  ;;  %v6866_v1 = vld [vmem:[%s8168_s17 + $0x30] sm:$0xff]  }
 0x693   :  { %6885 = vpow2.f32 %v5750_v61  ;;  %v5751_v62 = vmul.f32 -1.442695, %v4675_v49  ;;  %v6865_v61 = vld [vmem:[%s8168_s17 + $0x38] sm:$0xff]   ;;  %v6867_v49 = vld [vmem:[%s8168_s17 + $0x28] sm:$0xff]  }
 0x695   :  { %6887 = vpow2.f32 %v5751_v62  ;;  %v6868_v62 = vld [vmem:[%s8168_s17 + $0x20] sm:$0xff]  }
 0x6a0   :  { %v6886_v63 = vpop.eup %6885 }
 0x6a1   :  { %v4669_v0 = vadd.f32 1.0, %v6886_v63  ;;  %v6869_v63 = vld [vmem:[%s8168_s17 + $0x18] sm:$0xff]  }
 0x6a2   :  { %v6888_v7 = vpop.eup %6887 }
 0x6a3   :  { %6889 = vrcp.f32 %v4669_v0  ;;  %v4679_v9 = vadd.f32 1.0, %v6888_v7  ;;  %v6870_v0 = vld [vmem:[%s8168_s17 + $0x10] sm:$0xff]   ;;  %v6871_v7 = vld [vmem:[%s8168_s17 + $0x8] sm:$0xff]   ;;  %s7268_s17 = smov [#allocation26]  }
 0x6a4   :  { %s5214_s0 = sshll.u32 %s7268_s17, 4  ;;  %s5215_s0 = int_to_ptr.vmem [resolvable:$true] %s5214_s0 }
 0x6a5   :  { %6891 = vrcp.f32 %v4679_v9  ;;  %s7204_s4 = scalar_lea.vmem %s5215_s0, 32  ;;  %p7209_p1 = scmp.lt.s32.totalorder %s5215_s0, %s5215_s0 }
 0x6a6   :  { %p7205_p0 = scmp.ne.s32.totalorder %s5215_s0, %s7204_s4  ;;  %p7210_p2 = scmp.lt.s32.totalorder %s7204_s4, %s7204_s4 }
 0x6a8   :  { %p7211_p3 = por %p7210_p2, %p7209_p1 }
 0x6aa   :  { %p7212_p4 = pnand %p7211_p3, %p7205_p0 }
 0x6b0   :  { %v6890_v33 = vpop.eup %6889 }
 0x6b1   :  { %v4685_v18 = vmul.f32 %v6890_v33, %v4683_v32 }
 0x6b2   :  { %v6892_v34 = vpop.eup %6891 }
 0x6b3   :  { %v4686_v47 = vadd.f32 %v4685_v18, %v7970_v6  ;;  %v4688_v37 = vsub.f32 1.0, %v6892_v34  ;;  %v4693_v43 = vmul.f32 %v6892_v34, %v4691_v40 }
 0x6b5   :  { %6893 = vtanh.f32 %v4686_v47 }
 0x6c2   :  { %v6894_v44 = vpop.eup %6893 }
 0x6c3   :  { %v4689_v36 = vmul.f32 %v6894_v44, %v4688_v37 }
 0x6c5   :  { %v8021_v29 = vadd.f32 %v4693_v43, %v4689_v36 }
 0x6c7   :  { %4695 = vst [vmem:[#allocation2] sm:$0xc] %v8021_v29  ;;  %v4696_v60 = vpack.c.bf16 %v8021_v29, %v8021_v29  ;;  %v4810_v51 = vrot.slane %v8021_v29, 6 }
 0x6c9   :  { %v4698_v35 = vrot.slane %v4696_v60, 1 }
 0x6cb   :  { %4733 = vmatmul.mubr.bf16.vlgmr.msra.gmra.mxu0 %v4698_v35  ;;  %6055 = vmatmul.mubr.bf16.vlgmr.msra.gmra.mxu1 %v4698_v35 }
 0x6cc   :  { %4820 = vmatpush1.bf16.msra.mxu0 %v7826_v2  ;;  %6059 = vmatpush3.bf16.msra.mxu1 %v7828_v3 }
 0x6cd   :  { %4821 = vmatprep.subr.bf16.mxu0 %v7830_v10  ;;  %6060 = vmatprep.subr.bf16.mxu1 %v7264_v56 }
 0x6ce   :  { %4851 = vmatprep.mubr.bf16.mxu0 %v7266_v50  ;;  %6074 = vmatprep.mubr.msk.bf16.mxu1 %vm7265_vm0, %v7264_v56 }
 0x6d0   :  { %4822 = vmatpush1.bf16.msra.mxu0 %v7833_v52  ;;  %6061 = vmatpush3.bf16.msra.mxu1 %v7836_v11 }
 0x6d1   :  { %4823 = vmatprep.subr.bf16.mxu0 %v7839_v13  ;;  %6062 = vmatprep.subr.bf16.mxu1 %v7264_v56 }
 0x6d4   :  { %4824 = vmatpush1.bf16.msra.mxu0 %v7846_v14  ;;  %6063 = vmatpush3.bf16.msra.mxu1 %v7849_v4 }
 0x6d5   :  { %4825 = vmatprep.subr.bf16.mxu0 %v7852_v15  ;;  %6064 = vmatprep.subr.bf16.mxu1 %v7264_v56 }
 0x6d8   :  { %4826 = vmatpush1.bf16.msra.mxu0 %v7856_v17  ;;  %6065 = vmatpush3.bf16.msra.mxu1 %v7859_v19 }
 0x6d9   :  { %4827 = vmatprep.subr.bf16.mxu0 %v7862_v54  ;;  %6066 = vmatprep.subr.bf16.mxu1 %v7264_v56 }
 0x6dc   :  { %4828 = vmatpush1.bf16.msra.mxu0 %v7866_v5  ;;  %6067 = vmatpush3.bf16.msra.mxu1 %v7869_v20 }
 0x6dd   :  { %4829 = vmatprep.subr.bf16.mxu0 %v7872_v21  ;;  %6068 = vmatprep.subr.bf16.mxu1 %v7264_v56 }
 0x6e0   :  { %4830 = vmatpush1.bf16.msra.mxu0 %v7876_v26  ;;  %6069 = vmatpush3.bf16.msra.mxu1 %v7879_v38 }
 0x6e1   :  { %4831 = vmatprep.subr.bf16.mxu0 %v7882_v22  ;;  %6070 = vmatprep.subr.bf16.mxu1 %v7264_v56 }
 0x6e4   :  { %4832 = vmatpush1.bf16.msra.mxu0 %v7886_v23  ;;  %6071 = vmatpush3.bf16.msra.mxu1 %v7889_v24 }
 0x6e5   :  { %4833 = vmatprep.subr.bf16.mxu0 %v7892_v8  ;;  %6072 = vmatprep.subr.bf16.mxu1 %v7264_v56 }
 0x6e8   :  { %4834 = vmatpush1.bf16.msra.mxu0 %v7896_v28  ;;  %6073 = vmatpush3.bf16.msra.mxu1 %v7904_v30 }
 0x6e9   :  { %6078 = vmatprep.subr.bf16.mxu0 %v7264_v56  ;;  %6098 = vmatprep.subr.mxu1 %v7264_v56 }
 0x78b   :  { %v4734_v50 = vpop.f32.mrf.mxu0  ;;  %v4775_v2 = vpop.f32.mrf.mxu1 }
 0x78c   :  { %v4735_v3 = vadd.f32 %v4734_v50, %v7951_v39  ;;  %v4776_v23 = vadd.f32 %v4775_v2, %v7966_v31 }
 0x78d   :  { %v4736_v10 = vpop.f32.mrf.mxu0  ;;  %v6056_v52 = vpop.f32.mrf.mxu1 }
 0x78e   :  { %v4782_v11 = vrot.slane %v4735_v3, 4  ;;  %v4737_v13 = vadd.f32 %v4736_v10, %v7957_v45  ;;  %v4802_v8 = vrot.slane %v4776_v23, 4  ;;  %v5056_v23 = vld [vmem:[#allocation23 + $0x10] sm:$0xff] }
 0x78f   :  { %v4738_v14 = vpop.f32.mrf.mxu0  ;;  %v4778_v4 = vpop.f32.mrf.mxu1 }
 0x790   :  { %v4784_v15 = vadd.f32 %v4782_v11, %v7953_v42  ;;  %v4792_v5 = vrot.slane %v4737_v13, 4 }
 0x791   :  { %v4739_v17 = vpop.f32.mrf.mxu0  ;;  %v6057_v19 = vpop.f32.mrf.mxu1 }
 0x792   :  { %v5752_v54 = vmul.f32 -1.442695, %v4784_v15  ;;  %v4794_v20 = vadd.f32 %v4792_v5, %v7962_v25 }
 0x794   :  { %6895 = vpow2.f32 %v5752_v54  ;;  %v5753_v21 = vmul.f32 -1.442695, %v4794_v20 }
 0x796   :  { %6897 = vpow2.f32 %v5753_v21  ;;  %v5061_v21 = vld [vmem:[#allocation23 + $0x38] sm:$0xff] }
 0x7a1   :  { %v6896_v26 = vpop.eup %6895 }
 0x7a2   :  { %v4788_v38 = vadd.f32 1.0, %v6896_v26  ;;  %v5060_v26 = vld [vmem:[#allocation23 + $0x30] sm:$0xff] }
 0x7a3   :  { %v6898_v22 = vpop.eup %6897 }
 0x7a4   :  { %6899 = vrcp.f32 %v4788_v38  ;;  %v4798_v24 = vadd.f32 1.0, %v6898_v22  ;;  %v5058_v38 = vld [vmem:[#allocation23 + $0x20] sm:$0xff]  ;;  %v5057_v22 = vld [vmem:[#allocation23 + $0x18] sm:$0xff] }
 0x7a6   :  { %6901 = vrcp.f32 %v4798_v24  ;;  %v5055_v24 = vld [vmem:[#allocation23 + $0x8] sm:$0xff] }
 0x7b1   :  { %v6900_v28 = vpop.eup %6899 }
 0x7b2   :  { %v4804_v30 = vmul.f32 %v6900_v28, %v4802_v8  ;;  %v5054_v8 = vld [vmem:[#allocation23] sm:$0xff]  ;;  %v5756_v28 = vld [vmem:[#allocation21] ss:$0 sm:$0xff] }
 0x7b3   :  { %v6902_v41 = vpop.eup %6901 }
 0x7b4   :  { %v4805_v46 = vadd.f32 %v4804_v30, %v7970_v6  ;;  %v4807_v48 = vsub.f32 1.0, %v6902_v41  ;;  %v4812_v57 = vmul.f32 %v6902_v41, %v4810_v51 }
 0x7b6   :  { %6903 = vtanh.f32 %v4805_v46 }
 0x7c3   :  { %v6904_v53 = vpop.eup %6903 }
 0x7c4   :  { %v4808_v55 = vmul.f32 %v6904_v53, %v4807_v48 }
 0x7c6   :  { %v8068_v58 = vadd.f32 %v4812_v57, %v4808_v55 }
 0x7c8   :  { %4814 = vst [vmem:[#allocation2] sm:$0x30] %v8068_v58  ;;  %v4815_v27 = vpack.c.bf16 %v8068_v58, %v8068_v58  ;;  %v4929_v15 = vrot.slane %v8068_v58, 6 }
 0x7ca   :  { %v4817_v59 = vrot.slane %v4815_v27, 2 }
 0x7cc   :  { %4852 = vmatmul.mubr.bf16.vlgmr.msra.gmra.mxu0 %v4817_v59  ;;  %6075 = vmatmul.mubr.bf16.vlgmr.msra.gmra.mxu1 %v4817_v59  ;;  %v5766_v59 = vld [vmem:[#allocation24] ss:$0 sm:$0xff] }
 0x7cd   :  { %6094 = vmatprep.mubr.msk.bf16.mxu0 %vm7265_vm0, %v7264_v56  ;;  %6114 = vmatprep.mubr.msk.f32.mxu1 %vm7265_vm0, %v7264_v56 }
 0x7ce   :  { %6079 = vmatpush3.bf16.msra.mxu0 %v6865_v61  ;;  %6099 = vmatpush3.msra.mxu1 %v5061_v21 }
 0x7cf   :  { %6080 = vmatprep.subr.bf16.mxu0 %v7264_v56  ;;  %6100 = vmatprep.subr.mxu1 %v7264_v56 }
 0x7d0   :  { %6101 = vmatpush3.msra.mxu1 %v5060_v26 }
 0x7d1   :  { %6102 = vmatprep.subr.mxu1 %v7264_v56 }
 0x7d2   :  { %6081 = vmatpush3.bf16.msra.mxu0 %v6866_v1 }
 0x7d3   :  { %6082 = vmatprep.subr.bf16.mxu0 %v7264_v56 }
 0x7d6   :  { %6083 = vmatpush3.bf16.msra.mxu0 %v6867_v49 }
 0x7d7   :  { %6084 = vmatprep.subr.bf16.mxu0 %v7264_v56 }
 0x7da   :  { %6085 = vmatpush3.bf16.msra.mxu0 %v6868_v62 }
 0x7db   :  { %6086 = vmatprep.subr.bf16.mxu0 %v7264_v56 }
 0x7de   :  { %6087 = vmatpush3.bf16.msra.mxu0 %v6869_v63  ;;  %v8127_v63 = vand.u32 127, %v455_v12  ;;  %v7267_v12 = vmov 5  }
 0x7df   :  { %6088 = vmatprep.subr.bf16.mxu0 %v7264_v56  ;;  %6144 = vset.pattern.permute.xlu0 %v7267_v12 }
 0x7e2   :  { %6089 = vmatpush3.bf16.msra.mxu0 %v6870_v0 }
 0x7e3   :  { %6090 = vmatprep.subr.bf16.mxu0 %v7264_v56 }
 0x7e6   :  { %6091 = vmatpush3.bf16.msra.mxu0 %v6871_v7 }
 0x7e7   :  { %6092 = vmatprep.subr.bf16.mxu0 %v7264_v56 }
 0x7ea   :  { %6093 = vmatpush3.bf16.msra.mxu0 %v6872_v16 }
 0x88c   :  { %v4853_v9 = vpop.f32.mrf.mxu0  ;;  %v4894_v32 = vpop.f32.mrf.mxu1 }
 0x88d   :  { %v4854_v33 = vadd.f32 %v4853_v9, %v7951_v39  ;;  %v4895_v52 = vadd.f32 %v4894_v32, %v7966_v31 }
 0x88e   :  { %v4855_v18 = vpop.f32.mrf.mxu0  ;;  %v6076_v47 = vpop.f32.mrf.mxu1 }
 0x88f   :  { %v4901_v34 = vrot.slane %v4854_v33, 2  ;;  %v4856_v37 = vadd.f32 %v4855_v18, %v7957_v45  ;;  %v4921_v11 = vrot.slane %v4895_v52, 2 }
 0x890   :  { %v4857_v40 = vpop.f32.mrf.mxu0  ;;  %v4897_v44 = vpop.f32.mrf.mxu1 }
 0x891   :  { %v4903_v36 = vadd.f32 %v4901_v34, %v7953_v42  ;;  %v4911_v35 = vrot.slane %v4856_v37, 2 }
 0x892   :  { %v4858_v43 = vpop.f32.mrf.mxu0  ;;  %v6077_v29 = vpop.f32.mrf.mxu1 }
 0x893   :  { %v5754_v60 = vmul.f32 -1.442695, %v4903_v36  ;;  %v4913_v50 = vadd.f32 %v4911_v35, %v7962_v25 }
 0x895   :  { %6905 = vpow2.f32 %v5754_v60  ;;  %v5755_v2 = vmul.f32 -1.442695, %v4913_v50 }
 0x897   :  { %6907 = vpow2.f32 %v5755_v2 }
 0x8a2   :  { %v6906_v3 = vpop.eup %6905 }
 0x8a3   :  { %v4907_v39 = vadd.f32 1.0, %v6906_v3 }
 0x8a4   :  { %v6908_v10 = vpop.eup %6907 }
 0x8a5   :  { %6909 = vrcp.f32 %v4907_v39  ;;  %v4917_v45 = vadd.f32 1.0, %v6908_v10 }
 0x8a7   :  { %6911 = vrcp.f32 %v4917_v45 }
 0x8b2   :  { %v6910_v13 = vpop.eup %6909 }
 0x8b3   :  { %v4923_v14 = vmul.f32 %v6910_v13, %v4921_v11 }
 0x8b4   :  { %v6912_v4 = vpop.eup %6911 }
 0x8b5   :  { %v4924_v42 = vadd.f32 %v4923_v14, %v7970_v6  ;;  %v4926_v25 = vsub.f32 1.0, %v6912_v4  ;;  %v4931_v54 = vmul.f32 %v6912_v4, %v4929_v15  ;;  %v5059_v6 = vld [vmem:[#allocation23 + $0x28] sm:$0xff] }
 0x8b6   :  { %6103 = vmatpush3.msra.mxu1 %v5059_v6 }
 0x8b7   :  { %6913 = vtanh.f32 %v4924_v42  ;;  %6104 = vmatprep.subr.mxu1 %v7264_v56 }
 0x8b8   :  { %6105 = vmatpush3.msra.mxu1 %v5058_v38 }
 0x8b9   :  { %6106 = vmatprep.subr.mxu1 %v7264_v56 }
 0x8ba   :  { %6107 = vmatpush3.msra.mxu1 %v5057_v22 }
 0x8bb   :  { %6108 = vmatprep.subr.mxu1 %v7264_v56 }
 0x8bc   :  { %6109 = vmatpush3.msra.mxu1 %v5056_v23 }
 0x8bd   :  { %6110 = vmatprep.subr.mxu1 %v7264_v56 }
 0x8be   :  { %6111 = vmatpush3.msra.mxu1 %v5055_v24 }
 0x8bf   :  { %6112 = vmatprep.subr.mxu1 %v7264_v56 }
 0x8c0   :  { %6113 = vmatpush3.msra.mxu1 %v5054_v8 }
 0x8c4   :  { %v6914_v17 = vpop.eup %6913 }
 0x8c5   :  { %v4927_v19 = vmul.f32 %v6914_v17, %v4926_v25 }
 0x8c7   :  { %v4932_v5 = vadd.f32 %v4931_v54, %v4927_v19 }
 0x8c9   :  { %4933 = vst [vmem:[#allocation2] sm:$0xc0] %v4932_v5  ;;  %4934 = vst [vmem:[#allocation26 - $0x6] sm:$0xc0] %v4932_v5 }
 0x8d0   :  { %v4935_v20 = vld [vmem:[#allocation2] sm:$0xff] }
 0x8d1   :  { %v4936_v31 = vpack.c.bf16 %v4935_v20, %v4935_v20 }
 0x8d3   :  { %6095 = vmatmul.mubr.bf16.vlgmr.msra.gmra.mxu0 %v4936_v31 }
 0x993   :  { %v5042_v30 = vpop.f32.mrf.mxu0 }
 0x994   :  { %v5043_v46 = vadd.f32 %v5756_v28, %v5042_v30 }
 0x995   :  { %v6096_v41 = vpop.f32.mrf.mxu0 }
 0x996   :  { %v5049_v48 = vmin.f32 %v5043_v46, 0.0  ;;  %vm5048_vm3 = vcmp.gt.f32.partialorder %v5043_v46, 0.0 }
 0x997   :  { %v5045_v51 = vpop.f32.mrf.mxu0 }
 0x998   :  { %v5050_v53 = vmul.f32 1.442695, %v5049_v48 }
 0x999   :  { %v6097_v55 = vpop.f32.mrf.mxu0 }
 0x99a   :  { %6915 = vpow2.f32 %v5050_v53 }
 0x9a7   :  { %v6916_v57 = vpop.eup %6915 }
 0x9a8   :  { %v5765_v58 = vadd.f32 -1.0, %v6916_v57 }
 0x9aa   :  { %v5053_v27 = vsel %vm5048_vm3, %v5043_v46, %v5765_v58 }
 0x9ab   :  { %6115 = vmatmul.mubr.msk.f32.vlgmr.msra.gmra.mxu1 %vm5069_vm2, %v5053_v27 }
 0xa6b   :  { %v5139_v61 = vpop.f32.mrf.mxu1 }
 0xa6c   :  { %v8122_v1 = vadd.f32 %v5766_v59, %v5139_v61 }
 0xa6d   :  { %v6116_v49 = vpop.f32.mrf.mxu1 }
 0xa6e   :  { %v5144_v62 = vsel %vm5143_vm4, %v8122_v1, -inf }
 0xa6f   :  { %5145 = vmax.xlane.f32.xlu0 %v5144_v62 }
 0xaf8   :  { %v5146_v0 = vpop.xlane.xlu0 %5145 }
 0xaf9   :  { %v5147_v7 = vsub.f32 %v8122_v1, %v5146_v0  ;;  %vm5165_vm5 = vcmp.eq.f32.partialorder %v8122_v1, %v5146_v0 }
 0xafa   :  { %v5166_v16 = vsel %vm5165_vm5, %v8127_v63, 5 }
 0xafb   :  { %v5148_v9 = vmul.f32 1.442695, %v5147_v7  ;;  %v5167_v32 = vsel %vm5143_vm4, %v5166_v16, 2147483647 }
 0xafc   :  { %v5169_v33 = vshra.s32 %v5167_v32, 16  ;;  %v5168_v37 = vand.u32 65535, %v5167_v32 }
 0xafd   :  { %6917 = vpow2.f32 %v5148_v9 }
 0xafe   :  { %v5171_v18 = vcvt.s32.f32 %v5169_v33  ;;  %v5170_v44 = vcvt.s32.f32 %v5168_v37 }
 0xb00   :  { %5172 = vmin.xlane.f32.xlu0 %v5171_v18 }
 0xb0a   :  { %v6918_v47 = vpop.eup %6917 }
 0xb0b   :  { %v5150_v34 = vsel %vm5143_vm4, %v6918_v47, 0.0 }
 0xb0c   :  { %5151 = vadd.xlane.f32.xlu1 %v5150_v34 }
 0xb89   :  { %v5173_v40 = vpop.xlane.xlu0 %5172 }
 0xb8a   :  { %vm5174_vm6 = vcmp.eq.f32.partialorder %v5171_v18, %v5173_v40  ;;  %v5179_v10 = vcvt.f32.s32 %v5173_v40 }
 0xb8b   :  { %v5175_v36 = vsel %vm5174_vm6, %v5170_v44, inf }
 0xb8c   :  { %5176 = vmin.xlane.f32.xlu1 %v5175_v36  ;;  %v5180_v45 = vshll.u32 %v5179_v10, 16 }
 0xb95   :  { %v5152_v43 = vpop.xlane.xlu1 %5151 }
 0xb96   :  { %6919 = vlog2.f32 %v5152_v43 }
 0xba3   :  { %v6920_v29 = vpop.eup %6919 }
 0xba4   :  { %v5154_v60 = vmul.f32 0.6931472, %v6920_v29 }
 0xba6   :  { %v5155_v35 = vsub.f32 %v5147_v7, %v5154_v60 }
 0xba8   :  { %v5156_v50 = vmul.f32 1.442695, %v5155_v35 }
 0xbaa   :  { %6921 = vpow2.f32 %v5156_v50 }
 0xbb7   :  { %v6922_v2 = vpop.eup %6921 }
 0xbb8   :  { %v5158_v3 = vmul.f32 %v6922_v2, %v5155_v35 }
 0xbba   :  { %v5159_v39 = vsel %vm5143_vm4, %v5158_v3, 0.0 }
 0xbbb   :  { %5160 = vadd.xlane.f32.xlu0 %v5159_v39 }
 0xbd1   :  { %5197 = vperm.xlu0 %6144, %v8122_v1  }
 0xc15   :  { %v5177_v52 = vpop.xlane.xlu1 %5176 }
 0xc16   :  { %v5178_v11 = vcvt.f32.s32 %v5177_v52 }
 0xc18   :  { %v5181_v13 = vadd.s32 %v5180_v45, %v5178_v11 }
 0xc1a   :  { %vm5182_vm7 = vcmp.eq.s32.totalorder %v8127_v63, %v5181_v13 }
 0xc1b   :  { %v5768_v14 = vsel %vm5182_vm7, 1.0, %v7264_v56 }
 0xc1c   :  { %v5185_v42 = vmul.f32 %v5768_v14, %v5155_v35 }
 0xc1e   :  { %v5186_v4 = vsel %vm5143_vm4, %v5185_v42, 0.0 }
 0xc1f   :  { %5187 = vadd.xlane.f32.xlu1 %v5186_v4 }
 0xc20   :  { %7215 = shalt.err (!%p7212_p4)
}
 0xc21   :  { %5217 = dma.vmem_to_hbm [thread:$0]  %s5215_s0, 32, %s8174_s23, [#allocation5]   ;;  %vm5194_vm8 = vcmp.eq.s32.totalorder %v8127_v63, 8  ;;  %vm5193_vm9 = vcmp.eq.s32.totalorder %v8127_v63, 7  ;;  %vm5192_vm10 = vcmp.eq.s32.totalorder %v8127_v63, 6  ;;  %vm5190_vm11 = vcmp.eq.s32.totalorder %v8127_v63, 5 }
 0xc22   :  { %v5191_v19 = vcvt.s32.f32 %v5181_v13  ;;  %vm5189_vm12 = vcmp.lt.s32.totalorder %v8127_v63, 5 }
 0xc44   :  { %v5161_v15 = vpop.xlane.xlu0 %5160 }
 0xc45   :  { %v5162_v17 = vsub.f32 0.0, %v5161_v15 }
 0xc4c   :  { %v5198_v56 = vpop.permute.xlu0 %5197 }
 0xc4d   :  { %v5200_v25 = vsel %vm5194_vm8, %v5198_v56, 0.0 }
 0xc4e   :  { %v5201_v54 = vsel %vm5193_vm9, %v5162_v17, %v5200_v25 }
 0xca8   :  { %v5188_v5 = vpop.xlane.xlu1 %5187 }
 0xca9   :  { %v5202_v20 = vsel %vm5192_vm10, %v5188_v5, %v5201_v54 }
 0xcaa   :  { %v5203_v31 = vsel %vm5190_vm11, %v5191_v19, %v5202_v20 }
 0xcab   :  { %v5204_v21 = vsel %vm5189_vm12, %v8122_v1, %v5203_v31 }
 0xcac   :  { %5205 = vst [vmem:[%s8173_s22] sm:$0xff] %v5204_v21 }
 0xcad   :  { %7240 = dma.done.wait [#allocation5], 32  }
 0xcae   :  { %7241 = vsyncadd [#allocation5], 4294967264 }
 0xcaf   :  { %5223 = vsyncpa [#allocation4], 1 }
 0xcb0   :  { %5224 = vsyncpa [#allocation7], 1 }
 0xcb1   :  { %5225 = vsyncpa [#allocation10], 1 }
 0xcb2   :  { %5226 = vsyncpa [#allocation13], 1 }
 0xcb3   :  { %5227 = vsyncpa [#allocation16], 1 }
 0xcb4   :  { %5228 = vsyncpa [#allocation19], 1 }
 0xcb5   :  { %5229 = vsyncpa [#allocation22], 1 }
 0xcb6   :  { %5230 = vsyncpa [#allocation25], 1 }
 0xcb7   :  { %5231 = vsyncpa [#allocation5], 1 }

</bundles_post_ra>
